<compile_context>
chip_gen: v7x
topology: tpu7x:2x2x1
jax: 0.10.0
libtpu: 0.0.40
codegen_flags: <defaults>
</compile_context>

<pallas_src>
import jax
import jax.numpy as jnp
from jax.experimental import pallas as pl
from jax.experimental.pallas import tpu as pltpu

EMBEDDING_SIZE = 768
NUM_CLASSES = 6
NUM_REGRESSOR_OUTPUTS = 5
NUM_REG = NUM_CLASSES * NUM_REGRESSOR_OUTPUTS   # 30
HIDDEN = 256
FEAT = EMBEDDING_SIZE * 4                       # 3072
FUSED_HIDDEN = 2 * HIDDEN                       # 512 (classifier || regressor)
OUT_PAD = 128                                   # lane-dense output slab width
NUM_BACKBONE_LAYERS = 4
VOCAB = 100
TB_MAX = 512                                    # max batch-tile rows


def _round_up(x, m):
    return (x + m - 1) // m * m


def _cdiv(a, b):
    return (a + b - 1) // b


def _choose_batch_tile(B):
    """Batch tile: multiple of 8 sublanes, capped at TB_MAX.

    - keeps >= 2 grid steps when B > 8 so dimension_semantics=("parallel",)
      actually shards across v7x's two TensorCores,
    - padding-aware: picks the smallest multiple of 8 that covers B with the
      chosen number of tiles, so almost no dead rows are DMA'd / matmul'd,
    - TB_MAX=512 amortizes the ~0.35 us per-grid-step overhead while the
      resident fused weights + double-buffered tiles stay under 32 MiB VMEM.
    """
    if B <= 8:
        return _round_up(max(B, 1), 8)
    n_tiles = max(2, _cdiv(B, TB_MAX))
    return min(TB_MAX, _round_up(_cdiv(B, n_tiles), 8))


# ----------------------------------------------------------------------------
# Pallas kernel: fused classifier + regressor heads for one batch tile
# ----------------------------------------------------------------------------
def _heads_kernel(c1, c2, c3, c4, w1, b1, w2, b2, out):
    # c1..c4: [TB, 768] bf16   (CLS of the last 4 hidden states)
    # w1:     [3072, 512] bf16 (w1_classifier || w1_regressor, column-fused)
    # b1:     [1, 512] f32
    # w2:     [512, 128] bf16  (block-diag: w2c -> cols 0:6, w2r -> cols 6:36)
    # b2:     [1, 128] f32
    # out:    [TB, 128] f32    cols 0:6 = sigmoid(classifier), 6:36 = regressor

    # torch.cat(...) @ W1 without materializing the [TB, 3072] concat:
    # 4 accumulating MXU dots against static row slices of the fused weight.
    acc = jnp.dot(c1[...], w1[0 * EMBEDDING_SIZE:1 * EMBEDDING_SIZE, :],
                  preferred_element_type=jnp.float32)
    acc += jnp.dot(c2[...], w1[1 * EMBEDDING_SIZE:2 * EMBEDDING_SIZE, :],
                   preferred_element_type=jnp.float32)
    acc += jnp.dot(c3[...], w1[2 * EMBEDDING_SIZE:3 * EMBEDDING_SIZE, :],
                   preferred_element_type=jnp.float32)
    acc += jnp.dot(c4[...], w1[3 * EMBEDDING_SIZE:4 * EMBEDDING_SIZE, :],
                   preferred_element_type=jnp.float32)

    # Bias + ReLU in f32 (Dropout = eval-mode identity).
    h = jnp.maximum(acc + b1[...], 0.0)                              # [TB, 512]

    # Fused bf16 second layer (f32 accumulation) -> lane-dense [TB, 128] slab.
    y = jnp.dot(h.astype(jnp.bfloat16), w2[...],
                preferred_element_type=jnp.float32) + b2[...]

    # Sigmoid only on the classifier lanes; regressor lanes stay linear.
    # exp + approx reciprocal both go to the EUP slot (free under the
    # MXU-/DMA-bound regimes); clamp keeps the exact [0, 1] sigmoid range.
    col = jax.lax.broadcasted_iota(jnp.int32, y.shape, 1)
    sig = jnp.minimum(pl.reciprocal(1.0 + jnp.exp(-y), approx=True), 1.0)
    out[...] = jnp.where(col < NUM_CLASSES, sig, y)


def heads_pallas(cls_feats, packed):
    c1, c2, c3, c4 = cls_feats                      # each [B, 768] (bf16 preferred)
    B = c1.shape[0]

    TB = _choose_batch_tile(B)
    Bp = _round_up(B, TB)

    def prep(c):
        if c.dtype != jnp.bfloat16:                 # producer normally emits bf16
            c = c.astype(jnp.bfloat16)
        if Bp != B:
            c = jnp.pad(c, ((0, Bp - B), (0, 0)))
        return c

    c1, c2, c3, c4 = prep(c1), prep(c2), prep(c3), prep(c4)

    cls_spec = pl.BlockSpec((TB, EMBEDDING_SIZE), lambda i: (i, 0))

    def w_spec(shape):
        return pl.BlockSpec(shape, lambda i: (0, 0))   # resident across grid

    out = pl.pallas_call(
        _heads_kernel,
        out_shape=jax.ShapeDtypeStruct((Bp, OUT_PAD), jnp.float32),
        grid=(Bp // TB,),
        in_specs=[cls_spec, cls_spec, cls_spec, cls_spec,
                  w_spec((FEAT, FUSED_HIDDEN)),
                  w_spec((1, FUSED_HIDDEN)),
                  w_spec((FUSED_HIDDEN, OUT_PAD)),
                  w_spec((1, OUT_PAD))],
        out_specs=pl.BlockSpec((TB, OUT_PAD), lambda i: (i, 0)),
        compiler_params=pltpu.CompilerParams(
            dimension_semantics=("parallel",),
            vmem_limit_bytes=32 * 1024 * 1024),
    )(c1, c2, c3, c4,
      packed["w1"], packed["b1"], packed["w2"], packed["b2"])

    out_c = out[:B, :NUM_CLASSES]                         # sigmoid already applied
    out_r = out[:B, NUM_CLASSES:NUM_CLASSES + NUM_REG]    # raw regressor outputs
    return out_c, out_r


# ----------------------------------------------------------------------------
# Offline weight packing for the fused kernel
# ----------------------------------------------------------------------------
def pack_head_params(params):
    # First layer: column-fuse classifier and regressor -> [3072, 512] bf16.
    # Row order matches the reference cat order (hs[-1], hs[-2], hs[-3], hs[-4]).
    w1 = jnp.concatenate([params["w1c"], params["w1r"]], axis=1).astype(jnp.bfloat16)
    b1 = jnp.concatenate([params["b1c"], params["b1r"]], axis=1).astype(jnp.float32)
    # Second layer: block-diagonal, lane-padded to 128; padding lanes are
    # zeroed (exact in bf16) so no garbage leaks into the sliced outputs.
    w2 = jnp.zeros((FUSED_HIDDEN, OUT_PAD), jnp.float32)
    w2 = w2.at[:HIDDEN, :NUM_CLASSES].set(params["w2c"])
    w2 = w2.at[HIDDEN:, NUM_CLASSES:NUM_CLASSES + NUM_REG].set(params["w2r"])
    w2 = w2.astype(jnp.bfloat16)
    b2 = jnp.zeros((1, OUT_PAD), jnp.float32)
    b2 = b2.at[:, :NUM_CLASSES].set(params["b2c"])
    b2 = b2.at[:, NUM_CLASSES:NUM_CLASSES + NUM_REG].set(params["b2r"])
    # TODO(synk): on v7x the MXU natively takes fp8 (e4m3); w1 / CLS inputs
    # could be packed fp8 for ~2x at the memory roofline, pending an accuracy
    # check against the trained head. Kept bf16 here.
    return {"w1": w1, "b1": b1, "w2": w2, "b2": b2}


# ----------------------------------------------------------------------------
# Deterministic parameter init (no checkpoint loading)
# ----------------------------------------------------------------------------
def init_params(key):
    ks = jax.random.split(key, 16)

    def lin_w(k, fan_in, fan_out):
        return (jax.random.normal(k, (fan_in, fan_out), jnp.float32)
                * (1.0 / jnp.sqrt(jnp.float32(fan_in))))

    def lin_b(k, fan_out):
        return jax.random.normal(k, (1, fan_out), jnp.float32) * 0.01

    return {
        # stand-in backbone params
        "emb": jax.random.normal(ks[0], (VOCAB, EMBEDDING_SIZE), jnp.float32) * 0.02,
        "layers": [lin_w(ks[1 + i], EMBEDDING_SIZE, EMBEDDING_SIZE)
                   for i in range(NUM_BACKBONE_LAYERS)],
        # classifier head
        "w1c": lin_w(ks[6], FEAT, HIDDEN),
        "b1c": lin_b(ks[7], HIDDEN),
        "w2c": lin_w(ks[8], HIDDEN, NUM_CLASSES),
        "b2c": lin_b(ks[9], NUM_CLASSES),
        # regressor head
        "w1r": lin_w(ks[10], FEAT, HIDDEN),
        "b1r": lin_b(ks[11], HIDDEN),
        "w2r": lin_w(ks[12], HIDDEN, NUM_REG),
        "b2r": lin_b(ks[13], NUM_REG),
    }


# ----------------------------------------------------------------------------
# Backbone stand-in (plain-JAX glue producing the hidden-state tuple)
# ----------------------------------------------------------------------------
def backbone_standin(input_ids, attention_mask, params):
    # TODO(synk): the HuggingFace AutoModel transformer backbone cannot be
    # reproduced without its checkpoint/config; this deterministic stand-in
    # emits the same output structure (list of per-layer hidden states
    # [B, S, 768]) so the downstream cat + heads match the reference forward.
    h = params["emb"][input_ids]                       # [B, S, 768]
    mask = attention_mask[..., None].astype(h.dtype)   # [B, S, 1]
    hidden_states = [h]
    for w in params["layers"]:
        h = h + jnp.tanh(h @ w) * mask
        hidden_states.append(h)
    return hidden_states


def combined_model_forward(input_ids, attention_mask, params, packed):
    hs = backbone_standin(input_ids, attention_mask, params)
    # CLS token (position 0) of the last four hidden states, cast to bf16 at
    # the producer (fuses into the slice; avoids a separate f32->bf16 pass
    # re-reading 4x[B,768] from HBM before the kernel starts).
    cls_feats = tuple(hs[-k][:, 0, :].astype(jnp.bfloat16) for k in (1, 2, 3, 4))
    out_c, out_r = heads_pallas(cls_feats, packed)
    out_r = out_r.reshape(-1, NUM_CLASSES, NUM_REGRESSOR_OUTPUTS)
    return out_c, out_r


if __name__ == "__main__":
    key = jax.random.PRNGKey(0)
    kp, kid = jax.random.split(key)
    params = init_params(kp)
    packed = pack_head_params(params)

    B, S = 2, 8
    input_ids = jax.random.randint(kid, (B, S), 0, VOCAB, dtype=jnp.int32)
    attention_mask = jnp.ones((B, S), dtype=jnp.int32)

    out_c, out_r = combined_model_forward(input_ids, attention_mask, params, packed)
    jax.block_until_ready((out_c, out_r))

    assert out_c.shape == (B, NUM_CLASSES)
    assert out_r.shape == (B, NUM_CLASSES, NUM_REGRESSOR_OUTPUTS)
    assert bool(jnp.all((out_c >= 0.0) & (out_c <= 1.0)))
    print("KERNEL_OK")
</pallas_src>

<mosaic_0001>
module attributes {stable_mosaic.version = 11 : i64} {
  func.func @_heads_kernel(%arg0: i32, %arg1: memref<8x768xbf16, #tpu.memory_space<vmem>>, %arg2: memref<8x768xbf16, #tpu.memory_space<vmem>>, %arg3: memref<8x768xbf16, #tpu.memory_space<vmem>>, %arg4: memref<8x768xbf16, #tpu.memory_space<vmem>>, %arg5: memref<3072x512xbf16, #tpu.memory_space<vmem>>, %arg6: memref<1x512xf32, #tpu.memory_space<vmem>>, %arg7: memref<512x128xbf16, #tpu.memory_space<vmem>>, %arg8: memref<1x128xf32, #tpu.memory_space<vmem>>, %arg9: memref<8x128xf32, #tpu.memory_space<vmem>>) attributes {dimension_semantics = [#tpu.dimension_semantics<parallel>], iteration_bounds = array<i64: 1>, scalar_prefetch = 0 : i64, scratch_operands = 0 : i64, tpu.core_type = #tpu.core_type<tc>, window_params = [{transform_indices = @transform_0, window_bounds = array<i64: 8, 768>}, {transform_indices = @transform_1, window_bounds = array<i64: 8, 768>}, {transform_indices = @transform_2, window_bounds = array<i64: 8, 768>}, {transform_indices = @transform_3, window_bounds = array<i64: 8, 768>}, {pipeline_mode = #tpu.pipeline_mode<synchronous>, transform_indices = @transform_4, window_bounds = array<i64: 3072, 512>}, {pipeline_mode = #tpu.pipeline_mode<synchronous>, transform_indices = @transform_5, window_bounds = array<i64: 1, 512>}, {pipeline_mode = #tpu.pipeline_mode<synchronous>, transform_indices = @transform_6, window_bounds = array<i64: 512, 128>}, {pipeline_mode = #tpu.pipeline_mode<synchronous>, transform_indices = @transform_7, window_bounds = array<i64: 1, 128>}, {transform_indices = @transform_8, window_bounds = array<i64: 8, 128>}]} {
    %c0 = arith.constant 0 : index
    %c0_0 = arith.constant 0 : index
    %0 = vector.load %arg1[%c0, %c0_0] : memref<8x768xbf16, #tpu.memory_space<vmem>>, vector<8x768xbf16>
    %c0_1 = arith.constant 0 : index
    %c0_2 = arith.constant 0 : index
    %1 = vector.load %arg5[%c0_1, %c0_2] : memref<3072x512xbf16, #tpu.memory_space<vmem>>, vector<768x512xbf16>
    %cst = arith.constant dense<0.000000e+00> : vector<8x512xf32>
    %2 = tpu.matmul %0, %1, %cst {dimension_numbers = #tpu.dot_dimension_numbers<[1], [0], [0], [1], [0, 0, 1, 1], [], []>} : vector<8x768xbf16>, vector<768x512xbf16>, vector<8x512xf32> -> vector<8x512xf32>
    %c0_3 = arith.constant 0 : index
    %c0_4 = arith.constant 0 : index
    %3 = vector.load %arg2[%c0_3, %c0_4] : memref<8x768xbf16, #tpu.memory_space<vmem>>, vector<8x768xbf16>
    %c768 = arith.constant 768 : index
    %c0_5 = arith.constant 0 : index
    %4 = vector.load %arg5[%c768, %c0_5] : memref<3072x512xbf16, #tpu.memory_space<vmem>>, vector<768x512xbf16>
    %cst_6 = arith.constant dense<0.000000e+00> : vector<8x512xf32>
    %5 = tpu.matmul %3, %4, %cst_6 {dimension_numbers = #tpu.dot_dimension_numbers<[1], [0], [0], [1], [0, 0, 1, 1], [], []>} : vector<8x768xbf16>, vector<768x512xbf16>, vector<8x512xf32> -> vector<8x512xf32>
    %6 = arith.addf %2, %5 : vector<8x512xf32>
    %c0_7 = arith.constant 0 : index
    %c0_8 = arith.constant 0 : index
    %7 = vector.load %arg3[%c0_7, %c0_8] : memref<8x768xbf16, #tpu.memory_space<vmem>>, vector<8x768xbf16>
    %c1536 = arith.constant 1536 : index
    %c0_9 = arith.constant 0 : index
    %8 = vector.load %arg5[%c1536, %c0_9] : memref<3072x512xbf16, #tpu.memory_space<vmem>>, vector<768x512xbf16>
    %cst_10 = arith.constant dense<0.000000e+00> : vector<8x512xf32>
    %9 = tpu.matmul %7, %8, %cst_10 {dimension_numbers = #tpu.dot_dimension_numbers<[1], [0], [0], [1], [0, 0, 1, 1], [], []>} : vector<8x768xbf16>, vector<768x512xbf16>, vector<8x512xf32> -> vector<8x512xf32>
    %10 = arith.addf %6, %9 : vector<8x512xf32>
    %c0_11 = arith.constant 0 : index
    %c0_12 = arith.constant 0 : index
    %11 = vector.load %arg4[%c0_11, %c0_12] : memref<8x768xbf16, #tpu.memory_space<vmem>>, vector<8x768xbf16>
    %c2304 = arith.constant 2304 : index
    %c0_13 = arith.constant 0 : index
    %12 = vector.load %arg5[%c2304, %c0_13] : memref<3072x512xbf16, #tpu.memory_space<vmem>>, vector<768x512xbf16>
    %cst_14 = arith.constant dense<0.000000e+00> : vector<8x512xf32>
    %13 = tpu.matmul %11, %12, %cst_14 {dimension_numbers = #tpu.dot_dimension_numbers<[1], [0], [0], [1], [0, 0, 1, 1], [], []>} : vector<8x768xbf16>, vector<768x512xbf16>, vector<8x512xf32> -> vector<8x512xf32>
    %14 = arith.addf %10, %13 : vector<8x512xf32>
    %c0_15 = arith.constant 0 : index
    %c0_16 = arith.constant 0 : index
    %15 = vector.load %arg6[%c0_15, %c0_16] : memref<1x512xf32, #tpu.memory_space<vmem>>, vector<1x512xf32>
    %16 = vector.broadcast %15 : vector<1x512xf32> to vector<8x512xf32>
    %17 = arith.addf %14, %16 : vector<8x512xf32>
    %cst_17 = arith.constant 0.000000e+00 : f32
    %18 = vector.broadcast %cst_17 : f32 to vector<8x512xf32>
    %19 = arith.maximumf %17, %18 : vector<8x512xf32>
    %20 = arith.truncf %19 : vector<8x512xf32> to vector<8x512xbf16>
    %c0_18 = arith.constant 0 : index
    %c0_19 = arith.constant 0 : index
    %21 = vector.load %arg7[%c0_18, %c0_19] : memref<512x128xbf16, #tpu.memory_space<vmem>>, vector<512x128xbf16>
    %cst_20 = arith.constant dense<0.000000e+00> : vector<8x128xf32>
    %22 = tpu.matmul %20, %21, %cst_20 {dimension_numbers = #tpu.dot_dimension_numbers<[1], [0], [0], [1], [0, 0, 1, 1], [], []>} : vector<8x512xbf16>, vector<512x128xbf16>, vector<8x128xf32> -> vector<8x128xf32>
    %c0_21 = arith.constant 0 : index
    %c0_22 = arith.constant 0 : index
    %23 = vector.load %arg8[%c0_21, %c0_22] : memref<1x128xf32, #tpu.memory_space<vmem>>, vector<1x128xf32>
    %24 = vector.broadcast %23 : vector<1x128xf32> to vector<8x128xf32>
    %25 = arith.addf %22, %24 : vector<8x128xf32>
    %26 = tpu.iota {dimensions = array<i32: 1>} : vector<8x128xi32>
    %cst_23 = arith.constant 0.000000e+00 : f32
    %27 = vector.broadcast %cst_23 : f32 to vector<8x128xf32>
    %28 = arith.subf %27, %25 : vector<8x128xf32>
    %29 = math.exp %28 : vector<8x128xf32>
    %cst_24 = arith.constant 1.000000e+00 : f32
    %30 = vector.broadcast %cst_24 : f32 to vector<8x128xf32>
    %31 = arith.addf %30, %29 : vector<8x128xf32>
    %32 = tpu.reciprocal %31 {approx = true} : vector<8x128xf32> -> vector<8x128xf32>
    %cst_25 = arith.constant 1.000000e+00 : f32
    %33 = vector.broadcast %cst_25 : f32 to vector<8x128xf32>
    %34 = arith.minimumf %32, %33 : vector<8x128xf32>
    %c6_i32 = arith.constant 6 : i32
    %35 = vector.broadcast %c6_i32 : i32 to vector<8x128xi32>
    %36 = arith.cmpi slt, %26, %35 : vector<8x128xi32>
    %37 = arith.select %36, %34, %25 : vector<8x128xi1>, vector<8x128xf32>
    %c0_26 = arith.constant 0 : index
    %c0_27 = arith.constant 0 : index
    %38 = vector.load %arg9[%c0_26, %c0_27] : memref<8x128xf32, #tpu.memory_space<vmem>>, vector<8x128xf32>
    tpu.vector_store %arg9[%c0_26, %c0_27], %37 {strides = array<i32>} : memref<8x128xf32, #tpu.memory_space<vmem>>, vector<8x128xf32>,
    return
  }
  func.func @transform_0(%arg0: i32) -> (i32, i32) {
    %c0_i32 = arith.constant 0 : i32
    %c0_i32_0 = arith.constant 0 : i32
    return %arg0, %c0_i32 : i32, i32
  }
  func.func @transform_1(%arg0: i32) -> (i32, i32) {
    %c0_i32 = arith.constant 0 : i32
    %c0_i32_0 = arith.constant 0 : i32
    return %arg0, %c0_i32 : i32, i32
  }
  func.func @transform_2(%arg0: i32) -> (i32, i32) {
    %c0_i32 = arith.constant 0 : i32
    %c0_i32_0 = arith.constant 0 : i32
    return %arg0, %c0_i32 : i32, i32
  }
  func.func @transform_3(%arg0: i32) -> (i32, i32) {
    %c0_i32 = arith.constant 0 : i32
    %c0_i32_0 = arith.constant 0 : i32
    return %arg0, %c0_i32 : i32, i32
  }
  func.func @transform_4(%arg0: i32) -> (i32, i32) {
    %c0_i32 = arith.constant 0 : i32
    %c0_i32_0 = arith.constant 0 : i32
    %c0_i32_1 = arith.constant 0 : i32
    return %c0_i32, %c0_i32_0 : i32, i32
  }
  func.func @transform_5(%arg0: i32) -> (i32, i32) {
    %c0_i32 = arith.constant 0 : i32
    %c0_i32_0 = arith.constant 0 : i32
    %c0_i32_1 = arith.constant 0 : i32
    return %c0_i32, %c0_i32_0 : i32, i32
  }
  func.func @transform_6(%arg0: i32) -> (i32, i32) {
    %c0_i32 = arith.constant 0 : i32
    %c0_i32_0 = arith.constant 0 : i32
    %c0_i32_1 = arith.constant 0 : i32
    return %c0_i32, %c0_i32_0 : i32, i32
  }
  func.func @transform_7(%arg0: i32) -> (i32, i32) {
    %c0_i32 = arith.constant 0 : i32
    %c0_i32_0 = arith.constant 0 : i32
    %c0_i32_1 = arith.constant 0 : i32
    return %c0_i32, %c0_i32_0 : i32, i32
  }
  func.func @transform_8(%arg0: i32) -> (i32, i32) {
    %c0_i32 = arith.constant 0 : i32
    %c0_i32_0 = arith.constant 0 : i32
    return %arg0, %c0_i32 : i32, i32
  }
}

</mosaic_0001>

<bundles_post_ra>
// kernel: tpu_custom_call.1
= control target key start
LH: loop header
LB: loop body
LE: loop exit
PB: predicated region body
PF: predicated region fallthrough
CT: control target
= control target key end

     0   :  { %13 = vsyncpa [#allocation3], 0  ;;  %s8938_s0 = inlined_call_operand.hbm [shape: bf16[8,768], index: 0, kind: input, shape index: {}]   ;;  %s8939_s1 = inlined_call_operand.hbm [shape: bf16[8,768], index: 1, kind: input, shape index: {}]   ;;  %s8940_s2 = inlined_call_operand.hbm [shape: bf16[8,768], index: 2, kind: input, shape index: {}]   ;;  %s8941_s3 = inlined_call_operand.hbm [shape: bf16[8,768], index: 3, kind: input, shape index: {}]   ;;  %s8942_s4 = inlined_call_operand.hbm [shape: bf16[3072,512], index: 4, kind: input, shape index: {}]   ;;  %s8943_s5 = inlined_call_operand.hbm [shape: f32[1,512], index: 5, kind: input, shape index: {}]   ;;  %s8944_s6 = inlined_call_operand.hbm [shape: bf16[512,128], index: 6, kind: input, shape index: {}]   ;;  %s8945_s7 = inlined_call_operand.hbm [shape: f32[1,128], index: 7, kind: input, shape index: {}]   ;;  %s8946_s8 = inlined_call_operand.hbm [shape: f32[8,128], index: 8, kind: output, shape index: {}]  }
   0x1   :  { %14 = vsyncpa [#allocation6], 0 }
   0x2   :  { %15 = vsyncpa [#allocation9], 0 }
   0x3   :  { %16 = vsyncpa [#allocation12], 0 }
   0x4   :  { %17 = vsyncpa [#allocation15], 0 }
   0x5   :  { %18 = vsyncpa [#allocation4], 0  ;;  %s8535_s27 = smov [#allocation5]   ;;  %s8536_s29 = smov [#allocation8]  }
   0x6   :  { %s35_s28 = sshll.u32 %s8535_s27, 4  ;;  %s55_s30 = sshll.u32 %s8536_s29, 4  ;;  %s36_s28 = int_to_ptr.vmem [resolvable:$true] %s35_s28  ;;  %s56_s30 = int_to_ptr.vmem [resolvable:$true] %s55_s30 }
   0x7   :  { %s8325_s11 = scalar_lea.hbm %s8939_s1, 384 }
   0x8   :  { %p8326_p0 = scmp.ne.s32.totalorder %s8939_s1, %s8325_s11  ;;  %p8329_p1 = scmp.lt.u32.totalorder %s8325_s11, %s8939_s1 }
   0xa   :  { %p8331_p2 = pnand %p8329_p1, %p8326_p0 }
   0xc   :  { %8334 = shalt.err (!%p8331_p2)
}
   0xd   :  { %s8335_s16 = scalar_lea.vmem %s36_s28, 384  ;;  %p8340_p4 = scmp.lt.s32.totalorder %s36_s28, %s36_s28 }
   0xe   :  { %p8336_p3 = scmp.ne.s32.totalorder %s36_s28, %s8335_s16  ;;  %p8341_p5 = scmp.lt.s32.totalorder %s8335_s16, %s8335_s16 }
  0x10   :  { %p8342_p6 = por %p8341_p5, %p8340_p4 }
  0x12   :  { %p8343_p7 = pnand %p8342_p6, %p8336_p3 }
  0x14   :  { %8346 = shalt.err (!%p8343_p7)
}
  0x15   :  { %38 = dma.hbm_to_vmem [thread:$0]  %s8939_s1, 384, %s36_s28, [#allocation6]  }
  0x16   :  { %s8347_s21 = scalar_lea.hbm %s8941_s3, 384 }
  0x17   :  { %p8348_p8 = scmp.ne.s32.totalorder %s8941_s3, %s8347_s21  ;;  %p8351_p9 = scmp.lt.u32.totalorder %s8347_s21, %s8941_s3 }
  0x19   :  { %p8353_p10 = pnand %p8351_p9, %p8348_p8 }
  0x1b   :  { %8356 = shalt.err (!%p8353_p10)
}
  0x1c   :  { %s8357_s26 = scalar_lea.vmem %s56_s30, 384  ;;  %p8362_p12 = scmp.lt.s32.totalorder %s56_s30, %s56_s30 }
  0x1d   :  { %p8358_p11 = scmp.ne.s32.totalorder %s56_s30, %s8357_s26  ;;  %p8363_p13 = scmp.lt.s32.totalorder %s8357_s26, %s8357_s26 }
  0x1f   :  { %p8364_p0 = por %p8363_p13, %p8362_p12 }
  0x21   :  { %p8365_p1 = pnand %p8364_p0, %p8358_p11 }
  0x23   :  { %8368 = shalt.err (!%p8365_p1)
}
  0x24   :  { %58 = dma.hbm_to_vmem [thread:$0]  %s8941_s3, 384, %s56_s30, [#allocation9]  }
  0x25   :  { %s8537_s28 = smov [#allocation11]   ;;  %s8538_s9 = smov [#allocation2]  }
  0x26   :  { %s77_s29 = sshll.u32 %s8537_s28, 4  ;;  %s25_s10 = sshll.u32 %s8538_s9, 4  ;;  %s78_s29 = int_to_ptr.vmem [resolvable:$true] %s77_s29  ;;  %s26_s10 = int_to_ptr.vmem [resolvable:$true] %s25_s10 }
  0x27   :  { %s8369_s13 = scalar_lea.hbm %s8943_s5, 64 }
  0x28   :  { %p8370_p2 = scmp.ne.s32.totalorder %s8943_s5, %s8369_s13  ;;  %p8373_p3 = scmp.lt.u32.totalorder %s8369_s13, %s8943_s5 }
  0x2a   :  { %p8375_p4 = pnand %p8373_p3, %p8370_p2 }
  0x2c   :  { %8378 = shalt.err (!%p8375_p4)
}
  0x2d   :  { %s8379_s3 = scalar_lea.vmem %s78_s29, 64  ;;  %p8384_p6 = scmp.lt.s32.totalorder %s78_s29, %s78_s29 }
  0x2e   :  { %p8380_p5 = scmp.ne.s32.totalorder %s78_s29, %s8379_s3  ;;  %p8385_p7 = scmp.lt.s32.totalorder %s8379_s3, %s8379_s3 }
  0x30   :  { %p8386_p8 = por %p8385_p7, %p8384_p6 }
  0x32   :  { %p8387_p9 = pnand %p8386_p8, %p8380_p5 }
  0x34   :  { %8390 = shalt.err (!%p8387_p9)
}
  0x35   :  { %80 = dma.hbm_to_vmem [thread:$0]  %s8943_s5, 64, %s78_s29, [#allocation12]  }
  0x36   :  { %s8391_s21 = scalar_lea.hbm %s8938_s0, 384 }
  0x37   :  { %p8392_p10 = scmp.ne.s32.totalorder %s8938_s0, %s8391_s21  ;;  %p8395_p11 = scmp.lt.u32.totalorder %s8391_s21, %s8938_s0 }
  0x39   :  { %p8397_p12 = pnand %p8395_p11, %p8392_p10 }
  0x3b   :  { %8400 = shalt.err (!%p8397_p12)
}
  0x3c   :  { %s8401_s26 = scalar_lea.vmem %s26_s10, 384  ;;  %p8406_p0 = scmp.lt.s32.totalorder %s26_s10, %s26_s10 }
  0x3d   :  { %p8402_p13 = scmp.ne.s32.totalorder %s26_s10, %s8401_s26  ;;  %p8407_p1 = scmp.lt.s32.totalorder %s8401_s26, %s8401_s26 }
  0x3f   :  { %p8408_p2 = por %p8407_p1, %p8406_p0 }
  0x41   :  { %p8409_p3 = pnand %p8408_p2, %p8402_p13 }
  0x43   :  { %8412 = shalt.err (!%p8409_p3)
}
  0x44   :  { %28 = dma.hbm_to_vmem [thread:$0]  %s8938_s0, 384, %s26_s10, [#allocation3]  }
  0x45   :  { %s8539_s27 = smov [#allocation7]   ;;  %s8540_s29 = smov [#allocation10]  }
  0x46   :  { %s45_s28 = sshll.u32 %s8539_s27, 4  ;;  %s64_s9 = sshll.u32 %s8540_s29, 4  ;;  %s46_s28 = int_to_ptr.vmem [resolvable:$true] %s45_s28  ;;  %s8641_s9 = int_to_ptr.vmem [resolvable:$true] %s64_s9 }
  0x47   :  { %s8413_s13 = scalar_lea.hbm %s8940_s2, 384 }
  0x48   :  { %p8414_p4 = scmp.ne.s32.totalorder %s8940_s2, %s8413_s13  ;;  %p8417_p5 = scmp.lt.u32.totalorder %s8413_s13, %s8940_s2 }
  0x4a   :  { %p8419_p6 = pnand %p8417_p5, %p8414_p4 }
  0x4c   :  { %8422 = shalt.err (!%p8419_p6)
}
  0x4d   :  { %s8423_s0 = scalar_lea.vmem %s46_s28, 384  ;;  %p8428_p8 = scmp.lt.s32.totalorder %s46_s28, %s46_s28 }
  0x4e   :  { %p8424_p7 = scmp.ne.s32.totalorder %s46_s28, %s8423_s0  ;;  %p8429_p9 = scmp.lt.s32.totalorder %s8423_s0, %s8423_s0 }
  0x50   :  { %p8430_p10 = por %p8429_p9, %p8428_p8 }
  0x52   :  { %p8431_p11 = pnand %p8430_p10, %p8424_p7 }
  0x54   :  { %8434 = shalt.err (!%p8431_p11)
}
  0x55   :  { %48 = dma.hbm_to_vmem [thread:$0]  %s8940_s2, 384, %s46_s28, [#allocation6]  }
  0x56   :  { %s8435_s19 = scalar_lea.hbm %s8942_s4, 98304 }
  0x57   :  { %p8436_p12 = scmp.ne.s32.totalorder %s8942_s4, %s8435_s19  ;;  %p8439_p13 = scmp.lt.u32.totalorder %s8435_s19, %s8942_s4 }
  0x59   :  { %p8441_p0 = pnand %p8439_p13, %p8436_p12 }
  0x5b   :  { %8444 = shalt.err (!%p8441_p0)
}
  0x5c   :  { %s8445_s24 = scalar_lea.vmem %s8641_s9, 98304  ;;  %p8450_p2 = scmp.lt.s32.totalorder %s8641_s9, %s8641_s9 }
  0x5d   :  { %p8446_p1 = scmp.ne.s32.totalorder %s8641_s9, %s8445_s24  ;;  %p8451_p3 = scmp.lt.s32.totalorder %s8445_s24, %s8445_s24 }
  0x5f   :  { %p8452_p4 = por %p8451_p3, %p8450_p2 }
  0x61   :  { %p8453_p5 = pnand %p8452_p4, %p8446_p1 }
  0x63   :  { %8456 = shalt.err (!%p8453_p5)
}
  0x64   :  { %s8541_s2 = smov 256   ;;  %s8542_s25 = smov 16  }
  0x65   :  { %70 = dma.hbm_to_vmem [thread:$0]  %s8942_s4, 98304, %s8641_s9, [#allocation9], %s8541_s2, %s8541_s2, %s8542_s25  }
  0x66   :  { %s8543_s1 = smov [#allocation13]   ;;  %s8457_s11 = scalar_lea.hbm %s8944_s6, 4096 }
  0x67   :  { %s86_s27 = sshll.u32 %s8543_s1, 4  ;;  %p8458_p6 = scmp.ne.s32.totalorder %s8944_s6, %s8457_s11  ;;  %s87_s27 = int_to_ptr.vmem [resolvable:$true] %s86_s27 }
  0x68   :  { %p8461_p7 = scmp.lt.u32.totalorder %s8457_s11, %s8944_s6 }
  0x6a   :  { %p8463_p8 = pnand %p8461_p7, %p8458_p6 }
  0x6c   :  { %8466 = shalt.err (!%p8463_p8)
}
  0x6d   :  { %s8467_s16 = scalar_lea.vmem %s87_s27, 4096  ;;  %p8472_p10 = scmp.lt.s32.totalorder %s87_s27, %s87_s27 }
  0x6e   :  { %p8468_p9 = scmp.ne.s32.totalorder %s87_s27, %s8467_s16  ;;  %p8473_p11 = scmp.lt.s32.totalorder %s8467_s16, %s8467_s16 }
  0x70   :  { %p8474_p12 = por %p8473_p11, %p8472_p10 }
  0x72   :  { %p8475_p13 = pnand %p8474_p12, %p8468_p9 }
  0x74   :  { %8478 = shalt.err (!%p8475_p13)
}
  0x75   :  { %s8544_s4 = smov 64   ;;  %s8545_s9 = smov 4  }
  0x76   :  { %92 = dma.hbm_to_vmem [thread:$0]  %s8944_s6, 4096, %s87_s27, [#allocation12], %s8544_s4, %s8544_s4, %s8545_s9  }
  0x77   :  { %s8546_s10 = smov [#allocation14]   ;;  %s8479_s19 = scalar_lea.hbm %s8945_s7, 16 }
  0x78   :  { %s99_s3 = sshll.u32 %s8546_s10, 4  ;;  %p8480_p0 = scmp.ne.s32.totalorder %s8945_s7, %s8479_s19  ;;  %s100_s3 = int_to_ptr.vmem [resolvable:$true] %s99_s3 }
  0x79   :  { %p8483_p1 = scmp.lt.u32.totalorder %s8479_s19, %s8945_s7 }
  0x7b   :  { %p8485_p2 = pnand %p8483_p1, %p8480_p0 }
  0x7d   :  { %8488 = shalt.err (!%p8485_p2)
}
  0x7e   :  { %s8489_s24 = scalar_lea.vmem %s100_s3, 16  ;;  %s8493_s6 = scalar_lea.vmem %s100_s3, 32 }
  0x7f   :  { %p8490_p3 = scmp.ne.s32.totalorder %s100_s3, %s8489_s24  ;;  %p8494_p4 = scmp.lt.s32.totalorder %s100_s3, %s100_s3 }
  0x80   :  { %p8495_p5 = scmp.lt.s32.totalorder %s8493_s6, %s8489_s24 }
  0x82   :  { %p8496_p6 = por %p8495_p5, %p8494_p4 }
  0x84   :  { %p8497_p7 = pnand %p8496_p6, %p8490_p3 }
  0x86   :  { %8500 = shalt.err (!%p8497_p7)
}
  0x87   :  { %102 = dma.hbm_to_vmem [thread:$0]  %s8945_s7, 16, %s100_s3, [#allocation15]  }
  0x88   :  { %8523 = dma.done.wait [#allocation3], 384  }
  0x89   :  { %8524 = vsyncadd [#allocation3], 4294966912 }
  0x8a   :  { %8525 = dma.done.wait [#allocation6], 768  }
  0x8b   :  { %8526 = vsyncadd [#allocation6], 4294966528 }
  0x8c   :  { %8527 = dma.done.wait [#allocation9], 98688  }
  0x8d   :  { %8528 = vsyncadd [#allocation9], 4294868608 }
  0x8e   :  { %8529 = dma.done.wait [#allocation12], 4160  }
  0x8f   :  { %8530 = vsyncadd [#allocation12], 4294963136 }
  0x90   :  { %8531 = dma.done.wait [#allocation15], 16  }
  0x91   :  { %8532 = vsyncadd [#allocation15], 4294967280  ;;  %v7113_v0 = vld [vmem:[#allocation10 + $0x604] ss:$16 sps:$4 sm:$0xff]   ;;  %v7117_v2 = vld [vmem:[#allocation10 + $0x600] ss:$16 sps:$4 sm:$0xff]  }
  0x92   :  { %v7115_v1 = vld [vmem:[#allocation10 + $0x804] ss:$16 sps:$4 sm:$0xff]   ;;  %1499 = vmatprep.subr.bf16.mxu0 %v7113_v0  ;;  %v7118_v3 = vld [vmem:[#allocation10 + $0x800] ss:$16 sps:$4 sm:$0xff]   ;;  %v323_v46 = vld [vmem:[#allocation5] sm:$0xff]  ;;  %s8547_s7 = smov [#allocation16]  }
  0x93   :  { %1540 = vmatprep.subr.bf16.mxu1 %v7115_v1  ;;  %v7119_v4 = vld [vmem:[#allocation10 + $0x624] ss:$16 sps:$4 sm:$0xff]   ;;  %1500 = vmatpush1.bf16.msra.mxu0 %v7117_v2  ;;  %v7123_v6 = vld [vmem:[#allocation10 + $0x620] ss:$16 sps:$4 sm:$0xff]   ;;  %v8696_v47 = vcombine.high %v323_v46, %v323_v46  ;;  %s6218_s26 = sshll.u32 %s8547_s7, 4  ;;  %s6219_s26 = int_to_ptr.vmem [resolvable:$true] %s6218_s26 }
  0x94   :  { %1541 = vmatpush1.bf16.msra.mxu1 %v7118_v3  ;;  %v7121_v5 = vld [vmem:[#allocation10 + $0x824] ss:$16 sps:$4 sm:$0xff]   ;;  %1501 = vmatprep.subr.bf16.mxu0 %v7119_v4  ;;  %v7124_v7 = vld [vmem:[#allocation10 + $0x820] ss:$16 sps:$4 sm:$0xff]   ;;  %s8501_s5 = scalar_lea.vmem %s6219_s26, 128  ;;  %p8506_p9 = scmp.lt.s32.totalorder %s6219_s26, %s6219_s26 }
  0x95   :  { %1542 = vmatprep.subr.bf16.mxu1 %v7121_v5  ;;  %v7125_v8 = vld [vmem:[#allocation10 + $0x644] ss:$16 sps:$4 sm:$0xff]   ;;  %v7129_v10 = vld [vmem:[#allocation10 + $0x640] ss:$16 sps:$4 sm:$0xff]   ;;  %1531 = vmatprep.mubr.bf16.mxu0 %v8696_v47  ;;  %v7218_v5 = vld [vmem:[#allocation10 + $0x60c] ss:$16 sps:$4 sm:$0xff]   ;;  %p8502_p8 = scmp.ne.s32.totalorder %s6219_s26, %s8501_s5  ;;  %p8507_p10 = scmp.lt.s32.totalorder %s8501_s5, %s8501_s5 }
  0x96   :  { %v7127_v9 = vld [vmem:[#allocation10 + $0x844] ss:$16 sps:$4 sm:$0xff]   ;;  %v7130_v11 = vld [vmem:[#allocation10 + $0x840] ss:$16 sps:$4 sm:$0xff]  }
  0x97   :  { %1502 = vmatpush1.bf16.msra.mxu0 %v7123_v6  ;;  %v7131_v12 = vld [vmem:[#allocation10 + $0x664] ss:$16 sps:$4 sm:$0xff]   ;;  %v7135_v14 = vld [vmem:[#allocation10 + $0x660] ss:$16 sps:$4 sm:$0xff]   ;;  %v8702_v6 = vcombine.low %v323_v46, %v323_v46  ;;  %p8508_p11 = por %p8507_p10, %p8506_p9 }
  0x98   :  { %1543 = vmatpush1.bf16.msra.mxu1 %v7124_v7  ;;  %1503 = vmatprep.subr.bf16.mxu0 %v7125_v8  ;;  %v7133_v13 = vld [vmem:[#allocation10 + $0x864] ss:$16 sps:$4 sm:$0xff]   ;;  %v7136_v15 = vld [vmem:[#allocation10 + $0x860] ss:$16 sps:$4 sm:$0xff]  }
  0x99   :  { %1544 = vmatprep.subr.bf16.mxu1 %v7127_v9  ;;  %v7137_v16 = vld [vmem:[#allocation10 + $0x684] ss:$16 sps:$4 sm:$0xff]   ;;  %v7141_v18 = vld [vmem:[#allocation10 + $0x680] ss:$16 sps:$4 sm:$0xff]   ;;  %v7216_v9 = vld [vmem:[#allocation10 + $0x608] ss:$16 sps:$4 sm:$0xff]   ;;  %p8509_p12 = pnand %p8508_p11, %p8502_p8 }
  0x9a   :  { %v7139_v17 = vld [vmem:[#allocation10 + $0x884] ss:$16 sps:$4 sm:$0xff]   ;;  %v7142_v19 = vld [vmem:[#allocation10 + $0x880] ss:$16 sps:$4 sm:$0xff]  }
  0x9b   :  { %1504 = vmatpush1.bf16.msra.mxu0 %v7129_v10  ;;  %v7143_v20 = vld [vmem:[#allocation10 + $0x6a4] ss:$16 sps:$4 sm:$0xff]   ;;  %v7147_v22 = vld [vmem:[#allocation10 + $0x6a0] ss:$16 sps:$4 sm:$0xff]  }
  0x9c   :  { %1545 = vmatpush1.bf16.msra.mxu1 %v7130_v11  ;;  %1505 = vmatprep.subr.bf16.mxu0 %v7131_v12  ;;  %v7145_v21 = vld [vmem:[#allocation10 + $0x8a4] ss:$16 sps:$4 sm:$0xff]   ;;  %v7148_v23 = vld [vmem:[#allocation10 + $0x8a0] ss:$16 sps:$4 sm:$0xff]   ;;  %v7224_v11 = vld [vmem:[#allocation10 + $0x62c] ss:$16 sps:$4 sm:$0xff]  }
  0x9d   :  { %1546 = vmatprep.subr.bf16.mxu1 %v7133_v13  ;;  %v7149_v24 = vld [vmem:[#allocation10 + $0x6c4] ss:$16 sps:$4 sm:$0xff]   ;;  %v7153_v26 = vld [vmem:[#allocation10 + $0x6c0] ss:$16 sps:$4 sm:$0xff]   ;;  %v7222_v13 = vld [vmem:[#allocation10 + $0x628] ss:$16 sps:$4 sm:$0xff]  }
  0x9e   :  { %v7151_v25 = vld [vmem:[#allocation10 + $0x8c4] ss:$16 sps:$4 sm:$0xff]   ;;  %v7154_v27 = vld [vmem:[#allocation10 + $0x8c0] ss:$16 sps:$4 sm:$0xff]  }
  0x9f   :  { %1506 = vmatpush1.bf16.msra.mxu0 %v7135_v14  ;;  %v7155_v28 = vld [vmem:[#allocation10 + $0x6e4] ss:$16 sps:$4 sm:$0xff]   ;;  %v7159_v30 = vld [vmem:[#allocation10 + $0x6e0] ss:$16 sps:$4 sm:$0xff]  }
  0xa0   :  { %1547 = vmatpush1.bf16.msra.mxu1 %v7136_v15  ;;  %1507 = vmatprep.subr.bf16.mxu0 %v7137_v16  ;;  %v7157_v29 = vld [vmem:[#allocation10 + $0x8e4] ss:$16 sps:$4 sm:$0xff]   ;;  %v7160_v31 = vld [vmem:[#allocation10 + $0x8e0] ss:$16 sps:$4 sm:$0xff]   ;;  %v7230_v15 = vld [vmem:[#allocation10 + $0x64c] ss:$16 sps:$4 sm:$0xff]  }
  0xa1   :  { %1548 = vmatprep.subr.bf16.mxu1 %v7139_v17  ;;  %v7161_v32 = vld [vmem:[#allocation10 + $0x704] ss:$16 sps:$4 sm:$0xff]   ;;  %v7165_v34 = vld [vmem:[#allocation10 + $0x700] ss:$16 sps:$4 sm:$0xff]   ;;  %v7228_v17 = vld [vmem:[#allocation10 + $0x648] ss:$16 sps:$4 sm:$0xff]  }
  0xa2   :  { %v7163_v33 = vld [vmem:[#allocation10 + $0x904] ss:$16 sps:$4 sm:$0xff]   ;;  %v7166_v35 = vld [vmem:[#allocation10 + $0x900] ss:$16 sps:$4 sm:$0xff]  }
  0xa3   :  { %1508 = vmatpush1.bf16.msra.mxu0 %v7141_v18  ;;  %v7167_v36 = vld [vmem:[#allocation10 + $0x724] ss:$16 sps:$4 sm:$0xff]   ;;  %v7171_v38 = vld [vmem:[#allocation10 + $0x720] ss:$16 sps:$4 sm:$0xff]  }
  0xa4   :  { %1549 = vmatpush1.bf16.msra.mxu1 %v7142_v19  ;;  %1509 = vmatprep.subr.bf16.mxu0 %v7143_v20  ;;  %v7169_v37 = vld [vmem:[#allocation10 + $0x924] ss:$16 sps:$4 sm:$0xff]   ;;  %v7172_v39 = vld [vmem:[#allocation10 + $0x920] ss:$16 sps:$4 sm:$0xff]   ;;  %v7236_v19 = vld [vmem:[#allocation10 + $0x66c] ss:$16 sps:$4 sm:$0xff]  }
  0xa5   :  { %1550 = vmatprep.subr.bf16.mxu1 %v7145_v21  ;;  %v7173_v40 = vld [vmem:[#allocation10 + $0x744] ss:$16 sps:$4 sm:$0xff]   ;;  %v7177_v42 = vld [vmem:[#allocation10 + $0x740] ss:$16 sps:$4 sm:$0xff]   ;;  %v7234_v21 = vld [vmem:[#allocation10 + $0x668] ss:$16 sps:$4 sm:$0xff]  }
  0xa6   :  { %v7175_v41 = vld [vmem:[#allocation10 + $0x944] ss:$16 sps:$4 sm:$0xff]   ;;  %v7178_v43 = vld [vmem:[#allocation10 + $0x940] ss:$16 sps:$4 sm:$0xff]  }
  0xa7   :  { %1510 = vmatpush1.bf16.msra.mxu0 %v7147_v22  ;;  %v7179_v44 = vld [vmem:[#allocation10 + $0x764] ss:$16 sps:$4 sm:$0xff]   ;;  %v7183_v49 = vld [vmem:[#allocation10 + $0x760] ss:$16 sps:$4 sm:$0xff]  }
  0xa8   :  { %1551 = vmatpush1.bf16.msra.mxu1 %v7148_v23  ;;  %1511 = vmatprep.subr.bf16.mxu0 %v7149_v24  ;;  %v7181_v45 = vld [vmem:[#allocation10 + $0x964] ss:$16 sps:$4 sm:$0xff]   ;;  %v7184_v50 = vld [vmem:[#allocation10 + $0x960] ss:$16 sps:$4 sm:$0xff]   ;;  %v7242_v23 = vld [vmem:[#allocation10 + $0x68c] ss:$16 sps:$4 sm:$0xff]  }
  0xa9   :  { %1552 = vmatprep.subr.bf16.mxu1 %v7151_v25  ;;  %v324_v48 = vld [vmem:[#allocation5 + $0x8] sm:$0xff]  ;;  %v7240_v25 = vld [vmem:[#allocation10 + $0x688] ss:$16 sps:$4 sm:$0xff]  }
  0xaa   :  { %v8698_v51 = vcombine.high %v324_v48, %v324_v48  ;;  %v7185_v52 = vld [vmem:[#allocation10 + $0x784] ss:$16 sps:$4 sm:$0xff]   ;;  %v7189_v54 = vld [vmem:[#allocation10 + $0x780] ss:$16 sps:$4 sm:$0xff]   ;;  %v8704_v7 = vcombine.low %v324_v48, %v324_v48 }
  0xab   :  { %1512 = vmatpush1.bf16.msra.mxu0 %v7153_v26  ;;  %v7187_v53 = vld [vmem:[#allocation10 + $0x984] ss:$16 sps:$4 sm:$0xff]   ;;  %v7190_v55 = vld [vmem:[#allocation10 + $0x980] ss:$16 sps:$4 sm:$0xff]  }
  0xac   :  { %1553 = vmatpush1.bf16.msra.mxu1 %v7154_v27  ;;  %1513 = vmatprep.subr.bf16.mxu0 %v7155_v28  ;;  %v7191_v56 = vld [vmem:[#allocation10 + $0x7a4] ss:$16 sps:$4 sm:$0xff]   ;;  %v7195_v58 = vld [vmem:[#allocation10 + $0x7a0] ss:$16 sps:$4 sm:$0xff]   ;;  %v7248_v27 = vld [vmem:[#allocation10 + $0x6ac] ss:$16 sps:$4 sm:$0xff]  }
  0xad   :  { %1554 = vmatprep.subr.bf16.mxu1 %v7157_v29  ;;  %1572 = vmatprep.mubr.bf16.mxu1 %v8698_v51  ;;  %v7193_v57 = vld [vmem:[#allocation10 + $0x9a4] ss:$16 sps:$4 sm:$0xff]   ;;  %v7196_v59 = vld [vmem:[#allocation10 + $0x9a0] ss:$16 sps:$4 sm:$0xff]   ;;  %v7246_v29 = vld [vmem:[#allocation10 + $0x6a8] ss:$16 sps:$4 sm:$0xff]  }
  0xae   :  { %v7197_v60 = vld [vmem:[#allocation10 + $0x7c4] ss:$16 sps:$4 sm:$0xff]   ;;  %v7201_v62 = vld [vmem:[#allocation10 + $0x7c0] ss:$16 sps:$4 sm:$0xff]  }
  0xaf   :  { %1514 = vmatpush1.bf16.msra.mxu0 %v7159_v30  ;;  %v7199_v61 = vld [vmem:[#allocation10 + $0x9c4] ss:$16 sps:$4 sm:$0xff]   ;;  %v7202_v63 = vld [vmem:[#allocation10 + $0x9c0] ss:$16 sps:$4 sm:$0xff]  }
  0xb0   :  { %1555 = vmatpush1.bf16.msra.mxu1 %v7160_v31  ;;  %1515 = vmatprep.subr.bf16.mxu0 %v7161_v32  ;;  %v7203_v0 = vld [vmem:[#allocation10 + $0x7e4] ss:$16 sps:$4 sm:$0xff]   ;;  %v7207_v2 = vld [vmem:[#allocation10 + $0x7e0] ss:$16 sps:$4 sm:$0xff]   ;;  %v7254_v31 = vld [vmem:[#allocation10 + $0x6cc] ss:$16 sps:$4 sm:$0xff]  }
  0xb1   :  { %1556 = vmatprep.subr.bf16.mxu1 %v7163_v33  ;;  %v7205_v1 = vld [vmem:[#allocation10 + $0x9e4] ss:$16 sps:$4 sm:$0xff]   ;;  %v7208_v3 = vld [vmem:[#allocation10 + $0x9e0] ss:$16 sps:$4 sm:$0xff]   ;;  %v8709_v32 = vld [vmem:[#allocation5 + $0x10] sm:$0xff] }
  0xb2   :  { %v7215_v4 = vld [vmem:[#allocation10 + $0xa04] ss:$16 sps:$4 sm:$0xff]   ;;  %v7213_v8 = vld [vmem:[#allocation10 + $0xa00] ss:$16 sps:$4 sm:$0xff]  }
  0xb3   :  { %1516 = vmatpush1.bf16.msra.mxu0 %v7165_v34  ;;  %v7221_v10 = vld [vmem:[#allocation10 + $0xa24] ss:$16 sps:$4 sm:$0xff]   ;;  %v7219_v12 = vld [vmem:[#allocation10 + $0xa20] ss:$16 sps:$4 sm:$0xff]   ;;  %v8713_v34 = vcombine.high %v8709_v32, %v8709_v32 }
  0xb4   :  { %1557 = vmatpush1.bf16.msra.mxu1 %v7166_v35  ;;  %1517 = vmatprep.subr.bf16.mxu0 %v7167_v36  ;;  %v7227_v14 = vld [vmem:[#allocation10 + $0xa44] ss:$16 sps:$4 sm:$0xff]   ;;  %v7225_v16 = vld [vmem:[#allocation10 + $0xa40] ss:$16 sps:$4 sm:$0xff]   ;;  %v7252_v35 = vld [vmem:[#allocation10 + $0x6c8] ss:$16 sps:$4 sm:$0xff]  }
  0xb5   :  { %1558 = vmatprep.subr.bf16.mxu1 %v7169_v37  ;;  %v7233_v18 = vld [vmem:[#allocation10 + $0xa64] ss:$16 sps:$4 sm:$0xff]   ;;  %v7231_v20 = vld [vmem:[#allocation10 + $0xa60] ss:$16 sps:$4 sm:$0xff]   ;;  %v7260_v37 = vld [vmem:[#allocation10 + $0x6ec] ss:$16 sps:$4 sm:$0xff]  }
  0xb6   :  { %v7239_v22 = vld [vmem:[#allocation10 + $0xa84] ss:$16 sps:$4 sm:$0xff]   ;;  %v7237_v24 = vld [vmem:[#allocation10 + $0xa80] ss:$16 sps:$4 sm:$0xff]  }
  0xb7   :  { %1518 = vmatpush1.bf16.msra.mxu0 %v7171_v38  ;;  %v7245_v26 = vld [vmem:[#allocation10 + $0xaa4] ss:$16 sps:$4 sm:$0xff]   ;;  %v7243_v28 = vld [vmem:[#allocation10 + $0xaa0] ss:$16 sps:$4 sm:$0xff]  }
  0xb8   :  { %1559 = vmatpush1.bf16.msra.mxu1 %v7172_v39  ;;  %1519 = vmatprep.subr.bf16.mxu0 %v7173_v40  ;;  %v7251_v30 = vld [vmem:[#allocation10 + $0xac4] ss:$16 sps:$4 sm:$0xff]   ;;  %v7249_v33 = vld [vmem:[#allocation10 + $0xac0] ss:$16 sps:$4 sm:$0xff]   ;;  %v7258_v39 = vld [vmem:[#allocation10 + $0x6e8] ss:$16 sps:$4 sm:$0xff]  }
  0xb9   :  { %1560 = vmatprep.subr.bf16.mxu1 %v7175_v41  ;;  %v7257_v36 = vld [vmem:[#allocation10 + $0xae4] ss:$16 sps:$4 sm:$0xff]   ;;  %v7255_v38 = vld [vmem:[#allocation10 + $0xae0] ss:$16 sps:$4 sm:$0xff]   ;;  %v7266_v41 = vld [vmem:[#allocation10 + $0x70c] ss:$16 sps:$4 sm:$0xff]  }
  0xba   :  { %v7263_v40 = vld [vmem:[#allocation10 + $0xb04] ss:$16 sps:$4 sm:$0xff]   ;;  %v7267_v46 = vld [vmem:[#allocation10 + $0xb20] ss:$16 sps:$4 sm:$0xff]  }
  0xbb   :  { %1520 = vmatpush1.bf16.msra.mxu0 %v7177_v42  ;;  %v7261_v42 = vld [vmem:[#allocation10 + $0xb00] ss:$16 sps:$4 sm:$0xff]   ;;  %v7275_v48 = vld [vmem:[#allocation10 + $0xb44] ss:$16 sps:$4 sm:$0xff]  }
  0xbc   :  { %1561 = vmatpush1.bf16.msra.mxu1 %v7178_v43  ;;  %1521 = vmatprep.subr.bf16.mxu0 %v7179_v44  ;;  %v7264_v43 = vld [vmem:[#allocation10 + $0x708] ss:$16 sps:$4 sm:$0xff]   ;;  %v7269_v44 = vld [vmem:[#allocation10 + $0xb24] ss:$16 sps:$4 sm:$0xff]  }
  0xbd   :  { %1562 = vmatprep.subr.bf16.mxu1 %v7181_v45  ;;  %v7272_v45 = vld [vmem:[#allocation10 + $0x72c] ss:$16 sps:$4 sm:$0xff]  }
  0xbf   :  { %1522 = vmatpush1.bf16.msra.mxu0 %v7183_v49  ;;  %v7278_v49 = vld [vmem:[#allocation10 + $0x74c] ss:$16 sps:$4 sm:$0xff]  }
  0xc0   :  { %1563 = vmatpush1.bf16.msra.mxu1 %v7184_v50  ;;  %1523 = vmatprep.subr.bf16.mxu0 %v7185_v52  ;;  %v7273_v50 = vld [vmem:[#allocation10 + $0xb40] ss:$16 sps:$4 sm:$0xff]   ;;  %v7276_v52 = vld [vmem:[#allocation10 + $0x748] ss:$16 sps:$4 sm:$0xff]  }
  0xc1   :  { %1564 = vmatprep.subr.bf16.mxu1 %v7187_v53  ;;  %v7281_v53 = vld [vmem:[#allocation10 + $0xb64] ss:$16 sps:$4 sm:$0xff]  }
  0xc3   :  { %1524 = vmatpush1.bf16.msra.mxu0 %v7189_v54  ;;  %v7284_v54 = vld [vmem:[#allocation10 + $0x76c] ss:$16 sps:$4 sm:$0xff]  }
  0xc4   :  { %1565 = vmatpush1.bf16.msra.mxu1 %v7190_v55  ;;  %1525 = vmatprep.subr.bf16.mxu0 %v7191_v56  ;;  %v7279_v55 = vld [vmem:[#allocation10 + $0xb60] ss:$16 sps:$4 sm:$0xff]   ;;  %v7282_v56 = vld [vmem:[#allocation10 + $0x768] ss:$16 sps:$4 sm:$0xff]  }
  0xc5   :  { %1566 = vmatprep.subr.bf16.mxu1 %v7193_v57  ;;  %v7287_v57 = vld [vmem:[#allocation10 + $0xb84] ss:$16 sps:$4 sm:$0xff]  }
  0xc7   :  { %1526 = vmatpush1.bf16.msra.mxu0 %v7195_v58  ;;  %v7290_v58 = vld [vmem:[#allocation10 + $0x78c] ss:$16 sps:$4 sm:$0xff]  }
  0xc8   :  { %1567 = vmatpush1.bf16.msra.mxu1 %v7196_v59  ;;  %1527 = vmatprep.subr.bf16.mxu0 %v7197_v60  ;;  %v7285_v59 = vld [vmem:[#allocation10 + $0xb80] ss:$16 sps:$4 sm:$0xff]   ;;  %v7288_v60 = vld [vmem:[#allocation10 + $0x788] ss:$16 sps:$4 sm:$0xff]  }
  0xc9   :  { %1568 = vmatprep.subr.bf16.mxu1 %v7199_v61  ;;  %v7293_v61 = vld [vmem:[#allocation10 + $0xba4] ss:$16 sps:$4 sm:$0xff]  }
  0xcb   :  { %1528 = vmatpush1.bf16.msra.mxu0 %v7201_v62  ;;  %v7296_v62 = vld [vmem:[#allocation10 + $0x7ac] ss:$16 sps:$4 sm:$0xff]  }
  0xcc   :  { %1569 = vmatpush1.bf16.msra.mxu1 %v7202_v63  ;;  %1529 = vmatprep.subr.bf16.mxu0 %v7203_v0  ;;  %v7291_v63 = vld [vmem:[#allocation10 + $0xba0] ss:$16 sps:$4 sm:$0xff]   ;;  %v7294_v0 = vld [vmem:[#allocation10 + $0x7a8] ss:$16 sps:$4 sm:$0xff]  }
  0xcd   :  { %1570 = vmatprep.subr.bf16.mxu1 %v7205_v1  ;;  %v7299_v1 = vld [vmem:[#allocation10 + $0xbc4] ss:$16 sps:$4 sm:$0xff]  }
  0xcf   :  { %1530 = vmatpush1.bf16.msra.mxu0 %v7207_v2  ;;  %v7302_v2 = vld [vmem:[#allocation10 + $0x7cc] ss:$16 sps:$4 sm:$0xff]  }
  0xd0   :  { %1571 = vmatpush1.bf16.msra.mxu1 %v7208_v3  ;;  %1581 = vmatprep.subr.bf16.mxu0 %v7215_v4  ;;  %v7297_v3 = vld [vmem:[#allocation10 + $0xbc0] ss:$16 sps:$4 sm:$0xff]   ;;  %v7300_v4 = vld [vmem:[#allocation10 + $0x7c8] ss:$16 sps:$4 sm:$0xff]  }
  0xd1   :  { %1622 = vmatprep.subr.bf16.mxu1 %v7218_v5  ;;  %v7305_v5 = vld [vmem:[#allocation10 + $0xbe4] ss:$16 sps:$4 sm:$0xff]  }
  0xd2   :  { %1532 = vmatmul.mubr.bf16.vlgmr.msra.gmra.mrb[0].mxu0 %v8702_v6 }
  0xd3   :  { %1573 = vmatmul.mubr.bf16.vlgmr.msra.gmra.mrb[0].mxu1 %v8704_v7  ;;  %1582 = vmatpush1.bf16.msra.mxu0 %v7213_v8  ;;  %v7308_v8 = vld [vmem:[#allocation10 + $0x7ec] ss:$16 sps:$4 sm:$0xff]  }
  0xd4   :  { %1623 = vmatpush1.bf16.msra.mxu1 %v7216_v9  ;;  %1583 = vmatprep.subr.bf16.mxu0 %v7221_v10  ;;  %v7303_v9 = vld [vmem:[#allocation10 + $0xbe0] ss:$16 sps:$4 sm:$0xff]   ;;  %v7306_v10 = vld [vmem:[#allocation10 + $0x7e8] ss:$16 sps:$4 sm:$0xff]  }
  0xd5   :  { %1624 = vmatprep.subr.bf16.mxu1 %v7224_v11  ;;  %1654 = vmatprep.mubr.bf16.mxu1 %v8696_v47  ;;  %v7270_v47 = vld [vmem:[#allocation10 + $0x728] ss:$16 sps:$4 sm:$0xff]   ;;  %v7313_v11 = vld [vmem:[#allocation10 + $0x80c] ss:$16 sps:$4 sm:$0xff]  }
  0xd6   :  { %1613 = vmatprep.mubr.bf16.mxu0 %v8713_v34 }
  0xd7   :  { %1584 = vmatpush1.bf16.msra.mxu0 %v7219_v12  ;;  %v7316_v12 = vld [vmem:[#allocation10 + $0xa0c] ss:$16 sps:$4 sm:$0xff]  }
  0xd8   :  { %1625 = vmatpush1.bf16.msra.mxu1 %v7222_v13  ;;  %1585 = vmatprep.subr.bf16.mxu0 %v7227_v14  ;;  %v8718_v13 = vcombine.low %v8709_v32, %v8709_v32  ;;  %v7311_v14 = vld [vmem:[#allocation10 + $0x808] ss:$16 sps:$4 sm:$0xff]  }
  0xd9   :  { %1626 = vmatprep.subr.bf16.mxu1 %v7230_v15  ;;  %v7314_v15 = vld [vmem:[#allocation10 + $0xa08] ss:$16 sps:$4 sm:$0xff]  }
  0xda   :  { %v7341_v32 = vld [vmem:[#allocation10 + $0x8a8] ss:$16 sps:$4 sm:$0xff]  }
  0xdb   :  { %1586 = vmatpush1.bf16.msra.mxu0 %v7225_v16  ;;  %v7319_v16 = vld [vmem:[#allocation10 + $0x82c] ss:$16 sps:$4 sm:$0xff]  }
  0xdc   :  { %1627 = vmatpush1.bf16.msra.mxu1 %v7228_v17  ;;  %1587 = vmatprep.subr.bf16.mxu0 %v7233_v18  ;;  %v7322_v17 = vld [vmem:[#allocation10 + $0xa2c] ss:$16 sps:$4 sm:$0xff]   ;;  %v7317_v18 = vld [vmem:[#allocation10 + $0x828] ss:$16 sps:$4 sm:$0xff]  }
  0xdd   :  { %1628 = vmatprep.subr.bf16.mxu1 %v7236_v19  ;;  %v7320_v19 = vld [vmem:[#allocation10 + $0xa28] ss:$16 sps:$4 sm:$0xff]  }
  0xdf   :  { %1588 = vmatpush1.bf16.msra.mxu0 %v7231_v20  ;;  %v7325_v20 = vld [vmem:[#allocation10 + $0x84c] ss:$16 sps:$4 sm:$0xff]  }
  0xe0   :  { %1629 = vmatpush1.bf16.msra.mxu1 %v7234_v21  ;;  %1589 = vmatprep.subr.bf16.mxu0 %v7239_v22  ;;  %v7328_v21 = vld [vmem:[#allocation10 + $0xa4c] ss:$16 sps:$4 sm:$0xff]   ;;  %v7323_v22 = vld [vmem:[#allocation10 + $0x848] ss:$16 sps:$4 sm:$0xff]  }
  0xe1   :  { %1630 = vmatprep.subr.bf16.mxu1 %v7242_v23  ;;  %v7326_v23 = vld [vmem:[#allocation10 + $0xa48] ss:$16 sps:$4 sm:$0xff]  }
  0xe3   :  { %1590 = vmatpush1.bf16.msra.mxu0 %v7237_v24  ;;  %v7331_v24 = vld [vmem:[#allocation10 + $0x86c] ss:$16 sps:$4 sm:$0xff]  }
  0xe4   :  { %1631 = vmatpush1.bf16.msra.mxu1 %v7240_v25  ;;  %1591 = vmatprep.subr.bf16.mxu0 %v7245_v26  ;;  %v7329_v25 = vld [vmem:[#allocation10 + $0x868] ss:$16 sps:$4 sm:$0xff]  }
  0xe5   :  { %1632 = vmatprep.subr.bf16.mxu1 %v7248_v27  ;;  %v7332_v26 = vld [vmem:[#allocation10 + $0xa68] ss:$16 sps:$4 sm:$0xff]   ;;  %v7337_v27 = vld [vmem:[#allocation10 + $0x88c] ss:$16 sps:$4 sm:$0xff]  }
  0xe7   :  { %1592 = vmatpush1.bf16.msra.mxu0 %v7243_v28  ;;  %v7340_v28 = vld [vmem:[#allocation10 + $0xa8c] ss:$16 sps:$4 sm:$0xff]  }
  0xe8   :  { %1633 = vmatpush1.bf16.msra.mxu1 %v7246_v29  ;;  %1593 = vmatprep.subr.bf16.mxu0 %v7251_v30  ;;  %v7335_v29 = vld [vmem:[#allocation10 + $0x888] ss:$16 sps:$4 sm:$0xff]   ;;  %v7343_v30 = vld [vmem:[#allocation10 + $0x8ac] ss:$16 sps:$4 sm:$0xff]  }
  0xe9   :  { %1634 = vmatprep.subr.bf16.mxu1 %v7254_v31  ;;  %v7346_v31 = vld [vmem:[#allocation10 + $0xaac] ss:$16 sps:$4 sm:$0xff]  }
  0xeb   :  { %1594 = vmatpush1.bf16.msra.mxu0 %v7249_v33  ;;  %v7344_v33 = vld [vmem:[#allocation10 + $0xaa8] ss:$16 sps:$4 sm:$0xff]  }
  0xec   :  { %1635 = vmatpush1.bf16.msra.mxu1 %v7252_v35  ;;  %1595 = vmatprep.subr.bf16.mxu0 %v7257_v36  ;;  %v7352_v35 = vld [vmem:[#allocation10 + $0xacc] ss:$16 sps:$4 sm:$0xff]   ;;  %v7347_v36 = vld [vmem:[#allocation10 + $0x8c8] ss:$16 sps:$4 sm:$0xff]  }
  0xed   :  { %1636 = vmatprep.subr.bf16.mxu1 %v7260_v37  ;;  %v7350_v37 = vld [vmem:[#allocation10 + $0xac8] ss:$16 sps:$4 sm:$0xff]  }
  0xef   :  { %1596 = vmatpush1.bf16.msra.mxu0 %v7255_v38  ;;  %v7355_v38 = vld [vmem:[#allocation10 + $0x8ec] ss:$16 sps:$4 sm:$0xff]  }
  0xf0   :  { %1637 = vmatpush1.bf16.msra.mxu1 %v7258_v39  ;;  %1597 = vmatprep.subr.bf16.mxu0 %v7263_v40  ;;  %v7358_v39 = vld [vmem:[#allocation10 + $0xaec] ss:$16 sps:$4 sm:$0xff]   ;;  %v7353_v40 = vld [vmem:[#allocation10 + $0x8e8] ss:$16 sps:$4 sm:$0xff]  }
  0xf1   :  { %1638 = vmatprep.subr.bf16.mxu1 %v7266_v41  ;;  %v7356_v41 = vld [vmem:[#allocation10 + $0xae8] ss:$16 sps:$4 sm:$0xff]  }
  0xf3   :  { %1598 = vmatpush1.bf16.msra.mxu0 %v7261_v42  ;;  %v7361_v42 = vld [vmem:[#allocation10 + $0x90c] ss:$16 sps:$4 sm:$0xff]  }
  0xf4   :  { %1639 = vmatpush1.bf16.msra.mxu1 %v7264_v43  ;;  %1599 = vmatprep.subr.bf16.mxu0 %v7269_v44  ;;  %v7364_v43 = vld [vmem:[#allocation10 + $0xb0c] ss:$16 sps:$4 sm:$0xff]   ;;  %v7359_v44 = vld [vmem:[#allocation10 + $0x908] ss:$16 sps:$4 sm:$0xff]  }
  0xf5   :  { %1640 = vmatprep.subr.bf16.mxu1 %v7272_v45  ;;  %v7362_v45 = vld [vmem:[#allocation10 + $0xb08] ss:$16 sps:$4 sm:$0xff]  }
  0xf7   :  { %1600 = vmatpush1.bf16.msra.mxu0 %v7267_v46  ;;  %v7367_v46 = vld [vmem:[#allocation10 + $0x92c] ss:$16 sps:$4 sm:$0xff]  }
  0xf8   :  { %1641 = vmatpush1.bf16.msra.mxu1 %v7270_v47  ;;  %1601 = vmatprep.subr.bf16.mxu0 %v7275_v48  ;;  %v7370_v47 = vld [vmem:[#allocation10 + $0xb2c] ss:$16 sps:$4 sm:$0xff]   ;;  %v7365_v48 = vld [vmem:[#allocation10 + $0x928] ss:$16 sps:$4 sm:$0xff]  }
  0xf9   :  { %1642 = vmatprep.subr.bf16.mxu1 %v7278_v49  ;;  %v7368_v49 = vld [vmem:[#allocation10 + $0xb28] ss:$16 sps:$4 sm:$0xff]  }
  0xfb   :  { %1602 = vmatpush1.bf16.msra.mxu0 %v7273_v50  ;;  %v7373_v50 = vld [vmem:[#allocation10 + $0x94c] ss:$16 sps:$4 sm:$0xff]  }
  0xfc   :  { %1643 = vmatpush1.bf16.msra.mxu1 %v7276_v52  ;;  %1603 = vmatprep.subr.bf16.mxu0 %v7281_v53  ;;  %v7376_v52 = vld [vmem:[#allocation10 + $0xb4c] ss:$16 sps:$4 sm:$0xff]   ;;  %v7371_v53 = vld [vmem:[#allocation10 + $0x948] ss:$16 sps:$4 sm:$0xff]  }
  0xfd   :  { %1644 = vmatprep.subr.bf16.mxu1 %v7284_v54  ;;  %v7374_v54 = vld [vmem:[#allocation10 + $0xb48] ss:$16 sps:$4 sm:$0xff]  }
  0xff   :  { %1604 = vmatpush1.bf16.msra.mxu0 %v7279_v55  ;;  %v7379_v55 = vld [vmem:[#allocation10 + $0x96c] ss:$16 sps:$4 sm:$0xff]  }
 0x100   :  { %1645 = vmatpush1.bf16.msra.mxu1 %v7282_v56  ;;  %1605 = vmatprep.subr.bf16.mxu0 %v7287_v57  ;;  %v7382_v56 = vld [vmem:[#allocation10 + $0xb6c] ss:$16 sps:$4 sm:$0xff]   ;;  %v7377_v57 = vld [vmem:[#allocation10 + $0x968] ss:$16 sps:$4 sm:$0xff]  }
 0x101   :  { %1646 = vmatprep.subr.bf16.mxu1 %v7290_v58  ;;  %v7380_v58 = vld [vmem:[#allocation10 + $0xb68] ss:$16 sps:$4 sm:$0xff]  }
 0x103   :  { %1606 = vmatpush1.bf16.msra.mxu0 %v7285_v59  ;;  %v7385_v59 = vld [vmem:[#allocation10 + $0x98c] ss:$16 sps:$4 sm:$0xff]  }
 0x104   :  { %1647 = vmatpush1.bf16.msra.mxu1 %v7288_v60  ;;  %1607 = vmatprep.subr.bf16.mxu0 %v7293_v61  ;;  %v7388_v60 = vld [vmem:[#allocation10 + $0xb8c] ss:$16 sps:$4 sm:$0xff]   ;;  %v7383_v61 = vld [vmem:[#allocation10 + $0x988] ss:$16 sps:$4 sm:$0xff]  }
 0x105   :  { %1648 = vmatprep.subr.bf16.mxu1 %v7296_v62  ;;  %v7386_v62 = vld [vmem:[#allocation10 + $0xb88] ss:$16 sps:$4 sm:$0xff]  }
 0x107   :  { %1608 = vmatpush1.bf16.msra.mxu0 %v7291_v63  ;;  %v7391_v63 = vld [vmem:[#allocation10 + $0x9ac] ss:$16 sps:$4 sm:$0xff]  }
 0x108   :  { %1649 = vmatpush1.bf16.msra.mxu1 %v7294_v0  ;;  %1609 = vmatprep.subr.bf16.mxu0 %v7299_v1  ;;  %v7394_v0 = vld [vmem:[#allocation10 + $0xbac] ss:$16 sps:$4 sm:$0xff]   ;;  %v7389_v1 = vld [vmem:[#allocation10 + $0x9a8] ss:$16 sps:$4 sm:$0xff]  }
 0x109   :  { %1650 = vmatprep.subr.bf16.mxu1 %v7302_v2  ;;  %v7392_v2 = vld [vmem:[#allocation10 + $0xba8] ss:$16 sps:$4 sm:$0xff]  }
 0x10b   :  { %1610 = vmatpush1.bf16.msra.mxu0 %v7297_v3  ;;  %v7397_v3 = vld [vmem:[#allocation10 + $0x9cc] ss:$16 sps:$4 sm:$0xff]  }
 0x10c   :  { %1651 = vmatpush1.bf16.msra.mxu1 %v7300_v4  ;;  %1611 = vmatprep.subr.bf16.mxu0 %v7305_v5  ;;  %v7400_v4 = vld [vmem:[#allocation10 + $0xbcc] ss:$16 sps:$4 sm:$0xff]   ;;  %v7395_v5 = vld [vmem:[#allocation10 + $0x9c8] ss:$16 sps:$4 sm:$0xff]  }
 0x10d   :  { %1652 = vmatprep.subr.bf16.mxu1 %v7308_v8  ;;  %v7398_v8 = vld [vmem:[#allocation10 + $0xbc8] ss:$16 sps:$4 sm:$0xff]  }
 0x10f   :  { %1612 = vmatpush1.bf16.msra.mxu0 %v7303_v9  ;;  %v7403_v9 = vld [vmem:[#allocation10 + $0x9ec] ss:$16 sps:$4 sm:$0xff]  }
 0x110   :  { %1653 = vmatpush1.bf16.msra.mxu1 %v7306_v10  ;;  %1663 = vmatprep.subr.bf16.mxu0 %v7313_v11  ;;  %v7406_v10 = vld [vmem:[#allocation10 + $0xbec] ss:$16 sps:$4 sm:$0xff]   ;;  %v7401_v11 = vld [vmem:[#allocation10 + $0x9e8] ss:$16 sps:$4 sm:$0xff]  }
 0x111   :  { %1704 = vmatprep.subr.bf16.mxu1 %v7316_v12  ;;  %v7404_v12 = vld [vmem:[#allocation10 + $0xbe8] ss:$16 sps:$4 sm:$0xff]  }
 0x112   :  { %1614 = vmatmul.mubr.bf16.vlgmr.msra.gmra.mrb[4].mxu0 %v8718_v13 }
 0x113   :  { %1655 = vmatmul.mubr.bf16.vlgmr.msra.gmra.mrb[4].mxu1 %v8702_v6  ;;  %1664 = vmatpush1.bf16.msra.mxu0 %v7311_v14  ;;  %v7334_v6 = vld [vmem:[#allocation10 + $0xa6c] ss:$16 sps:$4 sm:$0xff]   ;;  %v7409_v14 = vld [vmem:[#allocation10 + $0x4] ss:$16 sps:$4 sm:$0xff]  }
 0x114   :  { %1705 = vmatpush1.bf16.msra.mxu1 %v7314_v15  ;;  %1665 = vmatprep.subr.bf16.mxu0 %v7319_v16  ;;  %v7412_v15 = vld [vmem:[#allocation10 + $0x204] ss:$16 sps:$4 sm:$0xff]   ;;  %v7407_v16 = vld [vmem:[#allocation10] ss:$16 sps:$4 sm:$0xff]  }
 0x115   :  { %1706 = vmatprep.subr.bf16.mxu1 %v7322_v17  ;;  %1695 = vmatprep.mubr.bf16.mxu0 %v8698_v51  ;;  %v7338_v51 = vld [vmem:[#allocation10 + $0xa88] ss:$16 sps:$4 sm:$0xff]   ;;  %v8724_v17 = vld [vmem:[#allocation2] sm:$0xff] }
 0x116   :  { %1736 = vmatprep.mubr.bf16.mxu1 %v8713_v34  ;;  %v7349_v34 = vld [vmem:[#allocation10 + $0x8cc] ss:$16 sps:$4 sm:$0xff]  }
 0x117   :  { %1666 = vmatpush1.bf16.msra.mxu0 %v7317_v18  ;;  %v8726_v18 = vld [vmem:[#allocation2 + $0x8] sm:$0xff] }
 0x118   :  { %1707 = vmatpush1.bf16.msra.mxu1 %v7320_v19  ;;  %1667 = vmatprep.subr.bf16.mxu0 %v7325_v20  ;;  %v7410_v19 = vld [vmem:[#allocation10 + $0x200] ss:$16 sps:$4 sm:$0xff]   ;;  %v7415_v20 = vld [vmem:[#allocation10 + $0x24] ss:$16 sps:$4 sm:$0xff]  }
 0x119   :  { %1708 = vmatprep.subr.bf16.mxu1 %v7328_v21  ;;  %v7418_v21 = vld [vmem:[#allocation10 + $0x224] ss:$16 sps:$4 sm:$0xff]  }
 0x11b   :  { %1668 = vmatpush1.bf16.msra.mxu0 %v7323_v22  ;;  %v8730_v22 = vcombine.high %v8724_v17, %v8724_v17 }
 0x11c   :  { %1709 = vmatpush1.bf16.msra.mxu1 %v7326_v23  ;;  %1669 = vmatprep.subr.bf16.mxu0 %v7331_v24  ;;  %v8734_v23 = vcombine.high %v8726_v18, %v8726_v18  ;;  %v7413_v24 = vld [vmem:[#allocation10 + $0x20] ss:$16 sps:$4 sm:$0xff]  }
 0x11d   :  { %1710 = vmatprep.subr.bf16.mxu1 %v7334_v6  ;;  %v7416_v6 = vld [vmem:[#allocation10 + $0x220] ss:$16 sps:$4 sm:$0xff]  }
 0x11f   :  { %1670 = vmatpush1.bf16.msra.mxu0 %v7329_v25  ;;  %v7421_v25 = vld [vmem:[#allocation10 + $0x44] ss:$16 sps:$4 sm:$0xff]  }
 0x120   :  { %1711 = vmatpush1.bf16.msra.mxu1 %v7332_v26  ;;  %1671 = vmatprep.subr.bf16.mxu0 %v7337_v27  ;;  %v7424_v26 = vld [vmem:[#allocation10 + $0x244] ss:$16 sps:$4 sm:$0xff]   ;;  %v7419_v27 = vld [vmem:[#allocation10 + $0x40] ss:$16 sps:$4 sm:$0xff]  }
 0x121   :  { %1712 = vmatprep.subr.bf16.mxu1 %v7340_v28  ;;  %v7422_v28 = vld [vmem:[#allocation10 + $0x240] ss:$16 sps:$4 sm:$0xff]  }
 0x123   :  { %1672 = vmatpush1.bf16.msra.mxu0 %v7335_v29  ;;  %v7425_v29 = vld [vmem:[#allocation10 + $0x60] ss:$16 sps:$4 sm:$0xff]  }
 0x124   :  { %1713 = vmatpush1.bf16.msra.mxu1 %v7338_v51  ;;  %1673 = vmatprep.subr.bf16.mxu0 %v7343_v30  ;;  %v7428_v51 = vld [vmem:[#allocation10 + $0x260] ss:$16 sps:$4 sm:$0xff]   ;;  %v7433_v30 = vld [vmem:[#allocation10 + $0x84] ss:$16 sps:$4 sm:$0xff]  }
 0x125   :  { %1714 = vmatprep.subr.bf16.mxu1 %v7346_v31  ;;  %v7436_v31 = vld [vmem:[#allocation10 + $0x284] ss:$16 sps:$4 sm:$0xff]  }
 0x127   :  { %1674 = vmatpush1.bf16.msra.mxu0 %v7341_v32  ;;  %v7431_v32 = vld [vmem:[#allocation10 + $0x80] ss:$16 sps:$4 sm:$0xff]  }
 0x128   :  { %1715 = vmatpush1.bf16.msra.mxu1 %v7344_v33  ;;  %1675 = vmatprep.subr.bf16.mxu0 %v7349_v34  ;;  %v7434_v33 = vld [vmem:[#allocation10 + $0x280] ss:$16 sps:$4 sm:$0xff]   ;;  %v7439_v34 = vld [vmem:[#allocation10 + $0xa4] ss:$16 sps:$4 sm:$0xff]  }
 0x129   :  { %1716 = vmatprep.subr.bf16.mxu1 %v7352_v35  ;;  %v7442_v35 = vld [vmem:[#allocation10 + $0x2a4] ss:$16 sps:$4 sm:$0xff]  }
 0x12b   :  { %1676 = vmatpush1.bf16.msra.mxu0 %v7347_v36  ;;  %v7437_v36 = vld [vmem:[#allocation10 + $0xa0] ss:$16 sps:$4 sm:$0xff]  }
 0x12c   :  { %1717 = vmatpush1.bf16.msra.mxu1 %v7350_v37  ;;  %1677 = vmatprep.subr.bf16.mxu0 %v7355_v38  ;;  %v7440_v37 = vld [vmem:[#allocation10 + $0x2a0] ss:$16 sps:$4 sm:$0xff]   ;;  %v7445_v38 = vld [vmem:[#allocation10 + $0xc4] ss:$16 sps:$4 sm:$0xff]  }
 0x12d   :  { %1718 = vmatprep.subr.bf16.mxu1 %v7358_v39  ;;  %v7448_v39 = vld [vmem:[#allocation10 + $0x2c4] ss:$16 sps:$4 sm:$0xff]  }
 0x12f   :  { %1678 = vmatpush1.bf16.msra.mxu0 %v7353_v40  ;;  %v7443_v40 = vld [vmem:[#allocation10 + $0xc0] ss:$16 sps:$4 sm:$0xff]  }
 0x130   :  { %1719 = vmatpush1.bf16.msra.mxu1 %v7356_v41  ;;  %1679 = vmatprep.subr.bf16.mxu0 %v7361_v42  ;;  %v7446_v41 = vld [vmem:[#allocation10 + $0x2c0] ss:$16 sps:$4 sm:$0xff]   ;;  %v7451_v42 = vld [vmem:[#allocation10 + $0xe4] ss:$16 sps:$4 sm:$0xff]  }
 0x131   :  { %1720 = vmatprep.subr.bf16.mxu1 %v7364_v43  ;;  %v7454_v43 = vld [vmem:[#allocation10 + $0x2e4] ss:$16 sps:$4 sm:$0xff]  }
 0x133   :  { %1680 = vmatpush1.bf16.msra.mxu0 %v7359_v44  ;;  %v7449_v44 = vld [vmem:[#allocation10 + $0xe0] ss:$16 sps:$4 sm:$0xff]  }
 0x134   :  { %1721 = vmatpush1.bf16.msra.mxu1 %v7362_v45  ;;  %1681 = vmatprep.subr.bf16.mxu0 %v7367_v46  ;;  %v7452_v45 = vld [vmem:[#allocation10 + $0x2e0] ss:$16 sps:$4 sm:$0xff]   ;;  %v7457_v46 = vld [vmem:[#allocation10 + $0x104] ss:$16 sps:$4 sm:$0xff]  }
 0x135   :  { %1722 = vmatprep.subr.bf16.mxu1 %v7370_v47  ;;  %v7460_v47 = vld [vmem:[#allocation10 + $0x304] ss:$16 sps:$4 sm:$0xff]  }
 0x137   :  { %1682 = vmatpush1.bf16.msra.mxu0 %v7365_v48  ;;  %v7455_v48 = vld [vmem:[#allocation10 + $0x100] ss:$16 sps:$4 sm:$0xff]  }
 0x138   :  { %1723 = vmatpush1.bf16.msra.mxu1 %v7368_v49  ;;  %1683 = vmatprep.subr.bf16.mxu0 %v7373_v50  ;;  %v7458_v49 = vld [vmem:[#allocation10 + $0x300] ss:$16 sps:$4 sm:$0xff]   ;;  %v7463_v50 = vld [vmem:[#allocation10 + $0x124] ss:$16 sps:$4 sm:$0xff]  }
 0x139   :  { %1724 = vmatprep.subr.bf16.mxu1 %v7376_v52  ;;  %v7466_v52 = vld [vmem:[#allocation10 + $0x324] ss:$16 sps:$4 sm:$0xff]  }
 0x13b   :  { %1684 = vmatpush1.bf16.msra.mxu0 %v7371_v53  ;;  %v7461_v53 = vld [vmem:[#allocation10 + $0x120] ss:$16 sps:$4 sm:$0xff]  }
 0x13c   :  { %1725 = vmatpush1.bf16.msra.mxu1 %v7374_v54  ;;  %1685 = vmatprep.subr.bf16.mxu0 %v7379_v55  ;;  %v7464_v54 = vld [vmem:[#allocation10 + $0x320] ss:$16 sps:$4 sm:$0xff]   ;;  %v7469_v55 = vld [vmem:[#allocation10 + $0x144] ss:$16 sps:$4 sm:$0xff]  }
 0x13d   :  { %1726 = vmatprep.subr.bf16.mxu1 %v7382_v56  ;;  %v7472_v56 = vld [vmem:[#allocation10 + $0x344] ss:$16 sps:$4 sm:$0xff]  }
 0x13f   :  { %1686 = vmatpush1.bf16.msra.mxu0 %v7377_v57  ;;  %v7467_v57 = vld [vmem:[#allocation10 + $0x140] ss:$16 sps:$4 sm:$0xff]  }
 0x140   :  { %1727 = vmatpush1.bf16.msra.mxu1 %v7380_v58  ;;  %1687 = vmatprep.subr.bf16.mxu0 %v7385_v59  ;;  %v7470_v58 = vld [vmem:[#allocation10 + $0x340] ss:$16 sps:$4 sm:$0xff]   ;;  %v7475_v59 = vld [vmem:[#allocation10 + $0x164] ss:$16 sps:$4 sm:$0xff]  }
 0x141   :  { %1728 = vmatprep.subr.bf16.mxu1 %v7388_v60  ;;  %v7478_v60 = vld [vmem:[#allocation10 + $0x364] ss:$16 sps:$4 sm:$0xff]  }
 0x143   :  { %1688 = vmatpush1.bf16.msra.mxu0 %v7383_v61  ;;  %v7473_v61 = vld [vmem:[#allocation10 + $0x160] ss:$16 sps:$4 sm:$0xff]  }
 0x144   :  { %1729 = vmatpush1.bf16.msra.mxu1 %v7386_v62  ;;  %1689 = vmatprep.subr.bf16.mxu0 %v7391_v63  ;;  %v7476_v62 = vld [vmem:[#allocation10 + $0x360] ss:$16 sps:$4 sm:$0xff]   ;;  %v7481_v63 = vld [vmem:[#allocation10 + $0x184] ss:$16 sps:$4 sm:$0xff]  }
 0x145   :  { %1730 = vmatprep.subr.bf16.mxu1 %v7394_v0  ;;  %v7484_v0 = vld [vmem:[#allocation10 + $0x384] ss:$16 sps:$4 sm:$0xff]  }
 0x147   :  { %1690 = vmatpush1.bf16.msra.mxu0 %v7389_v1  ;;  %v7479_v1 = vld [vmem:[#allocation10 + $0x180] ss:$16 sps:$4 sm:$0xff]  }
 0x148   :  { %1731 = vmatpush1.bf16.msra.mxu1 %v7392_v2  ;;  %1691 = vmatprep.subr.bf16.mxu0 %v7397_v3  ;;  %v7482_v2 = vld [vmem:[#allocation10 + $0x380] ss:$16 sps:$4 sm:$0xff]   ;;  %v7487_v3 = vld [vmem:[#allocation10 + $0x1a4] ss:$16 sps:$4 sm:$0xff]  }
 0x149   :  { %1732 = vmatprep.subr.bf16.mxu1 %v7400_v4  ;;  %v7490_v4 = vld [vmem:[#allocation10 + $0x3a4] ss:$16 sps:$4 sm:$0xff]  }
 0x14b   :  { %1692 = vmatpush1.bf16.msra.mxu0 %v7395_v5  ;;  %v7485_v5 = vld [vmem:[#allocation10 + $0x1a0] ss:$16 sps:$4 sm:$0xff]  }
 0x14c   :  { %1733 = vmatpush1.bf16.msra.mxu1 %v7398_v8  ;;  %1693 = vmatprep.subr.bf16.mxu0 %v7403_v9  ;;  %v7488_v8 = vld [vmem:[#allocation10 + $0x3a0] ss:$16 sps:$4 sm:$0xff]   ;;  %v7493_v9 = vld [vmem:[#allocation10 + $0x1c4] ss:$16 sps:$4 sm:$0xff]  }
 0x14d   :  { %1734 = vmatprep.subr.bf16.mxu1 %v7406_v10  ;;  %v7496_v10 = vld [vmem:[#allocation10 + $0x3c4] ss:$16 sps:$4 sm:$0xff]  }
 0x14f   :  { %1694 = vmatpush1.bf16.msra.mxu0 %v7401_v11  ;;  %v7491_v11 = vld [vmem:[#allocation10 + $0x1c0] ss:$16 sps:$4 sm:$0xff]  }
 0x150   :  { %1735 = vmatpush1.bf16.msra.mxu1 %v7404_v12  ;;  %2726 = vmatprep.subr.bf16.mxu0 %v7409_v14  ;;  %v7494_v12 = vld [vmem:[#allocation10 + $0x3c0] ss:$16 sps:$4 sm:$0xff]   ;;  %v7499_v14 = vld [vmem:[#allocation10 + $0x1e4] ss:$16 sps:$4 sm:$0xff]  }
 0x151   :  { %2767 = vmatprep.subr.bf16.mxu1 %v7412_v15  ;;  %v7502_v15 = vld [vmem:[#allocation10 + $0x3e4] ss:$16 sps:$4 sm:$0xff]  }
 0x152   :  { %1696 = vmatmul.mubr.bf16.vlgmr.msra.gmra.mrb[8].mxu0 %v8704_v7  ;;  %v7427_v7 = vld [vmem:[#allocation10 + $0x64] ss:$16 sps:$4 sm:$0xff]  }
 0x153   :  { %1737 = vmatmul.mubr.bf16.vlgmr.msra.gmra.mrb[8].mxu1 %v8718_v13  ;;  %2727 = vmatpush1.bf16.msra.mxu0 %v7407_v16  ;;  %v7430_v13 = vld [vmem:[#allocation10 + $0x264] ss:$16 sps:$4 sm:$0xff]   ;;  %v7497_v16 = vld [vmem:[#allocation10 + $0x1e0] ss:$16 sps:$4 sm:$0xff]  }
 0x154   :  { %2768 = vmatpush1.bf16.msra.mxu1 %v7410_v19  ;;  %2728 = vmatprep.subr.bf16.mxu0 %v7415_v20  ;;  %v7500_v19 = vld [vmem:[#allocation10 + $0x3e0] ss:$16 sps:$4 sm:$0xff]   ;;  %v7509_v20 = vld [vmem:[#allocation10 + $0x404] ss:$16 sps:$4 sm:$0xff]  }
 0x155   :  { %2769 = vmatprep.subr.bf16.mxu1 %v7418_v21  ;;  %2758 = vmatprep.mubr.bf16.mxu0 %v8730_v22  ;;  %v7512_v21 = vld [vmem:[#allocation10 + $0xc] ss:$16 sps:$4 sm:$0xff]  }
 0x156   :  { %2799 = vmatprep.mubr.bf16.mxu1 %v8734_v23 }
 0x157   :  { %2729 = vmatpush1.bf16.msra.mxu0 %v7413_v24  ;;  %v8742_v24 = vcombine.low %v8724_v17, %v8724_v17  ;;  %v7513_v17 = vld [vmem:[#allocation10 + $0x420] ss:$16 sps:$4 sm:$0xff]  }
 0x158   :  { %2770 = vmatpush1.bf16.msra.mxu1 %v7416_v6  ;;  %2730 = vmatprep.subr.bf16.mxu0 %v7421_v25  ;;  %v8746_v6 = vcombine.low %v8726_v18, %v8726_v18  ;;  %v8748_v25 = vld [vmem:[#allocation2 + $0x10] sm:$0xff]  ;;  %v7516_v18 = vld [vmem:[#allocation10 + $0x28] ss:$16 sps:$4 sm:$0xff]  }
 0x159   :  { %2771 = vmatprep.subr.bf16.mxu1 %v7424_v26  ;;  %v7507_v26 = vld [vmem:[#allocation10 + $0x400] ss:$16 sps:$4 sm:$0xff]  }
 0x15b   :  { %2731 = vmatpush1.bf16.msra.mxu0 %v7419_v27  ;;  %v7510_v27 = vld [vmem:[#allocation10 + $0x8] ss:$16 sps:$4 sm:$0xff]  }
 0x15c   :  { %2772 = vmatpush1.bf16.msra.mxu1 %v7422_v28  ;;  %2732 = vmatprep.subr.bf16.mxu0 %v7427_v7  ;;  %v7515_v28 = vld [vmem:[#allocation10 + $0x424] ss:$16 sps:$4 sm:$0xff]   ;;  %v7518_v7 = vld [vmem:[#allocation10 + $0x2c] ss:$16 sps:$4 sm:$0xff]  }
 0x15d   :  { %2773 = vmatprep.subr.bf16.mxu1 %v7430_v13  ;;  %v8752_v13 = vcombine.high %v8748_v25, %v8748_v25 }
 0x15f   :  { %2733 = vmatpush1.bf16.msra.mxu0 %v7425_v29  ;;  %v7521_v29 = vld [vmem:[#allocation10 + $0x444] ss:$16 sps:$4 sm:$0xff]  }
 0x160   :  { %2774 = vmatpush1.bf16.msra.mxu1 %v7428_v51  ;;  %2734 = vmatprep.subr.bf16.mxu0 %v7433_v30  ;;  %v7524_v51 = vld [vmem:[#allocation10 + $0x4c] ss:$16 sps:$4 sm:$0xff]   ;;  %v7519_v30 = vld [vmem:[#allocation10 + $0x440] ss:$16 sps:$4 sm:$0xff]  }
 0x161   :  { %2775 = vmatprep.subr.bf16.mxu1 %v7436_v31  ;;  %v7522_v31 = vld [vmem:[#allocation10 + $0x48] ss:$16 sps:$4 sm:$0xff]  }
 0x163   :  { %2735 = vmatpush1.bf16.msra.mxu0 %v7431_v32  ;;  %v7527_v32 = vld [vmem:[#allocation10 + $0x464] ss:$16 sps:$4 sm:$0xff]  }
 0x164   :  { %2776 = vmatpush1.bf16.msra.mxu1 %v7434_v33  ;;  %2736 = vmatprep.subr.bf16.mxu0 %v7439_v34  ;;  %v7530_v33 = vld [vmem:[#allocation10 + $0x6c] ss:$16 sps:$4 sm:$0xff]   ;;  %v7525_v34 = vld [vmem:[#allocation10 + $0x460] ss:$16 sps:$4 sm:$0xff]  }
 0x165   :  { %2777 = vmatprep.subr.bf16.mxu1 %v7442_v35  ;;  %v7528_v35 = vld [vmem:[#allocation10 + $0x68] ss:$16 sps:$4 sm:$0xff]  }
 0x167   :  { %2737 = vmatpush1.bf16.msra.mxu0 %v7437_v36  ;;  %v7533_v36 = vld [vmem:[#allocation10 + $0x484] ss:$16 sps:$4 sm:$0xff]  }
 0x168   :  { %2778 = vmatpush1.bf16.msra.mxu1 %v7440_v37  ;;  %2738 = vmatprep.subr.bf16.mxu0 %v7445_v38  ;;  %v7536_v37 = vld [vmem:[#allocation10 + $0x8c] ss:$16 sps:$4 sm:$0xff]   ;;  %v7531_v38 = vld [vmem:[#allocation10 + $0x480] ss:$16 sps:$4 sm:$0xff]  }
 0x169   :  { %2779 = vmatprep.subr.bf16.mxu1 %v7448_v39  ;;  %v7539_v39 = vld [vmem:[#allocation10 + $0x4a4] ss:$16 sps:$4 sm:$0xff]  }
 0x16b   :  { %2739 = vmatpush1.bf16.msra.mxu0 %v7443_v40  ;;  %v7542_v40 = vld [vmem:[#allocation10 + $0xac] ss:$16 sps:$4 sm:$0xff]  }
 0x16c   :  { %2780 = vmatpush1.bf16.msra.mxu1 %v7446_v41  ;;  %2740 = vmatprep.subr.bf16.mxu0 %v7451_v42  ;;  %v7537_v41 = vld [vmem:[#allocation10 + $0x4a0] ss:$16 sps:$4 sm:$0xff]   ;;  %v7540_v42 = vld [vmem:[#allocation10 + $0xa8] ss:$16 sps:$4 sm:$0xff]  }
 0x16d   :  { %2781 = vmatprep.subr.bf16.mxu1 %v7454_v43  ;;  %v7545_v43 = vld [vmem:[#allocation10 + $0x4c4] ss:$16 sps:$4 sm:$0xff]  }
 0x16f   :  { %2741 = vmatpush1.bf16.msra.mxu0 %v7449_v44  ;;  %v7548_v44 = vld [vmem:[#allocation10 + $0xcc] ss:$16 sps:$4 sm:$0xff]  }
 0x170   :  { %2782 = vmatpush1.bf16.msra.mxu1 %v7452_v45  ;;  %2742 = vmatprep.subr.bf16.mxu0 %v7457_v46 }
 0x171   :  { %2783 = vmatprep.subr.bf16.mxu1 %v7460_v47  ;;  %v7543_v47 = vld [vmem:[#allocation10 + $0x4c0] ss:$16 sps:$4 sm:$0xff]  }
 0x173   :  { %2743 = vmatpush1.bf16.msra.mxu0 %v7455_v48  ;;  %v7546_v48 = vld [vmem:[#allocation10 + $0xc8] ss:$16 sps:$4 sm:$0xff]  }
 0x174   :  { %2784 = vmatpush1.bf16.msra.mxu1 %v7458_v49  ;;  %2744 = vmatprep.subr.bf16.mxu0 %v7463_v50 }
 0x175   :  { %2785 = vmatprep.subr.bf16.mxu1 %v7466_v52 }
 0x177   :  { %2745 = vmatpush1.bf16.msra.mxu0 %v7461_v53 }
 0x178   :  { %2786 = vmatpush1.bf16.msra.mxu1 %v7464_v54  ;;  %2746 = vmatprep.subr.bf16.mxu0 %v7469_v55 }
 0x179   :  { %2787 = vmatprep.subr.bf16.mxu1 %v7472_v56 }
 0x17b   :  { %2747 = vmatpush1.bf16.msra.mxu0 %v7467_v57 }
 0x17c   :  { %2788 = vmatpush1.bf16.msra.mxu1 %v7470_v58  ;;  %2748 = vmatprep.subr.bf16.mxu0 %v7475_v59  ;;  %v7551_v58 = vld [vmem:[#allocation10 + $0x4e4] ss:$16 sps:$4 sm:$0xff]   ;;  %v7554_v59 = vld [vmem:[#allocation10 + $0xec] ss:$16 sps:$4 sm:$0xff]  }
 0x17d   :  { %2789 = vmatprep.subr.bf16.mxu1 %v7478_v60  ;;  %v7549_v60 = vld [vmem:[#allocation10 + $0x4e0] ss:$16 sps:$4 sm:$0xff]  }
 0x17f   :  { %2749 = vmatpush1.bf16.msra.mxu0 %v7473_v61  ;;  %v7552_v61 = vld [vmem:[#allocation10 + $0xe8] ss:$16 sps:$4 sm:$0xff]  }
 0x180   :  { %2790 = vmatpush1.bf16.msra.mxu1 %v7476_v62  ;;  %2750 = vmatprep.subr.bf16.mxu0 %v7481_v63  ;;  %v7557_v62 = vld [vmem:[#allocation10 + $0x504] ss:$16 sps:$4 sm:$0xff]   ;;  %v7560_v63 = vld [vmem:[#allocation10 + $0x10c] ss:$16 sps:$4 sm:$0xff]  }
 0x181   :  { %2791 = vmatprep.subr.bf16.mxu1 %v7484_v0  ;;  %v7555_v0 = vld [vmem:[#allocation10 + $0x500] ss:$16 sps:$4 sm:$0xff]  }
 0x183   :  { %2751 = vmatpush1.bf16.msra.mxu0 %v7479_v1  ;;  %v7558_v1 = vld [vmem:[#allocation10 + $0x108] ss:$16 sps:$4 sm:$0xff]  }
 0x184   :  { %2792 = vmatpush1.bf16.msra.mxu1 %v7482_v2  ;;  %2752 = vmatprep.subr.bf16.mxu0 %v7487_v3  ;;  %v7563_v2 = vld [vmem:[#allocation10 + $0x524] ss:$16 sps:$4 sm:$0xff]   ;;  %v7566_v3 = vld [vmem:[#allocation10 + $0x12c] ss:$16 sps:$4 sm:$0xff]  }
 0x185   :  { %2793 = vmatprep.subr.bf16.mxu1 %v7490_v4  ;;  %v7561_v4 = vld [vmem:[#allocation10 + $0x520] ss:$16 sps:$4 sm:$0xff]  }
 0x187   :  { %2753 = vmatpush1.bf16.msra.mxu0 %v7485_v5  ;;  %v7564_v5 = vld [vmem:[#allocation10 + $0x128] ss:$16 sps:$4 sm:$0xff]  }
 0x188   :  { %2794 = vmatpush1.bf16.msra.mxu1 %v7488_v8  ;;  %2754 = vmatprep.subr.bf16.mxu0 %v7493_v9  ;;  %v7569_v8 = vld [vmem:[#allocation10 + $0x544] ss:$16 sps:$4 sm:$0xff]   ;;  %v7572_v9 = vld [vmem:[#allocation10 + $0x14c] ss:$16 sps:$4 sm:$0xff]  }
 0x189   :  { %2795 = vmatprep.subr.bf16.mxu1 %v7496_v10  ;;  %v7567_v10 = vld [vmem:[#allocation10 + $0x540] ss:$16 sps:$4 sm:$0xff]  }
 0x18b   :  { %2755 = vmatpush1.bf16.msra.mxu0 %v7491_v11  ;;  %v7570_v11 = vld [vmem:[#allocation10 + $0x148] ss:$16 sps:$4 sm:$0xff]  }
 0x18c   :  { %2796 = vmatpush1.bf16.msra.mxu1 %v7494_v12  ;;  %2756 = vmatprep.subr.bf16.mxu0 %v7499_v14  ;;  %v7575_v12 = vld [vmem:[#allocation10 + $0x564] ss:$16 sps:$4 sm:$0xff]   ;;  %v7578_v14 = vld [vmem:[#allocation10 + $0x16c] ss:$16 sps:$4 sm:$0xff]  }
 0x18d   :  { %2797 = vmatprep.subr.bf16.mxu1 %v7502_v15  ;;  %v7573_v15 = vld [vmem:[#allocation10 + $0x560] ss:$16 sps:$4 sm:$0xff]  }
 0x18f   :  { %2757 = vmatpush1.bf16.msra.mxu0 %v7497_v16  ;;  %v7576_v16 = vld [vmem:[#allocation10 + $0x168] ss:$16 sps:$4 sm:$0xff]  }
 0x190   :  { %2798 = vmatpush1.bf16.msra.mxu1 %v7500_v19  ;;  %2808 = vmatprep.subr.bf16.mxu0 %v7509_v20  ;;  %v7581_v19 = vld [vmem:[#allocation10 + $0x584] ss:$16 sps:$4 sm:$0xff]   ;;  %v7584_v20 = vld [vmem:[#allocation10 + $0x18c] ss:$16 sps:$4 sm:$0xff]  }
 0x191   :  { %2849 = vmatprep.subr.bf16.mxu1 %v7512_v21  ;;  %v7579_v21 = vld [vmem:[#allocation10 + $0x580] ss:$16 sps:$4 sm:$0xff]  }
 0x192   :  { %2759 = vmatmul.mubr.bf16.vlgmr.msra.gmra.mrb[12].mxu0 %v8742_v24 }
 0x193   :  { %2800 = vmatmul.mubr.bf16.vlgmr.msra.gmra.mrb[12].mxu1 %v8746_v6  ;;  %2809 = vmatpush1.bf16.msra.mxu0 %v7507_v26  ;;  %v7582_v26 = vld [vmem:[#allocation10 + $0x188] ss:$16 sps:$4 sm:$0xff]  }
 0x194   :  { %2850 = vmatpush1.bf16.msra.mxu1 %v7510_v27  ;;  %2810 = vmatprep.subr.bf16.mxu0 %v7515_v28  ;;  %v7587_v27 = vld [vmem:[#allocation10 + $0x5a4] ss:$16 sps:$4 sm:$0xff]   ;;  %v7590_v28 = vld [vmem:[#allocation10 + $0x1ac] ss:$16 sps:$4 sm:$0xff]  }
 0x195   :  { %2851 = vmatprep.subr.bf16.mxu1 %v7518_v7  ;;  %2840 = vmatprep.mubr.bf16.mxu0 %v8752_v13  ;;  %v7585_v7 = vld [vmem:[#allocation10 + $0x5a0] ss:$16 sps:$4 sm:$0xff]  }
 0x196   :  { %2881 = vmatprep.mubr.bf16.mxu1 %v8730_v22  ;;  %v7534_v22 = vld [vmem:[#allocation10 + $0x88] ss:$16 sps:$4 sm:$0xff]  }
 0x197   :  { %2811 = vmatpush1.bf16.msra.mxu0 %v7513_v17  ;;  %v7588_v17 = vld [vmem:[#allocation10 + $0x1a8] ss:$16 sps:$4 sm:$0xff]  }
 0x198   :  { %2852 = vmatpush1.bf16.msra.mxu1 %v7516_v18  ;;  %2812 = vmatprep.subr.bf16.mxu0 %v7521_v29  ;;  %v7593_v18 = vld [vmem:[#allocation10 + $0x5c4] ss:$16 sps:$4 sm:$0xff]   ;;  %v7596_v29 = vld [vmem:[#allocation10 + $0x1cc] ss:$16 sps:$4 sm:$0xff]  }
 0x199   :  { %2853 = vmatprep.subr.bf16.mxu1 %v7524_v51  ;;  %v7591_v51 = vld [vmem:[#allocation10 + $0x5c0] ss:$16 sps:$4 sm:$0xff]  }
 0x19b   :  { %2813 = vmatpush1.bf16.msra.mxu0 %v7519_v30  ;;  %v7594_v30 = vld [vmem:[#allocation10 + $0x1c8] ss:$16 sps:$4 sm:$0xff]  }
 0x19c   :  { %2854 = vmatpush1.bf16.msra.mxu1 %v7522_v31  ;;  %2814 = vmatprep.subr.bf16.mxu0 %v7527_v32  ;;  %v7599_v31 = vld [vmem:[#allocation10 + $0x5e4] ss:$16 sps:$4 sm:$0xff]   ;;  %v7602_v32 = vld [vmem:[#allocation10 + $0x1ec] ss:$16 sps:$4 sm:$0xff]  }
 0x19d   :  { %2855 = vmatprep.subr.bf16.mxu1 %v7530_v33  ;;  %v7597_v33 = vld [vmem:[#allocation10 + $0x5e0] ss:$16 sps:$4 sm:$0xff]  }
 0x19f   :  { %2815 = vmatpush1.bf16.msra.mxu0 %v7525_v34  ;;  %v7600_v34 = vld [vmem:[#allocation10 + $0x1e8] ss:$16 sps:$4 sm:$0xff]  }
 0x1a0   :  { %2856 = vmatpush1.bf16.msra.mxu1 %v7528_v35  ;;  %2816 = vmatprep.subr.bf16.mxu0 %v7533_v36  ;;  %v7607_v35 = vld [vmem:[#allocation10 + $0x20c] ss:$16 sps:$4 sm:$0xff]  }
 0x1a1   :  { %2857 = vmatprep.subr.bf16.mxu1 %v7536_v37  ;;  %v7610_v36 = vld [vmem:[#allocation10 + $0x40c] ss:$16 sps:$4 sm:$0xff]   ;;  %v8764_v37 = vcombine.low %v8748_v25, %v8748_v25 }
 0x1a2   :  { %v7619_v25 = vld [vmem:[#allocation10 + $0x24c] ss:$16 sps:$4 sm:$0xff]  }
 0x1a3   :  { %2817 = vmatpush1.bf16.msra.mxu0 %v7531_v38  ;;  %v7605_v38 = vld [vmem:[#allocation10 + $0x208] ss:$16 sps:$4 sm:$0xff]  }
 0x1a4   :  { %2858 = vmatpush1.bf16.msra.mxu1 %v7534_v22  ;;  %2818 = vmatprep.subr.bf16.mxu0 %v7539_v39  ;;  %v7608_v22 = vld [vmem:[#allocation10 + $0x408] ss:$16 sps:$4 sm:$0xff]   ;;  %v7613_v39 = vld [vmem:[#allocation10 + $0x22c] ss:$16 sps:$4 sm:$0xff]  }
 0x1a5   :  { %2859 = vmatprep.subr.bf16.mxu1 %v7542_v40  ;;  %v1533_v45 = vpop.f32.mrb[0].mxu0  ;;  %v7616_v40 = vld [vmem:[#allocation10 + $0x42c] ss:$16 sps:$4 sm:$0xff]  }
 0x1a6   :  { %v1574_v46 = vpop.f32.mrb[0].mxu1  ;;  %v1535_v50 = vpop.f32.mrb[1].mxu0 }
 0x1a7   :  { %v8758_v49 = vadd.f32 %v1574_v46, %v1533_v45  ;;  %v1576_v52 = vpop.f32.mrb[1].mxu1  ;;  %v1537_v54 = vpop.f32.mrb[2].mxu0  ;;  %2819 = vmatpush1.bf16.msra.mxu0 %v7537_v41  ;;  %v7611_v41 = vld [vmem:[#allocation10 + $0x228] ss:$16 sps:$4 sm:$0xff]   ;;  %v7625_v46 = vld [vmem:[#allocation10 + $0x26c] ss:$16 sps:$4 sm:$0xff]  }
 0x1a8   :  { %v8760_v53 = vadd.f32 %v1576_v52, %v1535_v50  ;;  %v1578_v55 = vpop.f32.mrb[2].mxu1  ;;  %2860 = vmatpush1.bf16.msra.mxu1 %v7540_v42  ;;  %v1538_v56 = vpop.f32.mrb[3].mxu0  ;;  %2820 = vmatprep.subr.bf16.mxu0 %v7545_v43  ;;  %v7614_v42 = vld [vmem:[#allocation10 + $0x428] ss:$16 sps:$4 sm:$0xff]   ;;  %v7622_v43 = vld [vmem:[#allocation10 + $0x44c] ss:$16 sps:$4 sm:$0xff]  }
 0x1a9   :  { %v1579_v57 = vpop.f32.mrb[3].mxu1  ;;  %2861 = vmatprep.subr.bf16.mxu1 %v7548_v44  ;;  %v7617_v44 = vld [vmem:[#allocation10 + $0x248] ss:$16 sps:$4 sm:$0xff]   ;;  %v7631_v50 = vld [vmem:[#allocation10 + $0x28c] ss:$16 sps:$4 sm:$0xff]  }
 0x1aa   :  { %v7620_v45 = vld [vmem:[#allocation10 + $0x448] ss:$16 sps:$4 sm:$0xff]   ;;  %v7634_v52 = vld [vmem:[#allocation10 + $0x48c] ss:$16 sps:$4 sm:$0xff]  }
 0x1ab   :  { %2821 = vmatpush1.bf16.msra.mxu0 %v7543_v47  ;;  %v7623_v47 = vld [vmem:[#allocation10 + $0x268] ss:$16 sps:$4 sm:$0xff]   ;;  %v7637_v54 = vld [vmem:[#allocation10 + $0x2ac] ss:$16 sps:$4 sm:$0xff]  }
 0x1ac   :  { %2862 = vmatpush1.bf16.msra.mxu1 %v7546_v48  ;;  %2822 = vmatprep.subr.bf16.mxu0 %v7551_v58  ;;  %v7626_v48 = vld [vmem:[#allocation10 + $0x468] ss:$16 sps:$4 sm:$0xff]   ;;  %v7640_v55 = vld [vmem:[#allocation10 + $0x4ac] ss:$16 sps:$4 sm:$0xff]  }
 0x1ad   :  { %2863 = vmatprep.subr.bf16.mxu1 %v7554_v59  ;;  %v7635_v56 = vld [vmem:[#allocation10 + $0x2a8] ss:$16 sps:$4 sm:$0xff]   ;;  %v7643_v58 = vld [vmem:[#allocation10 + $0x2cc] ss:$16 sps:$4 sm:$0xff]  }
 0x1ae   :  { %v7638_v57 = vld [vmem:[#allocation10 + $0x4a8] ss:$16 sps:$4 sm:$0xff]   ;;  %v7646_v59 = vld [vmem:[#allocation10 + $0x4cc] ss:$16 sps:$4 sm:$0xff]  }
 0x1af   :  { %2823 = vmatpush1.bf16.msra.mxu0 %v7549_v60 }
 0x1b0   :  { %2864 = vmatpush1.bf16.msra.mxu1 %v7552_v61  ;;  %2824 = vmatprep.subr.bf16.mxu0 %v7557_v62  ;;  %v7641_v62 = vld [vmem:[#allocation10 + $0x2c8] ss:$16 sps:$4 sm:$0xff]  }
 0x1b1   :  { %2865 = vmatprep.subr.bf16.mxu1 %v7560_v63  ;;  %v7644_v63 = vld [vmem:[#allocation10 + $0x4c8] ss:$16 sps:$4 sm:$0xff]  }
 0x1b3   :  { %2825 = vmatpush1.bf16.msra.mxu0 %v7555_v0 }
 0x1b4   :  { %2866 = vmatpush1.bf16.msra.mxu1 %v7558_v1  ;;  %2826 = vmatprep.subr.bf16.mxu0 %v7563_v2 }
 0x1b5   :  { %2867 = vmatprep.subr.bf16.mxu1 %v7566_v3 }
 0x1b7   :  { %2827 = vmatpush1.bf16.msra.mxu0 %v7561_v4 }
 0x1b8   :  { %2868 = vmatpush1.bf16.msra.mxu1 %v7564_v5  ;;  %2828 = vmatprep.subr.bf16.mxu0 %v7569_v8 }
 0x1b9   :  { %2869 = vmatprep.subr.bf16.mxu1 %v7572_v9 }
 0x1bb   :  { %2829 = vmatpush1.bf16.msra.mxu0 %v7567_v10  ;;  %v7649_v10 = vld [vmem:[#allocation10 + $0x2ec] ss:$16 sps:$4 sm:$0xff]  }
 0x1bc   :  { %2870 = vmatpush1.bf16.msra.mxu1 %v7570_v11  ;;  %2830 = vmatprep.subr.bf16.mxu0 %v7575_v12  ;;  %v7652_v11 = vld [vmem:[#allocation10 + $0x4ec] ss:$16 sps:$4 sm:$0xff]   ;;  %v7650_v12 = vld [vmem:[#allocation10 + $0x4e8] ss:$16 sps:$4 sm:$0xff]  }
 0x1bd   :  { %2871 = vmatprep.subr.bf16.mxu1 %v7578_v14  ;;  %v7655_v14 = vld [vmem:[#allocation10 + $0x30c] ss:$16 sps:$4 sm:$0xff]  }
 0x1bf   :  { %2831 = vmatpush1.bf16.msra.mxu0 %v7573_v15  ;;  %v7658_v15 = vld [vmem:[#allocation10 + $0x50c] ss:$16 sps:$4 sm:$0xff]  }
 0x1c0   :  { %2872 = vmatpush1.bf16.msra.mxu1 %v7576_v16  ;;  %2832 = vmatprep.subr.bf16.mxu0 %v7581_v19  ;;  %v7656_v16 = vld [vmem:[#allocation10 + $0x508] ss:$16 sps:$4 sm:$0xff]   ;;  %v7661_v19 = vld [vmem:[#allocation10 + $0x32c] ss:$16 sps:$4 sm:$0xff]  }
 0x1c1   :  { %2873 = vmatprep.subr.bf16.mxu1 %v7584_v20  ;;  %v7664_v20 = vld [vmem:[#allocation10 + $0x52c] ss:$16 sps:$4 sm:$0xff]  }
 0x1c3   :  { %2833 = vmatpush1.bf16.msra.mxu0 %v7579_v21  ;;  %v7659_v21 = vld [vmem:[#allocation10 + $0x328] ss:$16 sps:$4 sm:$0xff]  }
 0x1c4   :  { %2874 = vmatpush1.bf16.msra.mxu1 %v7582_v26  ;;  %2834 = vmatprep.subr.bf16.mxu0 %v7587_v27  ;;  %v7662_v26 = vld [vmem:[#allocation10 + $0x528] ss:$16 sps:$4 sm:$0xff]   ;;  %v7667_v27 = vld [vmem:[#allocation10 + $0x34c] ss:$16 sps:$4 sm:$0xff]  }
 0x1c5   :  { %2875 = vmatprep.subr.bf16.mxu1 %v7590_v28  ;;  %v7670_v28 = vld [vmem:[#allocation10 + $0x54c] ss:$16 sps:$4 sm:$0xff]  }
 0x1c7   :  { %2835 = vmatpush1.bf16.msra.mxu0 %v7585_v7  ;;  %v7665_v7 = vld [vmem:[#allocation10 + $0x348] ss:$16 sps:$4 sm:$0xff]  }
 0x1c8   :  { %2876 = vmatpush1.bf16.msra.mxu1 %v7588_v17  ;;  %2836 = vmatprep.subr.bf16.mxu0 %v7593_v18  ;;  %v7668_v17 = vld [vmem:[#allocation10 + $0x548] ss:$16 sps:$4 sm:$0xff]   ;;  %v7673_v18 = vld [vmem:[#allocation10 + $0x36c] ss:$16 sps:$4 sm:$0xff]  }
 0x1c9   :  { %2877 = vmatprep.subr.bf16.mxu1 %v7596_v29  ;;  %v7676_v29 = vld [vmem:[#allocation10 + $0x56c] ss:$16 sps:$4 sm:$0xff]  }
 0x1cb   :  { %2837 = vmatpush1.bf16.msra.mxu0 %v7591_v51  ;;  %v7671_v51 = vld [vmem:[#allocation10 + $0x368] ss:$16 sps:$4 sm:$0xff]  }
 0x1cc   :  { %2878 = vmatpush1.bf16.msra.mxu1 %v7594_v30  ;;  %2838 = vmatprep.subr.bf16.mxu0 %v7599_v31  ;;  %v7674_v30 = vld [vmem:[#allocation10 + $0x568] ss:$16 sps:$4 sm:$0xff]   ;;  %v7679_v31 = vld [vmem:[#allocation10 + $0x38c] ss:$16 sps:$4 sm:$0xff]  }
 0x1cd   :  { %2879 = vmatprep.subr.bf16.mxu1 %v7602_v32  ;;  %v7682_v32 = vld [vmem:[#allocation10 + $0x58c] ss:$16 sps:$4 sm:$0xff]  }
 0x1cf   :  { %2839 = vmatpush1.bf16.msra.mxu0 %v7597_v33  ;;  %v7677_v33 = vld [vmem:[#allocation10 + $0x388] ss:$16 sps:$4 sm:$0xff]  }
 0x1d0   :  { %2880 = vmatpush1.bf16.msra.mxu1 %v7600_v34  ;;  %2890 = vmatprep.subr.bf16.mxu0 %v7607_v35  ;;  %v7680_v34 = vld [vmem:[#allocation10 + $0x588] ss:$16 sps:$4 sm:$0xff]   ;;  %v7685_v35 = vld [vmem:[#allocation10 + $0x3ac] ss:$16 sps:$4 sm:$0xff]  }
 0x1d1   :  { %2931 = vmatprep.subr.bf16.mxu1 %v7610_v36  ;;  %v7688_v36 = vld [vmem:[#allocation10 + $0x5ac] ss:$16 sps:$4 sm:$0xff]  }
 0x1d2   :  { %2841 = vmatmul.mubr.bf16.vlgmr.msra.gmra.mrb[16].mxu0 %v8764_v37 }
 0x1d3   :  { %2882 = vmatmul.mubr.bf16.vlgmr.msra.gmra.mrb[16].mxu1 %v8742_v24  ;;  %2891 = vmatpush1.bf16.msra.mxu0 %v7605_v38  ;;  %v7628_v24 = vld [vmem:[#allocation10 + $0x46c] ss:$16 sps:$4 sm:$0xff]   ;;  %v7683_v38 = vld [vmem:[#allocation10 + $0x3a8] ss:$16 sps:$4 sm:$0xff]  }
 0x1d4   :  { %2932 = vmatpush1.bf16.msra.mxu1 %v7608_v22  ;;  %2892 = vmatprep.subr.bf16.mxu0 %v7613_v39  ;;  %v7686_v22 = vld [vmem:[#allocation10 + $0x5a8] ss:$16 sps:$4 sm:$0xff]   ;;  %v7691_v39 = vld [vmem:[#allocation10 + $0x3cc] ss:$16 sps:$4 sm:$0xff]  }
 0x1d5   :  { %2933 = vmatprep.subr.bf16.mxu1 %v7616_v40  ;;  %2922 = vmatprep.mubr.bf16.mxu0 %v8734_v23  ;;  %v7629_v23 = vld [vmem:[#allocation10 + $0x288] ss:$16 sps:$4 sm:$0xff]   ;;  %v7694_v40 = vld [vmem:[#allocation10 + $0x5cc] ss:$16 sps:$4 sm:$0xff]  }
 0x1d6   :  { %2963 = vmatprep.mubr.bf16.mxu1 %v8752_v13  ;;  %v7632_v13 = vld [vmem:[#allocation10 + $0x488] ss:$16 sps:$4 sm:$0xff]  }
 0x1d7   :  { %2893 = vmatpush1.bf16.msra.mxu0 %v7611_v41  ;;  %v7689_v41 = vld [vmem:[#allocation10 + $0x3c8] ss:$16 sps:$4 sm:$0xff]  }
 0x1d8   :  { %2934 = vmatpush1.bf16.msra.mxu1 %v7614_v42  ;;  %2894 = vmatprep.subr.bf16.mxu0 %v7619_v25  ;;  %v7692_v42 = vld [vmem:[#allocation10 + $0x5c8] ss:$16 sps:$4 sm:$0xff]   ;;  %v7697_v25 = vld [vmem:[#allocation10 + $0x3ec] ss:$16 sps:$4 sm:$0xff]  }
 0x1d9   :  { %2935 = vmatprep.subr.bf16.mxu1 %v7622_v43  ;;  %v7700_v43 = vld [vmem:[#allocation10 + $0x5ec] ss:$16 sps:$4 sm:$0xff]  }
 0x1db   :  { %2895 = vmatpush1.bf16.msra.mxu0 %v7617_v44  ;;  %v7695_v44 = vld [vmem:[#allocation10 + $0x3e8] ss:$16 sps:$4 sm:$0xff]  }
 0x1dc   :  { %2936 = vmatpush1.bf16.msra.mxu1 %v7620_v45  ;;  %2896 = vmatprep.subr.bf16.mxu0 %v7625_v46  ;;  %v7698_v45 = vld [vmem:[#allocation10 + $0x5e8] ss:$16 sps:$4 sm:$0xff]   ;;  %v7703_v46 = vld [vmem:[#allocation10 + $0xc04] ss:$16 sps:$4 sm:$0xff]  }
 0x1dd   :  { %2937 = vmatprep.subr.bf16.mxu1 %v7628_v24  ;;  %v7706_v24 = vld [vmem:[#allocation10 + $0xe04] ss:$16 sps:$4 sm:$0xff]  }
 0x1df   :  { %2897 = vmatpush1.bf16.msra.mxu0 %v7623_v47  ;;  %v8780_v47 = vld [vmem:[#allocation7] sm:$0xff] }
 0x1e0   :  { %2938 = vmatpush1.bf16.msra.mxu1 %v7626_v48  ;;  %2898 = vmatprep.subr.bf16.mxu0 %v7631_v50  ;;  %v7701_v48 = vld [vmem:[#allocation10 + $0xc00] ss:$16 sps:$4 sm:$0xff]  }
 0x1e1   :  { %2939 = vmatprep.subr.bf16.mxu1 %v7634_v52  ;;  %v7704_v50 = vld [vmem:[#allocation10 + $0xe00] ss:$16 sps:$4 sm:$0xff]   ;;  %v8782_v52 = vld [vmem:[#allocation7 + $0x8] sm:$0xff] }
 0x1e3   :  { %2899 = vmatpush1.bf16.msra.mxu0 %v7629_v23  ;;  %v7709_v23 = vld [vmem:[#allocation10 + $0xc24] ss:$16 sps:$4 sm:$0xff]  }
 0x1e4   :  { %2940 = vmatpush1.bf16.msra.mxu1 %v7632_v13  ;;  %2900 = vmatprep.subr.bf16.mxu0 %v7637_v54  ;;  %v7712_v13 = vld [vmem:[#allocation10 + $0xe24] ss:$16 sps:$4 sm:$0xff]   ;;  %v8786_v54 = vcombine.high %v8780_v47, %v8780_v47 }
 0x1e5   :  { %2941 = vmatprep.subr.bf16.mxu1 %v7640_v55  ;;  %v1615_v60 = vpop.f32.mrb[4].mxu0  ;;  %v8790_v55 = vcombine.high %v8782_v52, %v8782_v52 }
 0x1e6   :  { %v8770_v61 = vpop.f32.mrb[4].mxu1  ;;  %v8773_v0 = vadd.f32 %v1615_v60, %v8758_v49  ;;  %v1617_v1 = vpop.f32.mrb[5].mxu0  ;;  %v7647_v49 = vld [vmem:[#allocation10 + $0x2e8] ss:$16 sps:$4 sm:$0xff]   ;;  %v7713_v60 = vld [vmem:[#allocation10 + $0xc40] ss:$16 sps:$4 sm:$0xff]  }
 0x1e7   :  { %v8775_v2 = vpop.f32.mrb[5].mxu1  ;;  %v8778_v3 = vadd.f32 %v1617_v1, %v8760_v53  ;;  %v1619_v4 = vpop.f32.mrb[6].mxu0  ;;  %2901 = vmatpush1.bf16.msra.mxu0 %v7635_v56  ;;  %v7653_v53 = vld [vmem:[#allocation10 + $0x308] ss:$16 sps:$4 sm:$0xff]   ;;  %v7707_v56 = vld [vmem:[#allocation10 + $0xc20] ss:$16 sps:$4 sm:$0xff]  }
 0x1e8   :  { %v1660_v5 = vpop.f32.mrb[6].mxu1  ;;  %2942 = vmatpush1.bf16.msra.mxu1 %v7638_v57  ;;  %v1620_v8 = vpop.f32.mrb[7].mxu0  ;;  %2902 = vmatprep.subr.bf16.mxu0 %v7643_v58  ;;  %v7710_v57 = vld [vmem:[#allocation10 + $0xe20] ss:$16 sps:$4 sm:$0xff]   ;;  %v7715_v58 = vld [vmem:[#allocation10 + $0xc44] ss:$16 sps:$4 sm:$0xff]  }
 0x1e9   :  { %v1661_v9 = vpop.f32.mrb[7].mxu1  ;;  %2943 = vmatprep.subr.bf16.mxu1 %v7646_v59  ;;  %v7718_v59 = vld [vmem:[#allocation10 + $0xe44] ss:$16 sps:$4 sm:$0xff]   ;;  %v7722_v1 = vld [vmem:[#allocation10 + $0xe60] ss:$16 sps:$4 sm:$0xff]  }
 0x1ea   :  { %v7727_v4 = vld [vmem:[#allocation10 + $0xc84] ss:$16 sps:$4 sm:$0xff]   ;;  %v7725_v8 = vld [vmem:[#allocation10 + $0xc80] ss:$16 sps:$4 sm:$0xff]  }
 0x1eb   :  { %2903 = vmatpush1.bf16.msra.mxu0 %v7641_v62  ;;  %v7716_v62 = vld [vmem:[#allocation10 + $0xe40] ss:$16 sps:$4 sm:$0xff]   ;;  %v7730_v5 = vld [vmem:[#allocation10 + $0xe84] ss:$16 sps:$4 sm:$0xff]  }
 0x1ec   :  { %2944 = vmatpush1.bf16.msra.mxu1 %v7644_v63  ;;  %2904 = vmatprep.subr.bf16.mxu0 %v7649_v10  ;;  %v7719_v63 = vld [vmem:[#allocation10 + $0xc60] ss:$16 sps:$4 sm:$0xff]   ;;  %v7733_v10 = vld [vmem:[#allocation10 + $0xca4] ss:$16 sps:$4 sm:$0xff]  }
 0x1ed   :  { %2945 = vmatprep.subr.bf16.mxu1 %v7652_v11  ;;  %v7728_v9 = vld [vmem:[#allocation10 + $0xe80] ss:$16 sps:$4 sm:$0xff]   ;;  %v7736_v11 = vld [vmem:[#allocation10 + $0xea4] ss:$16 sps:$4 sm:$0xff]  }
 0x1ef   :  { %2905 = vmatpush1.bf16.msra.mxu0 %v7647_v49  ;;  %v7731_v49 = vld [vmem:[#allocation10 + $0xca0] ss:$16 sps:$4 sm:$0xff]  }
 0x1f0   :  { %2946 = vmatpush1.bf16.msra.mxu1 %v7650_v12  ;;  %2906 = vmatprep.subr.bf16.mxu0 %v7655_v14  ;;  %v7734_v12 = vld [vmem:[#allocation10 + $0xea0] ss:$16 sps:$4 sm:$0xff]   ;;  %v7739_v14 = vld [vmem:[#allocation10 + $0xcc4] ss:$16 sps:$4 sm:$0xff]  }
 0x1f1   :  { %2947 = vmatprep.subr.bf16.mxu1 %v7658_v15  ;;  %v7742_v15 = vld [vmem:[#allocation10 + $0xec4] ss:$16 sps:$4 sm:$0xff]  }
 0x1f3   :  { %2907 = vmatpush1.bf16.msra.mxu0 %v7653_v53 }
 0x1f4   :  { %2948 = vmatpush1.bf16.msra.mxu1 %v7656_v16  ;;  %2908 = vmatprep.subr.bf16.mxu0 %v7661_v19  ;;  %v7737_v19 = vld [vmem:[#allocation10 + $0xcc0] ss:$16 sps:$4 sm:$0xff]  }
 0x1f5   :  { %2949 = vmatprep.subr.bf16.mxu1 %v7664_v20  ;;  %v7740_v20 = vld [vmem:[#allocation10 + $0xec0] ss:$16 sps:$4 sm:$0xff]  }
 0x1f7   :  { %2909 = vmatpush1.bf16.msra.mxu0 %v7659_v21 }
 0x1f8   :  { %2950 = vmatpush1.bf16.msra.mxu1 %v7662_v26  ;;  %2910 = vmatprep.subr.bf16.mxu0 %v7667_v27 }
 0x1f9   :  { %2951 = vmatprep.subr.bf16.mxu1 %v7670_v28 }
 0x1fb   :  { %2911 = vmatpush1.bf16.msra.mxu0 %v7665_v7 }
 0x1fc   :  { %2952 = vmatpush1.bf16.msra.mxu1 %v7668_v17  ;;  %2912 = vmatprep.subr.bf16.mxu0 %v7673_v18 }
 0x1fd   :  { %2953 = vmatprep.subr.bf16.mxu1 %v7676_v29 }
 0x1ff   :  { %2913 = vmatpush1.bf16.msra.mxu0 %v7671_v51 }
 0x200   :  { %2954 = vmatpush1.bf16.msra.mxu1 %v7674_v30  ;;  %2914 = vmatprep.subr.bf16.mxu0 %v7679_v31  ;;  %v7745_v30 = vld [vmem:[#allocation10 + $0xce4] ss:$16 sps:$4 sm:$0xff]  }
 0x201   :  { %2955 = vmatprep.subr.bf16.mxu1 %v7682_v32  ;;  %v7748_v31 = vld [vmem:[#allocation10 + $0xee4] ss:$16 sps:$4 sm:$0xff]  }
 0x203   :  { %2915 = vmatpush1.bf16.msra.mxu0 %v7677_v33  ;;  %v7746_v33 = vld [vmem:[#allocation10 + $0xee0] ss:$16 sps:$4 sm:$0xff]  }
 0x204   :  { %2956 = vmatpush1.bf16.msra.mxu1 %v7680_v34  ;;  %2916 = vmatprep.subr.bf16.mxu0 %v7685_v35  ;;  %v7754_v34 = vld [vmem:[#allocation10 + $0xf04] ss:$16 sps:$4 sm:$0xff]   ;;  %v7749_v35 = vld [vmem:[#allocation10 + $0xd00] ss:$16 sps:$4 sm:$0xff]  }
 0x205   :  { %2957 = vmatprep.subr.bf16.mxu1 %v7688_v36  ;;  %v7752_v36 = vld [vmem:[#allocation10 + $0xf00] ss:$16 sps:$4 sm:$0xff]  }
 0x207   :  { %2917 = vmatpush1.bf16.msra.mxu0 %v7683_v38  ;;  %v7757_v38 = vld [vmem:[#allocation10 + $0xd24] ss:$16 sps:$4 sm:$0xff]  }
 0x208   :  { %2958 = vmatpush1.bf16.msra.mxu1 %v7686_v22  ;;  %2918 = vmatprep.subr.bf16.mxu0 %v7691_v39  ;;  %v7760_v22 = vld [vmem:[#allocation10 + $0xf24] ss:$16 sps:$4 sm:$0xff]   ;;  %v7755_v39 = vld [vmem:[#allocation10 + $0xd20] ss:$16 sps:$4 sm:$0xff]  }
 0x209   :  { %2959 = vmatprep.subr.bf16.mxu1 %v7694_v40  ;;  %v7758_v40 = vld [vmem:[#allocation10 + $0xf20] ss:$16 sps:$4 sm:$0xff]  }
 0x20b   :  { %2919 = vmatpush1.bf16.msra.mxu0 %v7689_v41  ;;  %v7763_v41 = vld [vmem:[#allocation10 + $0xd44] ss:$16 sps:$4 sm:$0xff]  }
 0x20c   :  { %2960 = vmatpush1.bf16.msra.mxu1 %v7692_v42  ;;  %2920 = vmatprep.subr.bf16.mxu0 %v7697_v25  ;;  %v7766_v42 = vld [vmem:[#allocation10 + $0xf44] ss:$16 sps:$4 sm:$0xff]   ;;  %v7761_v25 = vld [vmem:[#allocation10 + $0xd40] ss:$16 sps:$4 sm:$0xff]  }
 0x20d   :  { %2961 = vmatprep.subr.bf16.mxu1 %v7700_v43  ;;  %v7764_v43 = vld [vmem:[#allocation10 + $0xf40] ss:$16 sps:$4 sm:$0xff]  }
 0x20f   :  { %2921 = vmatpush1.bf16.msra.mxu0 %v7695_v44  ;;  %v7769_v44 = vld [vmem:[#allocation10 + $0xd64] ss:$16 sps:$4 sm:$0xff]  }
 0x210   :  { %2962 = vmatpush1.bf16.msra.mxu1 %v7698_v45  ;;  %4148 = vmatprep.subr.bf16.mxu0 %v7703_v46  ;;  %v7772_v45 = vld [vmem:[#allocation10 + $0xf64] ss:$16 sps:$4 sm:$0xff]   ;;  %v7767_v46 = vld [vmem:[#allocation10 + $0xd60] ss:$16 sps:$4 sm:$0xff]  }
 0x211   :  { %4189 = vmatprep.subr.bf16.mxu1 %v7706_v24  ;;  %v7770_v24 = vld [vmem:[#allocation10 + $0xf60] ss:$16 sps:$4 sm:$0xff]  }
 0x212   :  { %2923 = vmatmul.mubr.bf16.vlgmr.msra.gmra.mrb[20].mxu0 %v8746_v6  ;;  %v7721_v6 = vld [vmem:[#allocation10 + $0xc64] ss:$16 sps:$4 sm:$0xff]  }
 0x213   :  { %2964 = vmatmul.mubr.bf16.vlgmr.msra.gmra.mrb[20].mxu1 %v8764_v37  ;;  %4149 = vmatpush1.bf16.msra.mxu0 %v7701_v48  ;;  %v7724_v37 = vld [vmem:[#allocation10 + $0xe64] ss:$16 sps:$4 sm:$0xff]  }
 0x214   :  { %4190 = vmatpush1.bf16.msra.mxu1 %v7704_v50  ;;  %4150 = vmatprep.subr.bf16.mxu0 %v7709_v23  ;;  %v7775_v48 = vld [vmem:[#allocation10 + $0xd84] ss:$16 sps:$4 sm:$0xff]   ;;  %v7773_v23 = vld [vmem:[#allocation10 + $0xd80] ss:$16 sps:$4 sm:$0xff]  }
 0x215   :  { %4191 = vmatprep.subr.bf16.mxu1 %v7712_v13  ;;  %4180 = vmatprep.mubr.bf16.mxu0 %v8786_v54  ;;  %v7778_v50 = vld [vmem:[#allocation10 + $0xf84] ss:$16 sps:$4 sm:$0xff]   ;;  %v7776_v13 = vld [vmem:[#allocation10 + $0xf80] ss:$16 sps:$4 sm:$0xff]  }
 0x216   :  { %4221 = vmatprep.mubr.bf16.mxu1 %v8790_v55 }
 0x217   :  { %4151 = vmatpush1.bf16.msra.mxu0 %v7707_v56  ;;  %v7781_v56 = vld [vmem:[#allocation10 + $0xda4] ss:$16 sps:$4 sm:$0xff]  }
 0x218   :  { %4192 = vmatpush1.bf16.msra.mxu1 %v7710_v57  ;;  %4152 = vmatprep.subr.bf16.mxu0 %v7715_v58  ;;  %v7784_v57 = vld [vmem:[#allocation10 + $0xfa4] ss:$16 sps:$4 sm:$0xff]   ;;  %v7779_v58 = vld [vmem:[#allocation10 + $0xda0] ss:$16 sps:$4 sm:$0xff]  }
 0x219   :  { %4193 = vmatprep.subr.bf16.mxu1 %v7718_v59  ;;  %v7782_v59 = vld [vmem:[#allocation10 + $0xfa0] ss:$16 sps:$4 sm:$0xff]  }
 0x21b   :  { %4153 = vmatpush1.bf16.msra.mxu0 %v7713_v60  ;;  %v7787_v60 = vld [vmem:[#allocation10 + $0xdc4] ss:$16 sps:$4 sm:$0xff]  }
 0x21c   :  { %4194 = vmatpush1.bf16.msra.mxu1 %v7716_v62  ;;  %4154 = vmatprep.subr.bf16.mxu0 %v7721_v6  ;;  %v7790_v62 = vld [vmem:[#allocation10 + $0xfc4] ss:$16 sps:$4 sm:$0xff]   ;;  %v7785_v6 = vld [vmem:[#allocation10 + $0xdc0] ss:$16 sps:$4 sm:$0xff]  }
 0x21d   :  { %4195 = vmatprep.subr.bf16.mxu1 %v7724_v37  ;;  %v7788_v37 = vld [vmem:[#allocation10 + $0xfc0] ss:$16 sps:$4 sm:$0xff]  }
 0x21f   :  { %4155 = vmatpush1.bf16.msra.mxu0 %v7719_v63  ;;  %v7793_v63 = vld [vmem:[#allocation10 + $0xde4] ss:$16 sps:$4 sm:$0xff]  }
 0x220   :  { %4196 = vmatpush1.bf16.msra.mxu1 %v7722_v1  ;;  %4156 = vmatprep.subr.bf16.mxu0 %v7727_v4  ;;  %v7796_v1 = vld [vmem:[#allocation10 + $0xfe4] ss:$16 sps:$4 sm:$0xff]   ;;  %v7791_v4 = vld [vmem:[#allocation10 + $0xde0] ss:$16 sps:$4 sm:$0xff]  }
 0x221   :  { %4197 = vmatprep.subr.bf16.mxu1 %v7730_v5  ;;  %v7794_v5 = vld [vmem:[#allocation10 + $0xfe0] ss:$16 sps:$4 sm:$0xff]  }
 0x223   :  { %4157 = vmatpush1.bf16.msra.mxu0 %v7725_v8  ;;  %v7803_v8 = vld [vmem:[#allocation10 + $0x1004] ss:$16 sps:$4 sm:$0xff]  }
 0x224   :  { %4198 = vmatpush1.bf16.msra.mxu1 %v7728_v9  ;;  %4158 = vmatprep.subr.bf16.mxu0 %v7733_v10  ;;  %v7806_v9 = vld [vmem:[#allocation10 + $0xc0c] ss:$16 sps:$4 sm:$0xff]   ;;  %v8802_v10 = vld [vmem:[#allocation7 + $0x10] sm:$0xff] }
 0x225   :  { %4199 = vmatprep.subr.bf16.mxu1 %v7736_v11  ;;  %v1697_v53 = vpop.f32.mrb[8].mxu0  ;;  %v7801_v11 = vld [vmem:[#allocation10 + $0x1000] ss:$16 sps:$4 sm:$0xff]  }
 0x226   :  { %v1738_v16 = vpop.f32.mrb[8].mxu1  ;;  %v1698_v21 = vadd.f32 %v1697_v53, %v8770_v61  ;;  %v1699_v26 = vpop.f32.mrb[9].mxu0  ;;  %v7743_v61 = vld [vmem:[#allocation10 + $0xce0] ss:$16 sps:$4 sm:$0xff]   ;;  %v7812_v53 = vld [vmem:[#allocation10 + $0xc2c] ss:$16 sps:$4 sm:$0xff]  }
 0x227   :  { %v1740_v27 = vpop.f32.mrb[9].mxu1  ;;  %v1700_v28 = vadd.f32 %v1699_v26, %v8775_v2  ;;  %v1701_v7 = vpop.f32.mrb[10].mxu0  ;;  %4159 = vmatpush1.bf16.msra.mxu0 %v7731_v49  ;;  %v7751_v2 = vld [vmem:[#allocation10 + $0xd04] ss:$16 sps:$4 sm:$0xff]   ;;  %v7804_v49 = vld [vmem:[#allocation10 + $0xc08] ss:$16 sps:$4 sm:$0xff]  }
 0x228   :  { %v1742_v17 = vpop.f32.mrb[10].mxu1  ;;  %4200 = vmatpush1.bf16.msra.mxu1 %v7734_v12  ;;  %v8798_v18 = vadd.f32 %v1738_v16, %v1698_v21  ;;  %v1702_v29 = vpop.f32.mrb[11].mxu0  ;;  %4160 = vmatprep.subr.bf16.mxu0 %v7739_v14  ;;  %v8806_v12 = vcombine.low %v8780_v47, %v8780_v47  ;;  %v8810_v14 = vcombine.low %v8782_v52, %v8782_v52  ;;  %v7807_v47 = vld [vmem:[#allocation10 + $0x1020] ss:$16 sps:$4 sm:$0xff]   ;;  %v7815_v52 = vld [vmem:[#allocation10 + $0x1044] ss:$16 sps:$4 sm:$0xff]  }
 0x229   :  { %v1743_v51 = vpop.f32.mrb[11].mxu1  ;;  %4201 = vmatprep.subr.bf16.mxu1 %v7742_v15  ;;  %v8800_v32 = vadd.f32 %v1740_v27, %v1700_v28  ;;  %v7809_v15 = vld [vmem:[#allocation10 + $0x1024] ss:$16 sps:$4 sm:$0xff]   ;;  %v8814_v16 = vcombine.high %v8802_v10, %v8802_v10  ;;  %v7813_v21 = vld [vmem:[#allocation10 + $0x1040] ss:$16 sps:$4 sm:$0xff]  }
 0x22a   :  { %v7816_v26 = vld [vmem:[#allocation10 + $0xc48] ss:$16 sps:$4 sm:$0xff]   ;;  %v7821_v27 = vld [vmem:[#allocation10 + $0x1064] ss:$16 sps:$4 sm:$0xff]   ;;  %v7824_v28 = vld [vmem:[#allocation10 + $0xc6c] ss:$16 sps:$4 sm:$0xff]  }
 0x22b   :  { %4161 = vmatpush1.bf16.msra.mxu0 %v7737_v19  ;;  %v7810_v19 = vld [vmem:[#allocation10 + $0xc28] ss:$16 sps:$4 sm:$0xff]   ;;  %v7819_v7 = vld [vmem:[#allocation10 + $0x1060] ss:$16 sps:$4 sm:$0xff]   ;;  %v7827_v29 = vld [vmem:[#allocation10 + $0x1084] ss:$16 sps:$4 sm:$0xff]  }
 0x22c   :  { %4202 = vmatpush1.bf16.msra.mxu1 %v7740_v20  ;;  %4162 = vmatprep.subr.bf16.mxu0 %v7745_v30  ;;  %v7818_v20 = vld [vmem:[#allocation10 + $0xc4c] ss:$16 sps:$4 sm:$0xff]   ;;  %v7822_v17 = vld [vmem:[#allocation10 + $0xc68] ss:$16 sps:$4 sm:$0xff]   ;;  %v7825_v30 = vld [vmem:[#allocation10 + $0x1080] ss:$16 sps:$4 sm:$0xff]  }
 0x22d   :  { %4203 = vmatprep.subr.bf16.mxu1 %v7748_v31  ;;  %v7830_v51 = vld [vmem:[#allocation10 + $0xc8c] ss:$16 sps:$4 sm:$0xff]   ;;  %v7833_v31 = vld [vmem:[#allocation10 + $0x10a4] ss:$16 sps:$4 sm:$0xff]  }
 0x22f   :  { %4163 = vmatpush1.bf16.msra.mxu0 %v7743_v61  ;;  %v7836_v61 = vld [vmem:[#allocation10 + $0xcac] ss:$16 sps:$4 sm:$0xff]  }
 0x230   :  { %4204 = vmatpush1.bf16.msra.mxu1 %v7746_v33  ;;  %4164 = vmatprep.subr.bf16.mxu0 %v7751_v2  ;;  %v7831_v33 = vld [vmem:[#allocation10 + $0x10a0] ss:$16 sps:$4 sm:$0xff]   ;;  %v7834_v2 = vld [vmem:[#allocation10 + $0xca8] ss:$16 sps:$4 sm:$0xff]  }
 0x231   :  { %4205 = vmatprep.subr.bf16.mxu1 %v7754_v34  ;;  %v7839_v34 = vld [vmem:[#allocation10 + $0x10c4] ss:$16 sps:$4 sm:$0xff]  }
 0x233   :  { %4165 = vmatpush1.bf16.msra.mxu0 %v7749_v35  ;;  %v7842_v35 = vld [vmem:[#allocation10 + $0xccc] ss:$16 sps:$4 sm:$0xff]  }
 0x234   :  { %4206 = vmatpush1.bf16.msra.mxu1 %v7752_v36  ;;  %4166 = vmatprep.subr.bf16.mxu0 %v7757_v38 }
 0x235   :  { %4207 = vmatprep.subr.bf16.mxu1 %v7760_v22  ;;  %v7837_v22 = vld [vmem:[#allocation10 + $0x10c0] ss:$16 sps:$4 sm:$0xff]  }
 0x237   :  { %4167 = vmatpush1.bf16.msra.mxu0 %v7755_v39  ;;  %v7840_v39 = vld [vmem:[#allocation10 + $0xcc8] ss:$16 sps:$4 sm:$0xff]  }
 0x238   :  { %4208 = vmatpush1.bf16.msra.mxu1 %v7758_v40  ;;  %4168 = vmatprep.subr.bf16.mxu0 %v7763_v41 }
 0x239   :  { %4209 = vmatprep.subr.bf16.mxu1 %v7766_v42 }
 0x23b   :  { %4169 = vmatpush1.bf16.msra.mxu0 %v7761_v25 }
 0x23c   :  { %4210 = vmatpush1.bf16.msra.mxu1 %v7764_v43  ;;  %4170 = vmatprep.subr.bf16.mxu0 %v7769_v44 }
 0x23d   :  { %4211 = vmatprep.subr.bf16.mxu1 %v7772_v45 }
 0x23f   :  { %4171 = vmatpush1.bf16.msra.mxu0 %v7767_v46 }
 0x240   :  { %4212 = vmatpush1.bf16.msra.mxu1 %v7770_v24  ;;  %4172 = vmatprep.subr.bf16.mxu0 %v7775_v48  ;;  %v7845_v48 = vld [vmem:[#allocation10 + $0x10e4] ss:$16 sps:$4 sm:$0xff]  }
 0x241   :  { %4213 = vmatprep.subr.bf16.mxu1 %v7778_v50  ;;  %v7848_v50 = vld [vmem:[#allocation10 + $0xcec] ss:$16 sps:$4 sm:$0xff]  }
 0x243   :  { %4173 = vmatpush1.bf16.msra.mxu0 %v7773_v23 }
 0x244   :  { %4214 = vmatpush1.bf16.msra.mxu1 %v7776_v13  ;;  %4174 = vmatprep.subr.bf16.mxu0 %v7781_v56  ;;  %v7846_v13 = vld [vmem:[#allocation10 + $0xce8] ss:$16 sps:$4 sm:$0xff]   ;;  %v7854_v56 = vld [vmem:[#allocation10 + $0xd0c] ss:$16 sps:$4 sm:$0xff]  }
 0x245   :  { %4215 = vmatprep.subr.bf16.mxu1 %v7784_v57  ;;  %v7849_v57 = vld [vmem:[#allocation10 + $0x1100] ss:$16 sps:$4 sm:$0xff]  }
 0x247   :  { %4175 = vmatpush1.bf16.msra.mxu0 %v7779_v58  ;;  %v7852_v58 = vld [vmem:[#allocation10 + $0xd08] ss:$16 sps:$4 sm:$0xff]  }
 0x248   :  { %4216 = vmatpush1.bf16.msra.mxu1 %v7782_v59  ;;  %4176 = vmatprep.subr.bf16.mxu0 %v7787_v60  ;;  %v7857_v59 = vld [vmem:[#allocation10 + $0x1124] ss:$16 sps:$4 sm:$0xff]   ;;  %v7860_v60 = vld [vmem:[#allocation10 + $0xd2c] ss:$16 sps:$4 sm:$0xff]  }
 0x249   :  { %4217 = vmatprep.subr.bf16.mxu1 %v7790_v62  ;;  %v7855_v62 = vld [vmem:[#allocation10 + $0x1120] ss:$16 sps:$4 sm:$0xff]  }
 0x24b   :  { %4177 = vmatpush1.bf16.msra.mxu0 %v7785_v6  ;;  %v7858_v6 = vld [vmem:[#allocation10 + $0xd28] ss:$16 sps:$4 sm:$0xff]  }
 0x24c   :  { %4218 = vmatpush1.bf16.msra.mxu1 %v7788_v37  ;;  %4178 = vmatprep.subr.bf16.mxu0 %v7793_v63  ;;  %v7863_v37 = vld [vmem:[#allocation10 + $0x1144] ss:$16 sps:$4 sm:$0xff]   ;;  %v7866_v63 = vld [vmem:[#allocation10 + $0xd4c] ss:$16 sps:$4 sm:$0xff]  }
 0x24d   :  { %4219 = vmatprep.subr.bf16.mxu1 %v7796_v1  ;;  %v7861_v1 = vld [vmem:[#allocation10 + $0x1140] ss:$16 sps:$4 sm:$0xff]  }
 0x24f   :  { %4179 = vmatpush1.bf16.msra.mxu0 %v7791_v4  ;;  %v7864_v4 = vld [vmem:[#allocation10 + $0xd48] ss:$16 sps:$4 sm:$0xff]  }
 0x250   :  { %4220 = vmatpush1.bf16.msra.mxu1 %v7794_v5  ;;  %4230 = vmatprep.subr.bf16.mxu0 %v7803_v8  ;;  %v7869_v5 = vld [vmem:[#allocation10 + $0x1164] ss:$16 sps:$4 sm:$0xff]   ;;  %v7872_v8 = vld [vmem:[#allocation10 + $0xd6c] ss:$16 sps:$4 sm:$0xff]  }
 0x251   :  { %4271 = vmatprep.subr.bf16.mxu1 %v7806_v9  ;;  %v7867_v9 = vld [vmem:[#allocation10 + $0x1160] ss:$16 sps:$4 sm:$0xff]  }
 0x252   :  { %4181 = vmatmul.mubr.bf16.vlgmr.msra.gmra.mrb[24].mxu0 %v8806_v12 }
 0x253   :  { %4222 = vmatmul.mubr.bf16.vlgmr.msra.gmra.mrb[24].mxu1 %v8810_v14  ;;  %4231 = vmatpush1.bf16.msra.mxu0 %v7801_v11  ;;  %v7870_v11 = vld [vmem:[#allocation10 + $0xd68] ss:$16 sps:$4 sm:$0xff]  }
 0x254   :  { %4272 = vmatpush1.bf16.msra.mxu1 %v7804_v49  ;;  %4232 = vmatprep.subr.bf16.mxu0 %v7809_v15  ;;  %v7875_v49 = vld [vmem:[#allocation10 + $0x1184] ss:$16 sps:$4 sm:$0xff]   ;;  %v7878_v15 = vld [vmem:[#allocation10 + $0xd8c] ss:$16 sps:$4 sm:$0xff]  }
 0x255   :  { %4273 = vmatprep.subr.bf16.mxu1 %v7812_v53  ;;  %4262 = vmatprep.mubr.bf16.mxu0 %v8814_v16  ;;  %v7873_v53 = vld [vmem:[#allocation10 + $0x1180] ss:$16 sps:$4 sm:$0xff]  }
 0x256   :  { %4303 = vmatprep.mubr.bf16.mxu1 %v8786_v54  ;;  %v7828_v54 = vld [vmem:[#allocation10 + $0xc88] ss:$16 sps:$4 sm:$0xff]  }
 0x257   :  { %4233 = vmatpush1.bf16.msra.mxu0 %v7807_v47  ;;  %v7876_v47 = vld [vmem:[#allocation10 + $0xd88] ss:$16 sps:$4 sm:$0xff]  }
 0x258   :  { %4274 = vmatpush1.bf16.msra.mxu1 %v7810_v19  ;;  %4234 = vmatprep.subr.bf16.mxu0 %v7815_v52  ;;  %v7881_v19 = vld [vmem:[#allocation10 + $0x11a4] ss:$16 sps:$4 sm:$0xff]   ;;  %v7884_v52 = vld [vmem:[#allocation10 + $0xdac] ss:$16 sps:$4 sm:$0xff]  }
 0x259   :  { %4275 = vmatprep.subr.bf16.mxu1 %v7818_v20  ;;  %v7879_v20 = vld [vmem:[#allocation10 + $0x11a0] ss:$16 sps:$4 sm:$0xff]  }
 0x25b   :  { %4235 = vmatpush1.bf16.msra.mxu0 %v7813_v21  ;;  %v7882_v21 = vld [vmem:[#allocation10 + $0xda8] ss:$16 sps:$4 sm:$0xff]  }
 0x25c   :  { %4276 = vmatpush1.bf16.msra.mxu1 %v7816_v26  ;;  %4236 = vmatprep.subr.bf16.mxu0 %v7821_v27  ;;  %v7887_v26 = vld [vmem:[#allocation10 + $0x11c4] ss:$16 sps:$4 sm:$0xff]   ;;  %v7890_v27 = vld [vmem:[#allocation10 + $0xdcc] ss:$16 sps:$4 sm:$0xff]  }
 0x25d   :  { %4277 = vmatprep.subr.bf16.mxu1 %v7824_v28  ;;  %v7885_v28 = vld [vmem:[#allocation10 + $0x11c0] ss:$16 sps:$4 sm:$0xff]  }
 0x25f   :  { %4237 = vmatpush1.bf16.msra.mxu0 %v7819_v7  ;;  %v7888_v7 = vld [vmem:[#allocation10 + $0xdc8] ss:$16 sps:$4 sm:$0xff]  }
 0x260   :  { %4278 = vmatpush1.bf16.msra.mxu1 %v7822_v17  ;;  %4238 = vmatprep.subr.bf16.mxu0 %v7827_v29  ;;  %v7893_v17 = vld [vmem:[#allocation10 + $0x11e4] ss:$16 sps:$4 sm:$0xff]   ;;  %v7896_v29 = vld [vmem:[#allocation10 + $0xdec] ss:$16 sps:$4 sm:$0xff]  }
 0x261   :  { %4279 = vmatprep.subr.bf16.mxu1 %v7830_v51  ;;  %v7891_v51 = vld [vmem:[#allocation10 + $0x11e0] ss:$16 sps:$4 sm:$0xff]  }
 0x263   :  { %4239 = vmatpush1.bf16.msra.mxu0 %v7825_v30  ;;  %v7894_v30 = vld [vmem:[#allocation10 + $0xde8] ss:$16 sps:$4 sm:$0xff]  }
 0x264   :  { %4280 = vmatpush1.bf16.msra.mxu1 %v7828_v54  ;;  %4240 = vmatprep.subr.bf16.mxu0 %v7833_v31  ;;  %v7901_v54 = vld [vmem:[#allocation10 + $0xe0c] ss:$16 sps:$4 sm:$0xff]  }
 0x265   :  { %4281 = vmatprep.subr.bf16.mxu1 %v7836_v61  ;;  %v2760_v36 = vpop.f32.mrb[12].mxu0  ;;  %v7904_v31 = vld [vmem:[#allocation10 + $0x100c] ss:$16 sps:$4 sm:$0xff]   ;;  %v8828_v61 = vcombine.low %v8802_v10, %v8802_v10 }
 0x266   :  { %v2801_v38 = vpop.f32.mrb[12].mxu1  ;;  %v2761_v40 = vadd.f32 %v2760_v36, %v8773_v0  ;;  %v2762_v41 = vpop.f32.mrb[13].mxu0  ;;  %v7843_v0 = vld [vmem:[#allocation10 + $0x10e0] ss:$16 sps:$4 sm:$0xff]   ;;  %v7905_v36 = vld [vmem:[#allocation10 + $0xe28] ss:$16 sps:$4 sm:$0xff]  }
 0x267   :  { %v2803_v42 = vpop.f32.mrb[13].mxu1  ;;  %v2763_v25 = vadd.f32 %v2762_v41, %v8778_v3  ;;  %v2764_v43 = vpop.f32.mrb[14].mxu0  ;;  %4241 = vmatpush1.bf16.msra.mxu0 %v7831_v33  ;;  %v7851_v3 = vld [vmem:[#allocation10 + $0x1104] ss:$16 sps:$4 sm:$0xff]   ;;  %v7899_v33 = vld [vmem:[#allocation10 + $0xe08] ss:$16 sps:$4 sm:$0xff]  }
 0x268   :  { %v2805_v44 = vpop.f32.mrb[14].mxu1  ;;  %4282 = vmatpush1.bf16.msra.mxu1 %v7834_v2  ;;  %v8822_v45 = vadd.f32 %v2801_v38, %v2761_v40  ;;  %v2765_v46 = vpop.f32.mrb[15].mxu0  ;;  %4242 = vmatprep.subr.bf16.mxu0 %v7839_v34  ;;  %v7902_v2 = vld [vmem:[#allocation10 + $0x1008] ss:$16 sps:$4 sm:$0xff]   ;;  %v7907_v34 = vld [vmem:[#allocation10 + $0xe2c] ss:$16 sps:$4 sm:$0xff]  }
 0x269   :  { %v2806_v24 = vpop.f32.mrb[15].mxu1  ;;  %4283 = vmatprep.subr.bf16.mxu1 %v7842_v35  ;;  %v8824_v23 = vadd.f32 %v2803_v42, %v2763_v25  ;;  %v7910_v35 = vld [vmem:[#allocation10 + $0x102c] ss:$16 sps:$4 sm:$0xff]   ;;  %v7908_v38 = vld [vmem:[#allocation10 + $0x1028] ss:$16 sps:$4 sm:$0xff]  }
 0x26a   :  { %v7913_v10 = vld [vmem:[#allocation10 + $0xe4c] ss:$16 sps:$4 sm:$0xff]   ;;  %v7914_v40 = vld [vmem:[#allocation10 + $0x1048] ss:$16 sps:$4 sm:$0xff]  }
 0x26b   :  { %4243 = vmatpush1.bf16.msra.mxu0 %v7837_v22  ;;  %v7916_v22 = vld [vmem:[#allocation10 + $0x104c] ss:$16 sps:$4 sm:$0xff]   ;;  %v7917_v42 = vld [vmem:[#allocation10 + $0xe68] ss:$16 sps:$4 sm:$0xff]  }
 0x26c   :  { %4284 = vmatpush1.bf16.msra.mxu1 %v7840_v39  ;;  %4244 = vmatprep.subr.bf16.mxu0 %v7845_v48  ;;  %v7911_v39 = vld [vmem:[#allocation10 + $0xe48] ss:$16 sps:$4 sm:$0xff]   ;;  %v7919_v41 = vld [vmem:[#allocation10 + $0xe6c] ss:$16 sps:$4 sm:$0xff]  }
 0x26d   :  { %4285 = vmatprep.subr.bf16.mxu1 %v7848_v50  ;;  %v7920_v25 = vld [vmem:[#allocation10 + $0x1068] ss:$16 sps:$4 sm:$0xff]   ;;  %v7925_v43 = vld [vmem:[#allocation10 + $0xe8c] ss:$16 sps:$4 sm:$0xff]  }
 0x26e   :  { %v7928_v44 = vld [vmem:[#allocation10 + $0x108c] ss:$16 sps:$4 sm:$0xff]   ;;  %v7929_v48 = vld [vmem:[#allocation10 + $0xea8] ss:$16 sps:$4 sm:$0xff]  }
 0x26f   :  { %4245 = vmatpush1.bf16.msra.mxu0 %v7843_v0  ;;  %v7931_v46 = vld [vmem:[#allocation10 + $0xeac] ss:$16 sps:$4 sm:$0xff]   ;;  %v7932_v50 = vld [vmem:[#allocation10 + $0x10a8] ss:$16 sps:$4 sm:$0xff]  }
 0x270   :  { %4286 = vmatpush1.bf16.msra.mxu1 %v7846_v13  ;;  %4246 = vmatprep.subr.bf16.mxu0 %v7851_v3  ;;  %v7934_v24 = vld [vmem:[#allocation10 + $0x10ac] ss:$16 sps:$4 sm:$0xff]  }
 0x271   :  { %4287 = vmatprep.subr.bf16.mxu1 %v7854_v56  ;;  %v7937_v0 = vld [vmem:[#allocation10 + $0xecc] ss:$16 sps:$4 sm:$0xff]  }
 0x272   :  { %v7940_v13 = vld [vmem:[#allocation10 + $0x10cc] ss:$16 sps:$4 sm:$0xff]  }
 0x273   :  { %4247 = vmatpush1.bf16.msra.mxu0 %v7849_v57 }
 0x274   :  { %4288 = vmatpush1.bf16.msra.mxu1 %v7852_v58  ;;  %4248 = vmatprep.subr.bf16.mxu0 %v7857_v59 }
 0x275   :  { %4289 = vmatprep.subr.bf16.mxu1 %v7860_v60 }
 0x277   :  { %4249 = vmatpush1.bf16.msra.mxu0 %v7855_v62 }
 0x278   :  { %4290 = vmatpush1.bf16.msra.mxu1 %v7858_v6  ;;  %4250 = vmatprep.subr.bf16.mxu0 %v7863_v37 }
 0x279   :  { %4291 = vmatprep.subr.bf16.mxu1 %v7866_v63 }
 0x27b   :  { %4251 = vmatpush1.bf16.msra.mxu0 %v7861_v1  ;;  %v7935_v1 = vld [vmem:[#allocation10 + $0xec8] ss:$16 sps:$4 sm:$0xff]  }
 0x27c   :  { %4292 = vmatpush1.bf16.msra.mxu1 %v7864_v4  ;;  %4252 = vmatprep.subr.bf16.mxu0 %v7869_v5  ;;  %v7938_v4 = vld [vmem:[#allocation10 + $0x10c8] ss:$16 sps:$4 sm:$0xff]  }
 0x27d   :  { %4293 = vmatprep.subr.bf16.mxu1 %v7872_v8  ;;  %v7946_v8 = vld [vmem:[#allocation10 + $0x10ec] ss:$16 sps:$4 sm:$0xff]  }
 0x27f   :  { %4253 = vmatpush1.bf16.msra.mxu0 %v7867_v9  ;;  %v7941_v9 = vld [vmem:[#allocation10 + $0xee8] ss:$16 sps:$4 sm:$0xff]  }
 0x280   :  { %4294 = vmatpush1.bf16.msra.mxu1 %v7870_v11  ;;  %4254 = vmatprep.subr.bf16.mxu0 %v7875_v49  ;;  %v7952_v11 = vld [vmem:[#allocation10 + $0x110c] ss:$16 sps:$4 sm:$0xff]   ;;  %v7947_v49 = vld [vmem:[#allocation10 + $0xf08] ss:$16 sps:$4 sm:$0xff]  }
 0x281   :  { %4295 = vmatprep.subr.bf16.mxu1 %v7878_v15  ;;  %v7950_v15 = vld [vmem:[#allocation10 + $0x1108] ss:$16 sps:$4 sm:$0xff]  }
 0x283   :  { %4255 = vmatpush1.bf16.msra.mxu0 %v7873_v53  ;;  %v7955_v53 = vld [vmem:[#allocation10 + $0xf2c] ss:$16 sps:$4 sm:$0xff]  }
 0x284   :  { %4296 = vmatpush1.bf16.msra.mxu1 %v7876_v47  ;;  %4256 = vmatprep.subr.bf16.mxu0 %v7881_v19  ;;  %v7958_v47 = vld [vmem:[#allocation10 + $0x112c] ss:$16 sps:$4 sm:$0xff]   ;;  %v7953_v19 = vld [vmem:[#allocation10 + $0xf28] ss:$16 sps:$4 sm:$0xff]  }
 0x285   :  { %4297 = vmatprep.subr.bf16.mxu1 %v7884_v52  ;;  %v7956_v52 = vld [vmem:[#allocation10 + $0x1128] ss:$16 sps:$4 sm:$0xff]  }
 0x287   :  { %4257 = vmatpush1.bf16.msra.mxu0 %v7879_v20  ;;  %v7961_v20 = vld [vmem:[#allocation10 + $0xf4c] ss:$16 sps:$4 sm:$0xff]  }
 0x288   :  { %4298 = vmatpush1.bf16.msra.mxu1 %v7882_v21  ;;  %4258 = vmatprep.subr.bf16.mxu0 %v7887_v26  ;;  %v7964_v21 = vld [vmem:[#allocation10 + $0x114c] ss:$16 sps:$4 sm:$0xff]   ;;  %v7959_v26 = vld [vmem:[#allocation10 + $0xf48] ss:$16 sps:$4 sm:$0xff]  }
 0x289   :  { %4299 = vmatprep.subr.bf16.mxu1 %v7890_v27  ;;  %v7962_v27 = vld [vmem:[#allocation10 + $0x1148] ss:$16 sps:$4 sm:$0xff]  }
 0x28b   :  { %4259 = vmatpush1.bf16.msra.mxu0 %v7885_v28  ;;  %v7967_v28 = vld [vmem:[#allocation10 + $0xf6c] ss:$16 sps:$4 sm:$0xff]  }
 0x28c   :  { %4300 = vmatpush1.bf16.msra.mxu1 %v7888_v7  ;;  %4260 = vmatprep.subr.bf16.mxu0 %v7893_v17  ;;  %v7970_v7 = vld [vmem:[#allocation10 + $0x116c] ss:$16 sps:$4 sm:$0xff]   ;;  %v7965_v17 = vld [vmem:[#allocation10 + $0xf68] ss:$16 sps:$4 sm:$0xff]  }
 0x28d   :  { %4301 = vmatprep.subr.bf16.mxu1 %v7896_v29  ;;  %v7968_v29 = vld [vmem:[#allocation10 + $0x1168] ss:$16 sps:$4 sm:$0xff]  }
 0x28f   :  { %4261 = vmatpush1.bf16.msra.mxu0 %v7891_v51  ;;  %v7973_v51 = vld [vmem:[#allocation10 + $0xf8c] ss:$16 sps:$4 sm:$0xff]  }
 0x290   :  { %4302 = vmatpush1.bf16.msra.mxu1 %v7894_v30  ;;  %4312 = vmatprep.subr.bf16.mxu0 %v7901_v54  ;;  %v7976_v30 = vld [vmem:[#allocation10 + $0x118c] ss:$16 sps:$4 sm:$0xff]   ;;  %v7971_v54 = vld [vmem:[#allocation10 + $0xf88] ss:$16 sps:$4 sm:$0xff]  }
 0x291   :  { %4353 = vmatprep.subr.bf16.mxu1 %v7904_v31  ;;  %v7974_v31 = vld [vmem:[#allocation10 + $0x1188] ss:$16 sps:$4 sm:$0xff]  }
 0x292   :  { %4263 = vmatmul.mubr.bf16.vlgmr.msra.gmra.mrb[28].mxu0 %v8828_v61 }
 0x293   :  { %4304 = vmatmul.mubr.bf16.vlgmr.msra.gmra.mrb[28].mxu1 %v8806_v12  ;;  %4313 = vmatpush1.bf16.msra.mxu0 %v7899_v33  ;;  %v7922_v12 = vld [vmem:[#allocation10 + $0x106c] ss:$16 sps:$4 sm:$0xff]  }
 0x294   :  { %4354 = vmatpush1.bf16.msra.mxu1 %v7902_v2  ;;  %4314 = vmatprep.subr.bf16.mxu0 %v7907_v34  ;;  %v7979_v33 = vld [vmem:[#allocation10 + $0xfac] ss:$16 sps:$4 sm:$0xff]   ;;  %v7977_v34 = vld [vmem:[#allocation10 + $0xfa8] ss:$16 sps:$4 sm:$0xff]  }
 0x295   :  { %4355 = vmatprep.subr.bf16.mxu1 %v7910_v35  ;;  %4344 = vmatprep.mubr.bf16.mxu0 %v8790_v55  ;;  %v7923_v55 = vld [vmem:[#allocation10 + $0xe88] ss:$16 sps:$4 sm:$0xff]   ;;  %v7982_v2 = vld [vmem:[#allocation10 + $0x11ac] ss:$16 sps:$4 sm:$0xff]  }
 0x296   :  { %4385 = vmatprep.mubr.bf16.mxu1 %v8814_v16  ;;  %v7926_v16 = vld [vmem:[#allocation10 + $0x1088] ss:$16 sps:$4 sm:$0xff]  }
 0x297   :  { %4315 = vmatpush1.bf16.msra.mxu0 %v7905_v36  ;;  %v7980_v35 = vld [vmem:[#allocation10 + $0x11a8] ss:$16 sps:$4 sm:$0xff]   ;;  %v7985_v36 = vld [vmem:[#allocation10 + $0xfcc] ss:$16 sps:$4 sm:$0xff]  }
 0x298   :  { %4356 = vmatpush1.bf16.msra.mxu1 %v7908_v38  ;;  %4316 = vmatprep.subr.bf16.mxu0 %v7913_v10  ;;  %v7988_v38 = vld [vmem:[#allocation10 + $0x11cc] ss:$16 sps:$4 sm:$0xff]   ;;  %v7983_v10 = vld [vmem:[#allocation10 + $0xfc8] ss:$16 sps:$4 sm:$0xff]  }
 0x299   :  { %4357 = vmatprep.subr.bf16.mxu1 %v7916_v22  ;;  %v7986_v22 = vld [vmem:[#allocation10 + $0x11c8] ss:$16 sps:$4 sm:$0xff]  }
 0x29b   :  { %4317 = vmatpush1.bf16.msra.mxu0 %v7911_v39  ;;  %v7991_v39 = vld [vmem:[#allocation10 + $0xfec] ss:$16 sps:$4 sm:$0xff]  }
 0x29c   :  { %4358 = vmatpush1.bf16.msra.mxu1 %v7914_v40  ;;  %4318 = vmatprep.subr.bf16.mxu0 %v7919_v41  ;;  %v7994_v40 = vld [vmem:[#allocation10 + $0x11ec] ss:$16 sps:$4 sm:$0xff]   ;;  %v7989_v41 = vld [vmem:[#allocation10 + $0xfe8] ss:$16 sps:$4 sm:$0xff]  }
 0x29d   :  { %4359 = vmatprep.subr.bf16.mxu1 %v7922_v12  ;;  %v7992_v12 = vld [vmem:[#allocation10 + $0x11e8] ss:$16 sps:$4 sm:$0xff]  }
 0x29f   :  { %4319 = vmatpush1.bf16.msra.mxu0 %v7917_v42  ;;  %v7997_v42 = vld [vmem:[#allocation10 + $0x1204] ss:$16 sps:$4 sm:$0xff]  }
 0x2a0   :  { %4360 = vmatpush1.bf16.msra.mxu1 %v7920_v25  ;;  %4320 = vmatprep.subr.bf16.mxu0 %v7925_v43  ;;  %v8000_v25 = vld [vmem:[#allocation10 + $0x1404] ss:$16 sps:$4 sm:$0xff]   ;;  %v8846_v43 = vld [vmem:[#allocation8] sm:$0xff] }
 0x2a1   :  { %4361 = vmatprep.subr.bf16.mxu1 %v7928_v44  ;;  %v8848_v44 = vld [vmem:[#allocation8 + $0x8] sm:$0xff] }
 0x2a3   :  { %4321 = vmatpush1.bf16.msra.mxu0 %v7923_v55  ;;  %v7995_v55 = vld [vmem:[#allocation10 + $0x1200] ss:$16 sps:$4 sm:$0xff]  }
 0x2a4   :  { %4362 = vmatpush1.bf16.msra.mxu1 %v7926_v16  ;;  %4322 = vmatprep.subr.bf16.mxu0 %v7931_v46  ;;  %v7998_v16 = vld [vmem:[#allocation10 + $0x1400] ss:$16 sps:$4 sm:$0xff]   ;;  %v8003_v46 = vld [vmem:[#allocation10 + $0x1224] ss:$16 sps:$4 sm:$0xff]  }
 0x2a5   :  { %4363 = vmatprep.subr.bf16.mxu1 %v7934_v24  ;;  %v2842_v3 = vpop.f32.mrb[16].mxu0  ;;  %v8006_v24 = vld [vmem:[#allocation10 + $0x1424] ss:$16 sps:$4 sm:$0xff]  }
 0x2a6   :  { %v2883_v56 = vpop.f32.mrb[16].mxu1  ;;  %v8835_v57 = vadd.f32 %v2842_v3, %v8822_v45  ;;  %v2844_v59 = vpop.f32.mrb[17].mxu0  ;;  %v8009_v3 = vld [vmem:[#allocation10 + $0x1244] ss:$16 sps:$4 sm:$0xff]  }
 0x2a7   :  { %v8838_v58 = vadd.f32 %v2883_v56, %v8798_v18  ;;  %v2885_v60 = vpop.f32.mrb[17].mxu1  ;;  %v8841_v62 = vadd.f32 %v2844_v59, %v8824_v23  ;;  %v2846_v37 = vpop.f32.mrb[18].mxu0  ;;  %4323 = vmatpush1.bf16.msra.mxu0 %v7929_v48  ;;  %v7943_v18 = vld [vmem:[#allocation10 + $0xeec] ss:$16 sps:$4 sm:$0xff]   ;;  %v7944_v23 = vld [vmem:[#allocation10 + $0x10e8] ss:$16 sps:$4 sm:$0xff]   ;;  %v8852_v48 = vcombine.high %v8846_v43, %v8846_v43 }
 0x2a8   :  { %v8844_v6 = vadd.f32 %v2885_v60, %v8800_v32  ;;  %v2887_v63 = vpop.f32.mrb[18].mxu1  ;;  %4364 = vmatpush1.bf16.msra.mxu1 %v7932_v50  ;;  %v2847_v5 = vpop.f32.mrb[19].mxu0  ;;  %4324 = vmatprep.subr.bf16.mxu0 %v7937_v0  ;;  %v7949_v32 = vld [vmem:[#allocation10 + $0xf0c] ss:$16 sps:$4 sm:$0xff]   ;;  %v8856_v50 = vcombine.high %v8848_v44, %v8848_v44  ;;  %v8001_v0 = vld [vmem:[#allocation10 + $0x1220] ss:$16 sps:$4 sm:$0xff]  }
 0x2a9   :  { %v2888_v45 = vpop.f32.mrb[19].mxu1  ;;  %4365 = vmatprep.subr.bf16.mxu1 %v7940_v13  ;;  %v8004_v13 = vld [vmem:[#allocation10 + $0x1420] ss:$16 sps:$4 sm:$0xff]   ;;  %v8012_v56 = vld [vmem:[#allocation10 + $0x1444] ss:$16 sps:$4 sm:$0xff]  }
 0x2aa   :  { %v8007_v59 = vld [vmem:[#allocation10 + $0x1240] ss:$16 sps:$4 sm:$0xff]  }
 0x2ab   :  { %4325 = vmatpush1.bf16.msra.mxu0 %v7935_v1  ;;  %v8010_v60 = vld [vmem:[#allocation10 + $0x1440] ss:$16 sps:$4 sm:$0xff]   ;;  %v8021_v1 = vld [vmem:[#allocation10 + $0x1284] ss:$16 sps:$4 sm:$0xff]  }
 0x2ac   :  { %4366 = vmatpush1.bf16.msra.mxu1 %v7938_v4  ;;  %4326 = vmatprep.subr.bf16.mxu0 %v7943_v18  ;;  %v8013_v37 = vld [vmem:[#allocation10 + $0x1260] ss:$16 sps:$4 sm:$0xff]   ;;  %v8024_v4 = vld [vmem:[#allocation10 + $0x1484] ss:$16 sps:$4 sm:$0xff]  }
 0x2ad   :  { %4367 = vmatprep.subr.bf16.mxu1 %v7946_v8  ;;  %v8016_v63 = vld [vmem:[#allocation10 + $0x1460] ss:$16 sps:$4 sm:$0xff]   ;;  %v8027_v18 = vld [vmem:[#allocation10 + $0x12a4] ss:$16 sps:$4 sm:$0xff]  }
 0x2ae   :  { %v8019_v5 = vld [vmem:[#allocation10 + $0x1280] ss:$16 sps:$4 sm:$0xff]   ;;  %v8030_v8 = vld [vmem:[#allocation10 + $0x14a4] ss:$16 sps:$4 sm:$0xff]  }
 0x2af   :  { %4327 = vmatpush1.bf16.msra.mxu0 %v7941_v9  ;;  %v8022_v45 = vld [vmem:[#allocation10 + $0x1480] ss:$16 sps:$4 sm:$0xff]  }
 0x2b0   :  { %4368 = vmatpush1.bf16.msra.mxu1 %v7944_v23  ;;  %4328 = vmatprep.subr.bf16.mxu0 %v7949_v32  ;;  %v8025_v9 = vld [vmem:[#allocation10 + $0x12a0] ss:$16 sps:$4 sm:$0xff]   ;;  %v8033_v32 = vld [vmem:[#allocation10 + $0x12c4] ss:$16 sps:$4 sm:$0xff]  }
 0x2b1   :  { %4369 = vmatprep.subr.bf16.mxu1 %v7952_v11  ;;  %v8028_v23 = vld [vmem:[#allocation10 + $0x14a0] ss:$16 sps:$4 sm:$0xff]   ;;  %v8036_v11 = vld [vmem:[#allocation10 + $0x14c4] ss:$16 sps:$4 sm:$0xff]  }
 0x2b3   :  { %4329 = vmatpush1.bf16.msra.mxu0 %v7947_v49 }
 0x2b4   :  { %4370 = vmatpush1.bf16.msra.mxu1 %v7950_v15  ;;  %4330 = vmatprep.subr.bf16.mxu0 %v7955_v53 }
 0x2b5   :  { %4371 = vmatprep.subr.bf16.mxu1 %v7958_v47 }
 0x2b7   :  { %4331 = vmatpush1.bf16.msra.mxu0 %v7953_v19 }
 0x2b8   :  { %4372 = vmatpush1.bf16.msra.mxu1 %v7956_v52  ;;  %4332 = vmatprep.subr.bf16.mxu0 %v7961_v20 }
 0x2b9   :  { %4373 = vmatprep.subr.bf16.mxu1 %v7964_v21 }
 0x2bb   :  { %4333 = vmatpush1.bf16.msra.mxu0 %v7959_v26  ;;  %v8031_v26 = vld [vmem:[#allocation10 + $0x12c0] ss:$16 sps:$4 sm:$0xff]  }
 0x2bc   :  { %4374 = vmatpush1.bf16.msra.mxu1 %v7962_v27  ;;  %4334 = vmatprep.subr.bf16.mxu0 %v7967_v28  ;;  %v8034_v27 = vld [vmem:[#allocation10 + $0x14c0] ss:$16 sps:$4 sm:$0xff]  }
 0x2bd   :  { %4375 = vmatprep.subr.bf16.mxu1 %v7970_v7 }
 0x2bf   :  { %4335 = vmatpush1.bf16.msra.mxu0 %v7965_v17 }
 0x2c0   :  { %4376 = vmatpush1.bf16.msra.mxu1 %v7968_v29  ;;  %4336 = vmatprep.subr.bf16.mxu0 %v7973_v51  ;;  %v8039_v29 = vld [vmem:[#allocation10 + $0x12e4] ss:$16 sps:$4 sm:$0xff]  }
 0x2c1   :  { %4377 = vmatprep.subr.bf16.mxu1 %v7976_v30  ;;  %v8042_v51 = vld [vmem:[#allocation10 + $0x14e4] ss:$16 sps:$4 sm:$0xff]  }
 0x2c3   :  { %4337 = vmatpush1.bf16.msra.mxu0 %v7971_v54  ;;  %v8045_v54 = vld [vmem:[#allocation10 + $0x1304] ss:$16 sps:$4 sm:$0xff]  }
 0x2c4   :  { %4378 = vmatpush1.bf16.msra.mxu1 %v7974_v31  ;;  %4338 = vmatprep.subr.bf16.mxu0 %v7979_v33  ;;  %v8048_v31 = vld [vmem:[#allocation10 + $0x1504] ss:$16 sps:$4 sm:$0xff]   ;;  %v8043_v33 = vld [vmem:[#allocation10 + $0x1300] ss:$16 sps:$4 sm:$0xff]  }
 0x2c5   :  { %4379 = vmatprep.subr.bf16.mxu1 %v7982_v2  ;;  %v8046_v2 = vld [vmem:[#allocation10 + $0x1500] ss:$16 sps:$4 sm:$0xff]  }
 0x2c7   :  { %4339 = vmatpush1.bf16.msra.mxu0 %v7977_v34  ;;  %v8051_v34 = vld [vmem:[#allocation10 + $0x1324] ss:$16 sps:$4 sm:$0xff]  }
 0x2c8   :  { %4380 = vmatpush1.bf16.msra.mxu1 %v7980_v35  ;;  %4340 = vmatprep.subr.bf16.mxu0 %v7985_v36  ;;  %v8054_v35 = vld [vmem:[#allocation10 + $0x1524] ss:$16 sps:$4 sm:$0xff]   ;;  %v8049_v36 = vld [vmem:[#allocation10 + $0x1320] ss:$16 sps:$4 sm:$0xff]  }
 0x2c9   :  { %4381 = vmatprep.subr.bf16.mxu1 %v7988_v38  ;;  %v8052_v38 = vld [vmem:[#allocation10 + $0x1520] ss:$16 sps:$4 sm:$0xff]  }
 0x2cb   :  { %4341 = vmatpush1.bf16.msra.mxu0 %v7983_v10  ;;  %v8057_v10 = vld [vmem:[#allocation10 + $0x1344] ss:$16 sps:$4 sm:$0xff]  }
 0x2cc   :  { %4382 = vmatpush1.bf16.msra.mxu1 %v7986_v22  ;;  %4342 = vmatprep.subr.bf16.mxu0 %v7991_v39  ;;  %v8060_v22 = vld [vmem:[#allocation10 + $0x1544] ss:$16 sps:$4 sm:$0xff]   ;;  %v8055_v39 = vld [vmem:[#allocation10 + $0x1340] ss:$16 sps:$4 sm:$0xff]  }
 0x2cd   :  { %4383 = vmatprep.subr.bf16.mxu1 %v7994_v40  ;;  %v8058_v40 = vld [vmem:[#allocation10 + $0x1540] ss:$16 sps:$4 sm:$0xff]  }
 0x2cf   :  { %4343 = vmatpush1.bf16.msra.mxu0 %v7989_v41  ;;  %v8063_v41 = vld [vmem:[#allocation10 + $0x1364] ss:$16 sps:$4 sm:$0xff]  }
 0x2d0   :  { %4384 = vmatpush1.bf16.msra.mxu1 %v7992_v12  ;;  %5574 = vmatprep.subr.bf16.mxu0 %v7997_v42  ;;  %v8066_v12 = vld [vmem:[#allocation10 + $0x1564] ss:$16 sps:$4 sm:$0xff]   ;;  %v8061_v42 = vld [vmem:[#allocation10 + $0x1360] ss:$16 sps:$4 sm:$0xff]  }
 0x2d1   :  { %5615 = vmatprep.subr.bf16.mxu1 %v8000_v25  ;;  %v8064_v25 = vld [vmem:[#allocation10 + $0x1560] ss:$16 sps:$4 sm:$0xff]  }
 0x2d2   :  { %4345 = vmatmul.mubr.bf16.vlgmr.msra.gmra.mrb[32].mxu0 %v8810_v14  ;;  %v8015_v14 = vld [vmem:[#allocation10 + $0x1264] ss:$16 sps:$4 sm:$0xff]  }
 0x2d3   :  { %4386 = vmatmul.mubr.bf16.vlgmr.msra.gmra.mrb[32].mxu1 %v8828_v61  ;;  %5575 = vmatpush1.bf16.msra.mxu0 %v7995_v55  ;;  %v8018_v61 = vld [vmem:[#allocation10 + $0x1464] ss:$16 sps:$4 sm:$0xff]  }
 0x2d4   :  { %5616 = vmatpush1.bf16.msra.mxu1 %v7998_v16  ;;  %5576 = vmatprep.subr.bf16.mxu0 %v8003_v46  ;;  %v8069_v55 = vld [vmem:[#allocation10 + $0x1384] ss:$16 sps:$4 sm:$0xff]   ;;  %v8067_v46 = vld [vmem:[#allocation10 + $0x1380] ss:$16 sps:$4 sm:$0xff]  }
 0x2d5   :  { %5617 = vmatprep.subr.bf16.mxu1 %v8006_v24  ;;  %5606 = vmatprep.mubr.bf16.mxu0 %v8852_v48  ;;  %v8072_v16 = vld [vmem:[#allocation10 + $0x1584] ss:$16 sps:$4 sm:$0xff]   ;;  %v8070_v24 = vld [vmem:[#allocation10 + $0x1580] ss:$16 sps:$4 sm:$0xff]  }
 0x2d6   :  { %5647 = vmatprep.mubr.bf16.mxu1 %v8856_v50 }
 0x2d7   :  { %5577 = vmatpush1.bf16.msra.mxu0 %v8001_v0  ;;  %v8075_v0 = vld [vmem:[#allocation10 + $0x13a4] ss:$16 sps:$4 sm:$0xff]  }
 0x2d8   :  { %5618 = vmatpush1.bf16.msra.mxu1 %v8004_v13  ;;  %5578 = vmatprep.subr.bf16.mxu0 %v8009_v3  ;;  %v8078_v13 = vld [vmem:[#allocation10 + $0x15a4] ss:$16 sps:$4 sm:$0xff]   ;;  %v8073_v3 = vld [vmem:[#allocation10 + $0x13a0] ss:$16 sps:$4 sm:$0xff]  }
 0x2d9   :  { %5619 = vmatprep.subr.bf16.mxu1 %v8012_v56  ;;  %v8076_v56 = vld [vmem:[#allocation10 + $0x15a0] ss:$16 sps:$4 sm:$0xff]  }
 0x2db   :  { %5579 = vmatpush1.bf16.msra.mxu0 %v8007_v59  ;;  %v8081_v59 = vld [vmem:[#allocation10 + $0x13c4] ss:$16 sps:$4 sm:$0xff]  }
 0x2dc   :  { %5620 = vmatpush1.bf16.msra.mxu1 %v8010_v60  ;;  %5580 = vmatprep.subr.bf16.mxu0 %v8015_v14  ;;  %v8084_v60 = vld [vmem:[#allocation10 + $0x15c4] ss:$16 sps:$4 sm:$0xff]   ;;  %v8079_v14 = vld [vmem:[#allocation10 + $0x13c0] ss:$16 sps:$4 sm:$0xff]  }
 0x2dd   :  { %5621 = vmatprep.subr.bf16.mxu1 %v8018_v61  ;;  %v8082_v61 = vld [vmem:[#allocation10 + $0x15c0] ss:$16 sps:$4 sm:$0xff]  }
 0x2df   :  { %5581 = vmatpush1.bf16.msra.mxu0 %v8013_v37  ;;  %v8087_v37 = vld [vmem:[#allocation10 + $0x13e4] ss:$16 sps:$4 sm:$0xff]  }
 0x2e0   :  { %5622 = vmatpush1.bf16.msra.mxu1 %v8016_v63  ;;  %5582 = vmatprep.subr.bf16.mxu0 %v8021_v1  ;;  %v8090_v63 = vld [vmem:[#allocation10 + $0x15e4] ss:$16 sps:$4 sm:$0xff]   ;;  %v8085_v1 = vld [vmem:[#allocation10 + $0x13e0] ss:$16 sps:$4 sm:$0xff]  }
 0x2e1   :  { %5623 = vmatprep.subr.bf16.mxu1 %v8024_v4  ;;  %v8088_v4 = vld [vmem:[#allocation10 + $0x15e0] ss:$16 sps:$4 sm:$0xff]  }
 0x2e3   :  { %5583 = vmatpush1.bf16.msra.mxu0 %v8019_v5  ;;  %v8097_v5 = vld [vmem:[#allocation10 + $0x1604] ss:$16 sps:$4 sm:$0xff]  }
 0x2e4   :  { %5624 = vmatpush1.bf16.msra.mxu1 %v8022_v45  ;;  %5584 = vmatprep.subr.bf16.mxu0 %v8027_v18  ;;  %v8100_v45 = vld [vmem:[#allocation10 + $0x120c] ss:$16 sps:$4 sm:$0xff]   ;;  %v8870_v18 = vcombine.low %v8846_v43, %v8846_v43  ;;  %v8101_v43 = vld [vmem:[#allocation10 + $0x1620] ss:$16 sps:$4 sm:$0xff]  }
 0x2e5   :  { %5625 = vmatprep.subr.bf16.mxu1 %v8030_v8  ;;  %v2924_v49 = vpop.f32.mrb[20].mxu0  ;;  %v8874_v8 = vcombine.low %v8848_v44, %v8848_v44  ;;  %v8104_v44 = vld [vmem:[#allocation10 + $0x1228] ss:$16 sps:$4 sm:$0xff]  }
 0x2e6   :  { %v2965_v15 = vpop.f32.mrb[20].mxu1  ;;  %v2925_v53 = vadd.f32 %v2924_v49, %v8838_v58  ;;  %v2926_v47 = vpop.f32.mrb[21].mxu0  ;;  %v8037_v58 = vld [vmem:[#allocation10 + $0x12e0] ss:$16 sps:$4 sm:$0xff]   ;;  %v8106_v49 = vld [vmem:[#allocation10 + $0x122c] ss:$16 sps:$4 sm:$0xff]  }
 0x2e7   :  { %v2967_v19 = vpop.f32.mrb[21].mxu1  ;;  %v2927_v52 = vadd.f32 %v2926_v47, %v8844_v6  ;;  %v2928_v20 = vpop.f32.mrb[22].mxu0  ;;  %5585 = vmatpush1.bf16.msra.mxu0 %v8025_v9  ;;  %v8040_v6 = vld [vmem:[#allocation10 + $0x14e0] ss:$16 sps:$4 sm:$0xff]   ;;  %v8876_v9 = vld [vmem:[#allocation8 + $0x10] sm:$0xff] }
 0x2e8   :  { %v2969_v21 = vpop.f32.mrb[22].mxu1  ;;  %5626 = vmatpush1.bf16.msra.mxu1 %v8028_v23  ;;  %v8864_v28 = vadd.f32 %v2965_v15, %v2925_v53  ;;  %v2929_v7 = vpop.f32.mrb[23].mxu0  ;;  %5586 = vmatprep.subr.bf16.mxu0 %v8033_v32  ;;  %v8095_v23 = vld [vmem:[#allocation10 + $0x1600] ss:$16 sps:$4 sm:$0xff]   ;;  %v8098_v32 = vld [vmem:[#allocation10 + $0x1208] ss:$16 sps:$4 sm:$0xff]   ;;  %v8880_v15 = vcombine.high %v8876_v9, %v8876_v9 }
 0x2e9   :  { %v2970_v17 = vpop.f32.mrb[23].mxu1  ;;  %5627 = vmatprep.subr.bf16.mxu1 %v8036_v11  ;;  %v8866_v30 = vadd.f32 %v2967_v19, %v2927_v52  ;;  %v8103_v11 = vld [vmem:[#allocation10 + $0x1624] ss:$16 sps:$4 sm:$0xff]   ;;  %v8112_v47 = vld [vmem:[#allocation10 + $0x124c] ss:$16 sps:$4 sm:$0xff]  }
 0x2ea   :  { %v8109_v53 = vld [vmem:[#allocation10 + $0x1644] ss:$16 sps:$4 sm:$0xff]   ;;  %v8107_v19 = vld [vmem:[#allocation10 + $0x1640] ss:$16 sps:$4 sm:$0xff]   ;;  %v8110_v52 = vld [vmem:[#allocation10 + $0x1248] ss:$16 sps:$4 sm:$0xff]  }
 0x2eb   :  { %5587 = vmatpush1.bf16.msra.mxu0 %v8031_v26  ;;  %v8115_v20 = vld [vmem:[#allocation10 + $0x1664] ss:$16 sps:$4 sm:$0xff]   ;;  %v8118_v21 = vld [vmem:[#allocation10 + $0x126c] ss:$16 sps:$4 sm:$0xff]   ;;  %v8113_v26 = vld [vmem:[#allocation10 + $0x1660] ss:$16 sps:$4 sm:$0xff]  }
 0x2ec   :  { %5628 = vmatpush1.bf16.msra.mxu1 %v8034_v27  ;;  %5588 = vmatprep.subr.bf16.mxu0 %v8039_v29  ;;  %v8116_v27 = vld [vmem:[#allocation10 + $0x1268] ss:$16 sps:$4 sm:$0xff]   ;;  %v8121_v7 = vld [vmem:[#allocation10 + $0x1684] ss:$16 sps:$4 sm:$0xff]   ;;  %v8124_v17 = vld [vmem:[#allocation10 + $0x128c] ss:$16 sps:$4 sm:$0xff]  }
 0x2ed   :  { %5629 = vmatprep.subr.bf16.mxu1 %v8042_v51  ;;  %v8119_v29 = vld [vmem:[#allocation10 + $0x1680] ss:$16 sps:$4 sm:$0xff]   ;;  %v8127_v51 = vld [vmem:[#allocation10 + $0x16a4] ss:$16 sps:$4 sm:$0xff]  }
 0x2ef   :  { %5589 = vmatpush1.bf16.msra.mxu0 %v8037_v58  ;;  %v8130_v58 = vld [vmem:[#allocation10 + $0x12ac] ss:$16 sps:$4 sm:$0xff]  }
 0x2f0   :  { %5630 = vmatpush1.bf16.msra.mxu1 %v8040_v6  ;;  %5590 = vmatprep.subr.bf16.mxu0 %v8045_v54  ;;  %v8125_v6 = vld [vmem:[#allocation10 + $0x16a0] ss:$16 sps:$4 sm:$0xff]   ;;  %v8128_v54 = vld [vmem:[#allocation10 + $0x12a8] ss:$16 sps:$4 sm:$0xff]  }
 0x2f1   :  { %5631 = vmatprep.subr.bf16.mxu1 %v8048_v31  ;;  %v8133_v31 = vld [vmem:[#allocation10 + $0x16c4] ss:$16 sps:$4 sm:$0xff]  }
 0x2f3   :  { %5591 = vmatpush1.bf16.msra.mxu0 %v8043_v33  ;;  %v8136_v33 = vld [vmem:[#allocation10 + $0x12cc] ss:$16 sps:$4 sm:$0xff]  }
 0x2f4   :  { %5632 = vmatpush1.bf16.msra.mxu1 %v8046_v2  ;;  %5592 = vmatprep.subr.bf16.mxu0 %v8051_v34 }
 0x2f5   :  { %5633 = vmatprep.subr.bf16.mxu1 %v8054_v35 }
 0x2f7   :  { %5593 = vmatpush1.bf16.msra.mxu0 %v8049_v36 }
 0x2f8   :  { %5634 = vmatpush1.bf16.msra.mxu1 %v8052_v38  ;;  %5594 = vmatprep.subr.bf16.mxu0 %v8057_v10 }
 0x2f9   :  { %5635 = vmatprep.subr.bf16.mxu1 %v8060_v22 }
 0x2fb   :  { %5595 = vmatpush1.bf16.msra.mxu0 %v8055_v39 }
 0x2fc   :  { %5636 = vmatpush1.bf16.msra.mxu1 %v8058_v40  ;;  %5596 = vmatprep.subr.bf16.mxu0 %v8063_v41  ;;  %v8131_v40 = vld [vmem:[#allocation10 + $0x16c0] ss:$16 sps:$4 sm:$0xff]   ;;  %v8134_v41 = vld [vmem:[#allocation10 + $0x12c8] ss:$16 sps:$4 sm:$0xff]  }
 0x2fd   :  { %5637 = vmatprep.subr.bf16.mxu1 %v8066_v12 }
 0x2ff   :  { %5597 = vmatpush1.bf16.msra.mxu0 %v8061_v42 }
 0x300   :  { %5638 = vmatpush1.bf16.msra.mxu1 %v8064_v25  ;;  %5598 = vmatprep.subr.bf16.mxu0 %v8069_v55  ;;  %v8139_v25 = vld [vmem:[#allocation10 + $0x16e4] ss:$16 sps:$4 sm:$0xff]   ;;  %v8142_v55 = vld [vmem:[#allocation10 + $0x12ec] ss:$16 sps:$4 sm:$0xff]  }
 0x301   :  { %5639 = vmatprep.subr.bf16.mxu1 %v8072_v16  ;;  %v8137_v16 = vld [vmem:[#allocation10 + $0x16e0] ss:$16 sps:$4 sm:$0xff]  }
 0x303   :  { %5599 = vmatpush1.bf16.msra.mxu0 %v8067_v46  ;;  %v8140_v46 = vld [vmem:[#allocation10 + $0x12e8] ss:$16 sps:$4 sm:$0xff]  }
 0x304   :  { %5640 = vmatpush1.bf16.msra.mxu1 %v8070_v24  ;;  %5600 = vmatprep.subr.bf16.mxu0 %v8075_v0  ;;  %v8145_v24 = vld [vmem:[#allocation10 + $0x1704] ss:$16 sps:$4 sm:$0xff]   ;;  %v8148_v0 = vld [vmem:[#allocation10 + $0x130c] ss:$16 sps:$4 sm:$0xff]  }
 0x305   :  { %5641 = vmatprep.subr.bf16.mxu1 %v8078_v13  ;;  %v8143_v13 = vld [vmem:[#allocation10 + $0x1700] ss:$16 sps:$4 sm:$0xff]  }
 0x307   :  { %5601 = vmatpush1.bf16.msra.mxu0 %v8073_v3  ;;  %v8146_v3 = vld [vmem:[#allocation10 + $0x1308] ss:$16 sps:$4 sm:$0xff]  }
 0x308   :  { %5642 = vmatpush1.bf16.msra.mxu1 %v8076_v56  ;;  %5602 = vmatprep.subr.bf16.mxu0 %v8081_v59  ;;  %v8151_v56 = vld [vmem:[#allocation10 + $0x1724] ss:$16 sps:$4 sm:$0xff]   ;;  %v8154_v59 = vld [vmem:[#allocation10 + $0x132c] ss:$16 sps:$4 sm:$0xff]  }
 0x309   :  { %5643 = vmatprep.subr.bf16.mxu1 %v8084_v60  ;;  %v8149_v60 = vld [vmem:[#allocation10 + $0x1720] ss:$16 sps:$4 sm:$0xff]  }
 0x30b   :  { %5603 = vmatpush1.bf16.msra.mxu0 %v8079_v14  ;;  %v8152_v14 = vld [vmem:[#allocation10 + $0x1328] ss:$16 sps:$4 sm:$0xff]  }
 0x30c   :  { %5644 = vmatpush1.bf16.msra.mxu1 %v8082_v61  ;;  %5604 = vmatprep.subr.bf16.mxu0 %v8087_v37  ;;  %v8157_v61 = vld [vmem:[#allocation10 + $0x1744] ss:$16 sps:$4 sm:$0xff]   ;;  %v8160_v37 = vld [vmem:[#allocation10 + $0x134c] ss:$16 sps:$4 sm:$0xff]  }
 0x30d   :  { %5645 = vmatprep.subr.bf16.mxu1 %v8090_v63  ;;  %v8155_v63 = vld [vmem:[#allocation10 + $0x1740] ss:$16 sps:$4 sm:$0xff]  }
 0x30f   :  { %5605 = vmatpush1.bf16.msra.mxu0 %v8085_v1  ;;  %v8158_v1 = vld [vmem:[#allocation10 + $0x1348] ss:$16 sps:$4 sm:$0xff]  }
 0x310   :  { %5646 = vmatpush1.bf16.msra.mxu1 %v8088_v4  ;;  %5656 = vmatprep.subr.bf16.mxu0 %v8097_v5  ;;  %v8163_v4 = vld [vmem:[#allocation10 + $0x1764] ss:$16 sps:$4 sm:$0xff]   ;;  %v8166_v5 = vld [vmem:[#allocation10 + $0x136c] ss:$16 sps:$4 sm:$0xff]  }
 0x311   :  { %5697 = vmatprep.subr.bf16.mxu1 %v8100_v45  ;;  %v8161_v45 = vld [vmem:[#allocation10 + $0x1760] ss:$16 sps:$4 sm:$0xff]  }
 0x312   :  { %5607 = vmatmul.mubr.bf16.vlgmr.msra.gmra.mrb[36].mxu0 %v8870_v18 }
 0x313   :  { %5648 = vmatmul.mubr.bf16.vlgmr.msra.gmra.mrb[36].mxu1 %v8874_v8  ;;  %5657 = vmatpush1.bf16.msra.mxu0 %v8095_v23  ;;  %v8164_v23 = vld [vmem:[#allocation10 + $0x1368] ss:$16 sps:$4 sm:$0xff]  }
 0x314   :  { %5698 = vmatpush1.bf16.msra.mxu1 %v8098_v32  ;;  %5658 = vmatprep.subr.bf16.mxu0 %v8103_v11  ;;  %v8169_v32 = vld [vmem:[#allocation10 + $0x1784] ss:$16 sps:$4 sm:$0xff]   ;;  %v8172_v11 = vld [vmem:[#allocation10 + $0x138c] ss:$16 sps:$4 sm:$0xff]  }
 0x315   :  { %5699 = vmatprep.subr.bf16.mxu1 %v8106_v49  ;;  %5688 = vmatprep.mubr.bf16.mxu0 %v8880_v15  ;;  %v8167_v49 = vld [vmem:[#allocation10 + $0x1780] ss:$16 sps:$4 sm:$0xff]  }
 0x316   :  { %5729 = vmatprep.mubr.bf16.mxu1 %v8852_v48  ;;  %v8122_v48 = vld [vmem:[#allocation10 + $0x1288] ss:$16 sps:$4 sm:$0xff]  }
 0x317   :  { %5659 = vmatpush1.bf16.msra.mxu0 %v8101_v43  ;;  %v8170_v43 = vld [vmem:[#allocation10 + $0x1388] ss:$16 sps:$4 sm:$0xff]  }
 0x318   :  { %5700 = vmatpush1.bf16.msra.mxu1 %v8104_v44  ;;  %5660 = vmatprep.subr.bf16.mxu0 %v8109_v53  ;;  %v8175_v44 = vld [vmem:[#allocation10 + $0x17a4] ss:$16 sps:$4 sm:$0xff]   ;;  %v8178_v53 = vld [vmem:[#allocation10 + $0x13ac] ss:$16 sps:$4 sm:$0xff]  }
 0x319   :  { %5701 = vmatprep.subr.bf16.mxu1 %v8112_v47  ;;  %v8173_v47 = vld [vmem:[#allocation10 + $0x17a0] ss:$16 sps:$4 sm:$0xff]  }
 0x31b   :  { %5661 = vmatpush1.bf16.msra.mxu0 %v8107_v19  ;;  %v8176_v19 = vld [vmem:[#allocation10 + $0x13a8] ss:$16 sps:$4 sm:$0xff]  }
 0x31c   :  { %5702 = vmatpush1.bf16.msra.mxu1 %v8110_v52  ;;  %5662 = vmatprep.subr.bf16.mxu0 %v8115_v20  ;;  %v8181_v52 = vld [vmem:[#allocation10 + $0x17c4] ss:$16 sps:$4 sm:$0xff]   ;;  %v8184_v20 = vld [vmem:[#allocation10 + $0x13cc] ss:$16 sps:$4 sm:$0xff]  }
 0x31d   :  { %5703 = vmatprep.subr.bf16.mxu1 %v8118_v21  ;;  %v8179_v21 = vld [vmem:[#allocation10 + $0x17c0] ss:$16 sps:$4 sm:$0xff]  }
 0x31f   :  { %5663 = vmatpush1.bf16.msra.mxu0 %v8113_v26  ;;  %v8182_v26 = vld [vmem:[#allocation10 + $0x13c8] ss:$16 sps:$4 sm:$0xff]  }
 0x320   :  { %5704 = vmatpush1.bf16.msra.mxu1 %v8116_v27  ;;  %5664 = vmatprep.subr.bf16.mxu0 %v8121_v7  ;;  %v8187_v27 = vld [vmem:[#allocation10 + $0x17e4] ss:$16 sps:$4 sm:$0xff]   ;;  %v8190_v7 = vld [vmem:[#allocation10 + $0x13ec] ss:$16 sps:$4 sm:$0xff]  }
 0x321   :  { %5705 = vmatprep.subr.bf16.mxu1 %v8124_v17  ;;  %v8185_v17 = vld [vmem:[#allocation10 + $0x17e0] ss:$16 sps:$4 sm:$0xff]  }
 0x323   :  { %5665 = vmatpush1.bf16.msra.mxu0 %v8119_v29  ;;  %v8188_v29 = vld [vmem:[#allocation10 + $0x13e8] ss:$16 sps:$4 sm:$0xff]  }
 0x324   :  { %5706 = vmatpush1.bf16.msra.mxu1 %v8122_v48  ;;  %5666 = vmatprep.subr.bf16.mxu0 %v8127_v51  ;;  %v8195_v48 = vld [vmem:[#allocation10 + $0x140c] ss:$16 sps:$4 sm:$0xff]  }
 0x325   :  { %5707 = vmatprep.subr.bf16.mxu1 %v8130_v58  ;;  %v4182_v2 = vpop.f32.mrb[24].mxu0  ;;  %v8198_v51 = vld [vmem:[#allocation10 + $0x160c] ss:$16 sps:$4 sm:$0xff]   ;;  %v8892_v58 = vcombine.low %v8876_v9, %v8876_v9 }
 0x326   :  { %v4223_v34 = vpop.f32.mrb[24].mxu1  ;;  %v4184_v36 = vpop.f32.mrb[25].mxu0  ;;  %v8207_v9 = vld [vmem:[#allocation10 + $0x144c] ss:$16 sps:$4 sm:$0xff]  }
 0x327   :  { %v8886_v35 = vadd.f32 %v4223_v34, %v4182_v2  ;;  %v4225_v38 = vpop.f32.mrb[25].mxu1  ;;  %v4186_v22 = vpop.f32.mrb[26].mxu0  ;;  %5667 = vmatpush1.bf16.msra.mxu0 %v8125_v6  ;;  %v8193_v6 = vld [vmem:[#allocation10 + $0x1408] ss:$16 sps:$4 sm:$0xff]  }
 0x328   :  { %v8888_v10 = vadd.f32 %v4225_v38, %v4184_v36  ;;  %v4227_v39 = vpop.f32.mrb[26].mxu1  ;;  %5708 = vmatpush1.bf16.msra.mxu1 %v8128_v54  ;;  %v4187_v12 = vpop.f32.mrb[27].mxu0  ;;  %5668 = vmatprep.subr.bf16.mxu0 %v8133_v31  ;;  %v8196_v54 = vld [vmem:[#allocation10 + $0x1608] ss:$16 sps:$4 sm:$0xff]   ;;  %v8201_v31 = vld [vmem:[#allocation10 + $0x142c] ss:$16 sps:$4 sm:$0xff]  }
 0x329   :  { %v4228_v42 = vpop.f32.mrb[27].mxu1  ;;  %5709 = vmatprep.subr.bf16.mxu1 %v8136_v33  ;;  %v8204_v33 = vld [vmem:[#allocation10 + $0x162c] ss:$16 sps:$4 sm:$0xff]   ;;  %v8199_v2 = vld [vmem:[#allocation10 + $0x1428] ss:$16 sps:$4 sm:$0xff]  }
 0x32a   :  { %v8202_v34 = vld [vmem:[#allocation10 + $0x1628] ss:$16 sps:$4 sm:$0xff]   ;;  %v8210_v36 = vld [vmem:[#allocation10 + $0x164c] ss:$16 sps:$4 sm:$0xff]  }
 0x32b   :  { %5669 = vmatpush1.bf16.msra.mxu0 %v8131_v40  ;;  %v8205_v38 = vld [vmem:[#allocation10 + $0x1448] ss:$16 sps:$4 sm:$0xff]   ;;  %v8213_v39 = vld [vmem:[#allocation10 + $0x146c] ss:$16 sps:$4 sm:$0xff]  }
 0x32c   :  { %5710 = vmatpush1.bf16.msra.mxu1 %v8134_v41  ;;  %5670 = vmatprep.subr.bf16.mxu0 %v8139_v25  ;;  %v8208_v22 = vld [vmem:[#allocation10 + $0x1648] ss:$16 sps:$4 sm:$0xff]   ;;  %v8219_v12 = vld [vmem:[#allocation10 + $0x148c] ss:$16 sps:$4 sm:$0xff]  }
 0x32d   :  { %5711 = vmatprep.subr.bf16.mxu1 %v8142_v55  ;;  %v8211_v40 = vld [vmem:[#allocation10 + $0x1468] ss:$16 sps:$4 sm:$0xff]   ;;  %v8222_v42 = vld [vmem:[#allocation10 + $0x168c] ss:$16 sps:$4 sm:$0xff]  }
 0x32e   :  { %v8214_v41 = vld [vmem:[#allocation10 + $0x1668] ss:$16 sps:$4 sm:$0xff]   ;;  %v8225_v25 = vld [vmem:[#allocation10 + $0x14ac] ss:$16 sps:$4 sm:$0xff]  }
 0x32f   :  { %5671 = vmatpush1.bf16.msra.mxu0 %v8137_v16  ;;  %v8228_v55 = vld [vmem:[#allocation10 + $0x16ac] ss:$16 sps:$4 sm:$0xff]   ;;  %v8223_v16 = vld [vmem:[#allocation10 + $0x14a8] ss:$16 sps:$4 sm:$0xff]  }
 0x330   :  { %5712 = vmatpush1.bf16.msra.mxu1 %v8140_v46  ;;  %5672 = vmatprep.subr.bf16.mxu0 %v8145_v24  ;;  %v8226_v46 = vld [vmem:[#allocation10 + $0x16a8] ss:$16 sps:$4 sm:$0xff]   ;;  %v8231_v24 = vld [vmem:[#allocation10 + $0x14cc] ss:$16 sps:$4 sm:$0xff]  }
 0x331   :  { %5713 = vmatprep.subr.bf16.mxu1 %v8148_v0  ;;  %v8234_v0 = vld [vmem:[#allocation10 + $0x16cc] ss:$16 sps:$4 sm:$0xff]  }
 0x333   :  { %5673 = vmatpush1.bf16.msra.mxu0 %v8143_v13 }
 0x334   :  { %5714 = vmatpush1.bf16.msra.mxu1 %v8146_v3  ;;  %5674 = vmatprep.subr.bf16.mxu0 %v8151_v56 }
 0x335   :  { %5715 = vmatprep.subr.bf16.mxu1 %v8154_v59 }
 0x337   :  { %5675 = vmatpush1.bf16.msra.mxu0 %v8149_v60 }
 0x338   :  { %5716 = vmatpush1.bf16.msra.mxu1 %v8152_v14  ;;  %5676 = vmatprep.subr.bf16.mxu0 %v8157_v61 }
 0x339   :  { %5717 = vmatprep.subr.bf16.mxu1 %v8160_v37 }
 0x33b   :  { %5677 = vmatpush1.bf16.msra.mxu0 %v8155_v63  ;;  %v8229_v63 = vld [vmem:[#allocation10 + $0x14c8] ss:$16 sps:$4 sm:$0xff]  }
 0x33c   :  { %5718 = vmatpush1.bf16.msra.mxu1 %v8158_v1  ;;  %5678 = vmatprep.subr.bf16.mxu0 %v8163_v4  ;;  %v8232_v1 = vld [vmem:[#allocation10 + $0x16c8] ss:$16 sps:$4 sm:$0xff]  }
 0x33d   :  { %5719 = vmatprep.subr.bf16.mxu1 %v8166_v5 }
 0x33f   :  { %5679 = vmatpush1.bf16.msra.mxu0 %v8161_v45 }
 0x340   :  { %5720 = vmatpush1.bf16.msra.mxu1 %v8164_v23  ;;  %5680 = vmatprep.subr.bf16.mxu0 %v8169_v32  ;;  %v8237_v23 = vld [vmem:[#allocation10 + $0x14ec] ss:$16 sps:$4 sm:$0xff]  }
 0x341   :  { %5721 = vmatprep.subr.bf16.mxu1 %v8172_v11  ;;  %v8238_v11 = vld [vmem:[#allocation10 + $0x16e8] ss:$16 sps:$4 sm:$0xff]  }
 0x343   :  { %5681 = vmatpush1.bf16.msra.mxu0 %v8167_v49  ;;  %v8243_v49 = vld [vmem:[#allocation10 + $0x150c] ss:$16 sps:$4 sm:$0xff]  }
 0x344   :  { %5722 = vmatpush1.bf16.msra.mxu1 %v8170_v43  ;;  %5682 = vmatprep.subr.bf16.mxu0 %v8175_v44  ;;  %v8246_v43 = vld [vmem:[#allocation10 + $0x170c] ss:$16 sps:$4 sm:$0xff]   ;;  %v8244_v44 = vld [vmem:[#allocation10 + $0x1708] ss:$16 sps:$4 sm:$0xff]  }
 0x345   :  { %5723 = vmatprep.subr.bf16.mxu1 %v8178_v53  ;;  %v8249_v53 = vld [vmem:[#allocation10 + $0x152c] ss:$16 sps:$4 sm:$0xff]  }
 0x347   :  { %5683 = vmatpush1.bf16.msra.mxu0 %v8173_v47  ;;  %v8252_v47 = vld [vmem:[#allocation10 + $0x172c] ss:$16 sps:$4 sm:$0xff]  }
 0x348   :  { %5724 = vmatpush1.bf16.msra.mxu1 %v8176_v19  ;;  %5684 = vmatprep.subr.bf16.mxu0 %v8181_v52  ;;  %v8250_v19 = vld [vmem:[#allocation10 + $0x1728] ss:$16 sps:$4 sm:$0xff]   ;;  %v8255_v52 = vld [vmem:[#allocation10 + $0x154c] ss:$16 sps:$4 sm:$0xff]  }
 0x349   :  { %5725 = vmatprep.subr.bf16.mxu1 %v8184_v20  ;;  %v8258_v20 = vld [vmem:[#allocation10 + $0x174c] ss:$16 sps:$4 sm:$0xff]  }
 0x34b   :  { %5685 = vmatpush1.bf16.msra.mxu0 %v8179_v21  ;;  %v8253_v21 = vld [vmem:[#allocation10 + $0x1548] ss:$16 sps:$4 sm:$0xff]  }
 0x34c   :  { %5726 = vmatpush1.bf16.msra.mxu1 %v8182_v26  ;;  %5686 = vmatprep.subr.bf16.mxu0 %v8187_v27  ;;  %v8256_v26 = vld [vmem:[#allocation10 + $0x1748] ss:$16 sps:$4 sm:$0xff]   ;;  %v8261_v27 = vld [vmem:[#allocation10 + $0x156c] ss:$16 sps:$4 sm:$0xff]  }
 0x34d   :  { %5727 = vmatprep.subr.bf16.mxu1 %v8190_v7  ;;  %v8264_v7 = vld [vmem:[#allocation10 + $0x176c] ss:$16 sps:$4 sm:$0xff]  }
 0x34f   :  { %5687 = vmatpush1.bf16.msra.mxu0 %v8185_v17  ;;  %v8259_v17 = vld [vmem:[#allocation10 + $0x1568] ss:$16 sps:$4 sm:$0xff]  }
 0x350   :  { %5728 = vmatpush1.bf16.msra.mxu1 %v8188_v29  ;;  %5738 = vmatprep.subr.bf16.mxu0 %v8195_v48  ;;  %v8262_v29 = vld [vmem:[#allocation10 + $0x1768] ss:$16 sps:$4 sm:$0xff]   ;;  %v8267_v48 = vld [vmem:[#allocation10 + $0x158c] ss:$16 sps:$4 sm:$0xff]  }
 0x351   :  { %5779 = vmatprep.subr.bf16.mxu1 %v8198_v51  ;;  %v8270_v51 = vld [vmem:[#allocation10 + $0x178c] ss:$16 sps:$4 sm:$0xff]  }
 0x352   :  { %5689 = vmatmul.mubr.bf16.vlgmr.msra.gmra.mrb[40].mxu0 %v8892_v58 }
 0x353   :  { %5730 = vmatmul.mubr.bf16.vlgmr.msra.gmra.mrb[40].mxu1 %v8870_v18  ;;  %5739 = vmatpush1.bf16.msra.mxu0 %v8193_v6  ;;  %v8216_v18 = vld [vmem:[#allocation10 + $0x166c] ss:$16 sps:$4 sm:$0xff]   ;;  %v8265_v6 = vld [vmem:[#allocation10 + $0x1588] ss:$16 sps:$4 sm:$0xff]  }
 0x354   :  { %5780 = vmatpush1.bf16.msra.mxu1 %v8196_v54  ;;  %5740 = vmatprep.subr.bf16.mxu0 %v8201_v31  ;;  %v8268_v54 = vld [vmem:[#allocation10 + $0x1788] ss:$16 sps:$4 sm:$0xff]   ;;  %v8273_v31 = vld [vmem:[#allocation10 + $0x15ac] ss:$16 sps:$4 sm:$0xff]  }
 0x355   :  { %5781 = vmatprep.subr.bf16.mxu1 %v8204_v33  ;;  %5770 = vmatprep.mubr.bf16.mxu0 %v8856_v50  ;;  %v8217_v50 = vld [vmem:[#allocation10 + $0x1488] ss:$16 sps:$4 sm:$0xff]   ;;  %v8276_v33 = vld [vmem:[#allocation10 + $0x17ac] ss:$16 sps:$4 sm:$0xff]  }
 0x356   :  { %5811 = vmatprep.mubr.bf16.mxu1 %v8880_v15  ;;  %v8220_v15 = vld [vmem:[#allocation10 + $0x1688] ss:$16 sps:$4 sm:$0xff]  }
 0x357   :  { %5741 = vmatpush1.bf16.msra.mxu0 %v8199_v2  ;;  %v8271_v2 = vld [vmem:[#allocation10 + $0x15a8] ss:$16 sps:$4 sm:$0xff]  }
 0x358   :  { %5782 = vmatpush1.bf16.msra.mxu1 %v8202_v34  ;;  %5742 = vmatprep.subr.bf16.mxu0 %v8207_v9  ;;  %v8274_v34 = vld [vmem:[#allocation10 + $0x17a8] ss:$16 sps:$4 sm:$0xff]   ;;  %v8279_v9 = vld [vmem:[#allocation10 + $0x15cc] ss:$16 sps:$4 sm:$0xff]  }
 0x359   :  { %5783 = vmatprep.subr.bf16.mxu1 %v8210_v36  ;;  %v8282_v36 = vld [vmem:[#allocation10 + $0x17cc] ss:$16 sps:$4 sm:$0xff]  }
 0x35b   :  { %5743 = vmatpush1.bf16.msra.mxu0 %v8205_v38  ;;  %v8277_v38 = vld [vmem:[#allocation10 + $0x15c8] ss:$16 sps:$4 sm:$0xff]  }
 0x35c   :  { %5784 = vmatpush1.bf16.msra.mxu1 %v8208_v22  ;;  %5744 = vmatprep.subr.bf16.mxu0 %v8213_v39  ;;  %v8280_v22 = vld [vmem:[#allocation10 + $0x17c8] ss:$16 sps:$4 sm:$0xff]   ;;  %v8285_v39 = vld [vmem:[#allocation10 + $0x15ec] ss:$16 sps:$4 sm:$0xff]  }
 0x35d   :  { %5785 = vmatprep.subr.bf16.mxu1 %v8216_v18  ;;  %v8288_v18 = vld [vmem:[#allocation10 + $0x17ec] ss:$16 sps:$4 sm:$0xff]  }
 0x35f   :  { %5745 = vmatpush1.bf16.msra.mxu0 %v8211_v40  ;;  %v8283_v40 = vld [vmem:[#allocation10 + $0x15e8] ss:$16 sps:$4 sm:$0xff]  }
 0x360   :  { %5786 = vmatpush1.bf16.msra.mxu1 %v8214_v41  ;;  %5746 = vmatprep.subr.bf16.mxu0 %v8219_v12  ;;  %v8286_v41 = vld [vmem:[#allocation10 + $0x17e8] ss:$16 sps:$4 sm:$0xff]  }
 0x361   :  { %5787 = vmatprep.subr.bf16.mxu1 %v8222_v42  ;;  %v8289_v12 = vld [vmem:[#allocation13 + $0x40] sm:$0xff]  }
 0x362   :  { %v8290_v42 = vld [vmem:[#allocation13] sm:$0xff]  }
 0x363   :  { %5747 = vmatpush1.bf16.msra.mxu0 %v8217_v50  ;;  %v8291_v50 = vld [vmem:[#allocation13 + $0x48] sm:$0xff]  }
 0x364   :  { %5788 = vmatpush1.bf16.msra.mxu1 %v8220_v15  ;;  %5748 = vmatprep.subr.bf16.mxu0 %v8225_v25  ;;  %v8292_v15 = vld [vmem:[#allocation13 + $0x8] sm:$0xff]   ;;  %v8293_v25 = vld [vmem:[#allocation13 + $0x50] sm:$0xff]  }
 0x365   :  { %5789 = vmatprep.subr.bf16.mxu1 %v8228_v55  ;;  %v4264_v13 = vpop.f32.mrb[28].mxu0  ;;  %v8294_v55 = vld [vmem:[#allocation13 + $0x10] sm:$0xff]  }
 0x366   :  { %v8898_v3 = vpop.f32.mrb[28].mxu1  ;;  %v4265_v56 = vadd.f32 %v4264_v13, %v8886_v35  ;;  %v4266_v59 = vpop.f32.mrb[29].mxu0  ;;  %v8240_v35 = vld [vmem:[#allocation10 + $0x16ec] ss:$16 sps:$4 sm:$0xff]  }
 0x367   :  { %v8901_v60 = vpop.f32.mrb[29].mxu1  ;;  %v4267_v14 = vadd.f32 %v4266_v59, %v8888_v10  ;;  %v4268_v61 = vpop.f32.mrb[30].mxu0  ;;  %5749 = vmatpush1.bf16.msra.mxu0 %v8223_v16  ;;  %v8235_v10 = vld [vmem:[#allocation10 + $0x14e8] ss:$16 sps:$4 sm:$0xff]   ;;  %v8295_v16 = vld [vmem:[#allocation13 + $0x58] sm:$0xff]   ;;  %v8299_v13 = vld [vmem:[#allocation13 + $0x68] sm:$0xff]  }
 0x368   :  { %v4309_v37 = vpop.f32.mrb[30].mxu1  ;;  %5790 = vmatpush1.bf16.msra.mxu1 %v8226_v46  ;;  %v8905_v4 = vadd.f32 %v4265_v56, %v8835_v57  ;;  %v4269_v5 = vpop.f32.mrb[31].mxu0  ;;  %5750 = vmatprep.subr.bf16.mxu0 %v8231_v24  ;;  %v8241_v57 = vld [vmem:[#allocation10 + $0x1508] ss:$16 sps:$4 sm:$0xff]   ;;  %v8296_v46 = vld [vmem:[#allocation13 + $0x18] sm:$0xff]  }
 0x369   :  { %v4310_v45 = vpop.f32.mrb[31].mxu1  ;;  %5791 = vmatprep.subr.bf16.mxu1 %v8234_v0  ;;  %v8908_v32 = vadd.f32 %v4267_v14, %v8841_v62  ;;  %v8247_v62 = vld [vmem:[#allocation10 + $0x1528] ss:$16 sps:$4 sm:$0xff]  }
 0x36a   :  { %v8297_v24 = vld [vmem:[#allocation13 + $0x60] sm:$0xff]  }
 0x36b   :  { %5751 = vmatpush1.bf16.msra.mxu0 %v8229_v63  ;;  %v8298_v0 = vld [vmem:[#allocation13 + $0x20] sm:$0xff]  }
 0x36c   :  { %5792 = vmatpush1.bf16.msra.mxu1 %v8232_v1  ;;  %5752 = vmatprep.subr.bf16.mxu0 %v8237_v23 }
 0x36d   :  { %5793 = vmatprep.subr.bf16.mxu1 %v8240_v35  ;;  %v8301_v35 = vld [vmem:[#allocation13 + $0x70] sm:$0xff]  }
 0x36f   :  { %5753 = vmatpush1.bf16.msra.mxu0 %v8235_v10 }
 0x370   :  { %5794 = vmatpush1.bf16.msra.mxu1 %v8238_v11  ;;  %5754 = vmatprep.subr.bf16.mxu0 %v8243_v49  ;;  %v8302_v11 = vld [vmem:[#allocation13 + $0x30] sm:$0xff]  }
 0x371   :  { %5795 = vmatprep.subr.bf16.mxu1 %v8246_v43  ;;  %v8303_v43 = vld [vmem:[#allocation13 + $0x78] sm:$0xff]  }
 0x373   :  { %5755 = vmatpush1.bf16.msra.mxu0 %v8241_v57  ;;  %v8304_v57 = vld [vmem:[#allocation13 + $0x38] sm:$0xff]  }
 0x374   :  { %5796 = vmatpush1.bf16.msra.mxu1 %v8244_v44  ;;  %5756 = vmatprep.subr.bf16.mxu0 %v8249_v53  ;;  %v8306_v44 = vld [vmem:[#allocation13 + $0x80] sm:$0xff]   ;;  %v8307_v53 = vld [vmem:[#allocation13 + $0xc8] sm:$0xff]  }
 0x375   :  { %5797 = vmatprep.subr.bf16.mxu1 %v8252_v47  ;;  %v8308_v47 = vld [vmem:[#allocation13 + $0x88] sm:$0xff]  }
 0x377   :  { %5757 = vmatpush1.bf16.msra.mxu0 %v8247_v62  ;;  %v8309_v62 = vld [vmem:[#allocation13 + $0xd0] sm:$0xff]  }
 0x378   :  { %5798 = vmatpush1.bf16.msra.mxu1 %v8250_v19  ;;  %5758 = vmatprep.subr.bf16.mxu0 %v8255_v52  ;;  %v8311_v19 = vld [vmem:[#allocation13 + $0xd8] sm:$0xff]   ;;  %v8313_v52 = vld [vmem:[#allocation13 + $0xe0] sm:$0xff]  }
 0x379   :  { %5799 = vmatprep.subr.bf16.mxu1 %v8258_v20  ;;  %v8314_v20 = vld [vmem:[#allocation13 + $0xa0] sm:$0xff]  }
 0x37b   :  { %5759 = vmatpush1.bf16.msra.mxu0 %v8253_v21 }
 0x37c   :  { %5800 = vmatpush1.bf16.msra.mxu1 %v8256_v26  ;;  %5760 = vmatprep.subr.bf16.mxu0 %v8261_v27 }
 0x37d   :  { %5801 = vmatprep.subr.bf16.mxu1 %v8264_v7 }
 0x37f   :  { %5761 = vmatpush1.bf16.msra.mxu0 %v8259_v17 }
 0x380   :  { %5802 = vmatpush1.bf16.msra.mxu1 %v8262_v29  ;;  %5762 = vmatprep.subr.bf16.mxu0 %v8267_v48  ;;  %v8315_v29 = vld [vmem:[#allocation13 + $0xe8] sm:$0xff]  }
 0x381   :  { %5803 = vmatprep.subr.bf16.mxu1 %v8270_v51 }
 0x383   :  { %5763 = vmatpush1.bf16.msra.mxu0 %v8265_v6 }
 0x384   :  { %5804 = vmatpush1.bf16.msra.mxu1 %v8268_v54  ;;  %5764 = vmatprep.subr.bf16.mxu0 %v8273_v31  ;;  %v8316_v54 = vld [vmem:[#allocation13 + $0xa8] sm:$0xff]  }
 0x385   :  { %5805 = vmatprep.subr.bf16.mxu1 %v8276_v33 }
 0x387   :  { %5765 = vmatpush1.bf16.msra.mxu0 %v8271_v2  ;;  %v8317_v2 = vld [vmem:[#allocation13 + $0xf0] sm:$0xff]  }
 0x388   :  { %5806 = vmatpush1.bf16.msra.mxu1 %v8274_v34  ;;  %5766 = vmatprep.subr.bf16.mxu0 %v8279_v9  ;;  %v8318_v34 = vld [vmem:[#allocation13 + $0xb0] sm:$0xff]   ;;  %v8319_v9 = vld [vmem:[#allocation13 + $0xf8] sm:$0xff]  }
 0x389   :  { %5807 = vmatprep.subr.bf16.mxu1 %v8282_v36  ;;  %v8320_v36 = vld [vmem:[#allocation13 + $0xb8] sm:$0xff]  }
 0x38b   :  { %5767 = vmatpush1.bf16.msra.mxu0 %v8277_v38  ;;  %v5826_v38 = vlaneseq }
 0x38c   :  { %5808 = vmatpush1.bf16.msra.mxu1 %v8280_v22  ;;  %5768 = vmatprep.subr.bf16.mxu0 %v8285_v39 }
 0x38d   :  { %5809 = vmatprep.subr.bf16.mxu1 %v8288_v18  ;;  %v5827_v22 = vshrl.u32 %v5826_v38, 7  ;;  %v5824_v18 = vld [vmem:[#allocation11] sm:$0xf] }
 0x38f   :  { %5769 = vmatpush1.bf16.msra.mxu0 %v8283_v40  ;;  %v5828_v39 = vsub.s32 0, %v5827_v22  ;;  %v5832_v40 = vsub.s32 1, %v5827_v22 }
 0x390   :  { %5810 = vmatpush1.bf16.msra.mxu1 %v8286_v41  ;;  %7056 = vmatprep.subr.bf16.mxu0 %v8289_v12 }
 0x392   :  { %5771 = vmatmul.mubr.bf16.vlgmr.msra.gmra.mrb[44].mxu0 %v8874_v8 }
 0x393   :  { %5812 = vmatmul.mubr.bf16.vlgmr.msra.gmra.mrb[44].mxu1 %v8892_v58  ;;  %7057 = vmatpush3.bf16.msra.mxu0 %v8290_v42  ;;  %v8300_v58 = vld [vmem:[#allocation13 + $0x28] sm:$0xff]  }
 0x394   :  { %7058 = vmatprep.subr.bf16.mxu0 %v8291_v50  ;;  %v5829_v50 = vrot.slane %v5824_v18, %v5828_v39 }
 0x397   :  { %7059 = vmatpush3.bf16.msra.mxu0 %v8292_v15 }
 0x398   :  { %7060 = vmatprep.subr.bf16.mxu0 %v8293_v25 }
 0x39b   :  { %7061 = vmatpush3.bf16.msra.mxu0 %v8294_v55 }
 0x39c   :  { %7062 = vmatprep.subr.bf16.mxu0 %v8295_v16  ;;  %v5833_v16 = vrot.slane %v5824_v18, %v5832_v40 }
 0x39f   :  { %7063 = vmatpush3.bf16.msra.mxu0 %v8296_v46 }
 0x3a0   :  { %7064 = vmatprep.subr.bf16.mxu0 %v8297_v24 }
 0x3a3   :  { %7065 = vmatpush3.bf16.msra.mxu0 %v8298_v0 }
 0x3a4   :  { %7066 = vmatprep.subr.bf16.mxu0 %v8299_v13 }
 0x3a5   :  { %v4346_v8 = vpop.f32.mrb[32].mxu0 }
 0x3a6   :  { %v4387_v56 = vpop.f32.mrb[32].mxu1  ;;  %v4347_v59 = vadd.f32 %v4346_v8, %v8898_v3  ;;  %v4348_v14 = vpop.f32.mrb[33].mxu0 }
 0x3a7   :  { %v4389_v61 = vpop.f32.mrb[33].mxu1  ;;  %v4349_v37 = vadd.f32 %v4348_v14, %v8901_v60  ;;  %v4350_v63 = vpop.f32.mrb[34].mxu0  ;;  %7067 = vmatpush3.bf16.msra.mxu0 %v8300_v58  ;;  %v8305_v60 = vld [vmem:[#allocation13 + $0xc0] sm:$0xff]  }
 0x3a8   :  { %v4391_v1 = vpop.f32.mrb[34].mxu1  ;;  %v4388_v5 = vadd.f32 %v4387_v56, %v4347_v59  ;;  %v4351_v45 = vpop.f32.mrb[35].mxu0  ;;  %7068 = vmatprep.subr.bf16.mxu0 %v8301_v35  ;;  %7078 = vmatprep.subr.bf16.mxu1 %v8305_v60 }
 0x3a9   :  { %v4392_v23 = vpop.f32.mrb[35].mxu1  ;;  %v4390_v10 = vadd.f32 %v4389_v61, %v4349_v37  ;;  %7079 = vmatpush3.bf16.msra.mxu1 %v8306_v44  ;;  %v5836_v1 = vsub.s32 2, %v5827_v22 }
 0x3aa   :  { %v8915_v49 = vadd.f32 %v4388_v5, %v8864_v28  ;;  %7080 = vmatprep.subr.bf16.mxu1 %v8307_v53  ;;  %v8310_v28 = vld [vmem:[#allocation13 + $0x90] sm:$0xff]   ;;  %v5840_v23 = vsub.s32 3, %v5827_v22 }
 0x3ab   :  { %v8918_v3 = vadd.f32 %v4390_v10, %v8866_v30  ;;  %7069 = vmatpush3.bf16.msra.mxu0 %v8302_v11  ;;  %v8312_v30 = vld [vmem:[#allocation13 + $0x98] sm:$0xff]  }
 0x3ac   :  { %7070 = vmatprep.subr.bf16.mxu0 %v8303_v43 }
 0x3ad   :  { %7081 = vmatpush3.bf16.msra.mxu1 %v8308_v47 }
 0x3ae   :  { %7082 = vmatprep.subr.bf16.mxu1 %v8309_v62  ;;  %v5841_v62 = vrot.slane %v5824_v18, %v5840_v23 }
 0x3af   :  { %7071 = vmatpush3.bf16.msra.mxu0 %v8304_v57 }
 0x3b1   :  { %7083 = vmatpush3.bf16.msra.mxu1 %v8310_v28 }
 0x3b2   :  { %7084 = vmatprep.subr.bf16.mxu1 %v8311_v19 }
 0x3b5   :  { %7085 = vmatpush3.bf16.msra.mxu1 %v8312_v30 }
 0x3b6   :  { %7086 = vmatprep.subr.bf16.mxu1 %v8313_v52 }
 0x3b9   :  { %7087 = vmatpush3.bf16.msra.mxu1 %v8314_v20 }
 0x3ba   :  { %7088 = vmatprep.subr.bf16.mxu1 %v8315_v29 }
 0x3bd   :  { %7089 = vmatpush3.bf16.msra.mxu1 %v8316_v54 }
 0x3be   :  { %7090 = vmatprep.subr.bf16.mxu1 %v8317_v2 }
 0x3c1   :  { %7091 = vmatpush3.bf16.msra.mxu1 %v8318_v34 }
 0x3c2   :  { %7092 = vmatprep.subr.bf16.mxu1 %v8319_v9 }
 0x3c5   :  { %7093 = vmatpush3.bf16.msra.mxu1 %v8320_v36 }
 0x3e5   :  { %v5608_v21 = vpop.f32.mrb[36].mxu0 }
 0x3e6   :  { %v5649_v26 = vpop.f32.mrb[36].mxu1  ;;  %v5610_v7 = vpop.f32.mrb[37].mxu0 }
 0x3e7   :  { %v5650_v27 = vadd.f32 %v5649_v26, %v5608_v21  ;;  %v5651_v17 = vpop.f32.mrb[37].mxu1  ;;  %v5612_v51 = vpop.f32.mrb[38].mxu0 }
 0x3e8   :  { %v5652_v48 = vadd.f32 %v5651_v17, %v5610_v7  ;;  %v5653_v6 = vpop.f32.mrb[38].mxu1  ;;  %v5613_v31 = vpop.f32.mrb[39].mxu0 }
 0x3e9   :  { %v5654_v33 = vpop.f32.mrb[39].mxu1  ;;  %v7023_v6 = vld [vmem:[#allocation14] ss:$0 sm:$0xff] }
 0x425   :  { %v5690_v41 = vpop.f32.mrb[40].mxu0 }
 0x426   :  { %v5731_v12 = vpop.f32.mrb[40].mxu1  ;;  %v5691_v42 = vadd.f32 %v5690_v41, %v5650_v27  ;;  %v5692_v15 = vpop.f32.mrb[41].mxu0 }
 0x427   :  { %v5733_v25 = vpop.f32.mrb[41].mxu1  ;;  %v5693_v55 = vadd.f32 %v5692_v15, %v5652_v48  ;;  %v5694_v46 = vpop.f32.mrb[42].mxu0 }
 0x428   :  { %v5735_v24 = vpop.f32.mrb[42].mxu1  ;;  %v5820_v0 = vadd.f32 %v5691_v42, %v8905_v4  ;;  %v5695_v13 = vpop.f32.mrb[43].mxu0 }
 0x429   :  { %v5736_v8 = vpop.f32.mrb[43].mxu1  ;;  %v5821_v56 = vadd.f32 %v5693_v55, %v8908_v32  ;;  %v5837_v32 = vrot.slane %v5824_v18, %v5836_v1  ;;  %v6202_v18 = vand.u32 127, %v5826_v38 }
 0x42a   :  { %v5846_v58 = vadd.f32 %v5829_v50, %v5820_v0 }
 0x42b   :  { %v5847_v59 = vadd.f32 %v5833_v16, %v5821_v56  ;;  %vm6209_vm0 = vcmp.lt.s32.totalorder %v6202_v18, 6 }
 0x42c   :  { %v5850_v14 = vmax.f32 %v5846_v58, 0.0 }
 0x42d   :  { %v5851_v61 = vmax.f32 %v5847_v59, 0.0 }
 0x42e   :  { %v5854_v63 = vpack.c.bf16 %v5850_v14, %v5850_v14 }
 0x42f   :  { %v5855_v37 = vpack.c.bf16 %v5851_v61, %v5851_v61 }
 0x431   :  { %6153 = vmatprep.mubr.bf16.mxu0 %v5855_v37 }
 0x432   :  { %6154 = vmatmul.mubr.bf16.vlgmr.msra.gmra.mrb[48].mxu0 %v5854_v63 }
 0x465   :  { %v5772_v5 = vpop.f32.mrb[44].mxu0 }
 0x466   :  { %v5813_v45 = vpop.f32.mrb[44].mxu1  ;;  %v5773_v35 = vadd.f32 %v5772_v5, %v5731_v12  ;;  %v5774_v10 = vpop.f32.mrb[45].mxu0 }
 0x467   :  { %v5815_v11 = vpop.f32.mrb[45].mxu1  ;;  %v5775_v4 = vadd.f32 %v5774_v10, %v5733_v25  ;;  %v5776_v43 = vpop.f32.mrb[46].mxu0 }
 0x468   :  { %v5817_v57 = vpop.f32.mrb[46].mxu1  ;;  %v5814_v60 = vadd.f32 %v5813_v45, %v5773_v35  ;;  %v5777_v44 = vpop.f32.mrb[47].mxu0 }
 0x469   :  { %v5818_v53 = vpop.f32.mrb[47].mxu1  ;;  %v5816_v47 = vadd.f32 %v5815_v11, %v5775_v4 }
 0x46a   :  { %v5822_v28 = vadd.f32 %v5814_v60, %v8915_v49 }
 0x46b   :  { %v5823_v19 = vadd.f32 %v5816_v47, %v8918_v3 }
 0x46c   :  { %v5848_v30 = vadd.f32 %v5837_v32, %v5822_v28 }
 0x46d   :  { %v5849_v52 = vadd.f32 %v5841_v62, %v5823_v19 }
 0x46e   :  { %v5852_v20 = vmax.f32 %v5848_v30, 0.0 }
 0x46f   :  { %v5853_v21 = vmax.f32 %v5849_v52, 0.0 }
 0x470   :  { %v5856_v27 = vpack.c.bf16 %v5852_v20, %v5852_v20 }
 0x471   :  { %v5857_v26 = vpack.c.bf16 %v5853_v21, %v5853_v21 }
 0x473   :  { %6193 = vmatprep.mubr.bf16.mxu1 %v5857_v26 }
 0x474   :  { %6194 = vmatmul.mubr.bf16.vlgmr.msra.gmra.mrb[48].mxu1 %v5856_v27 }
 0x505   :  { %v7072_v7 = vpop.f32.mrb[48].mxu0 }
 0x506   :  { %v7073_v17 = vpop.f32.mrb[49].mxu0 }
 0x507   :  { %v7074_v29 = vadd.f32 %v7073_v17, %v7072_v7  ;;  %v7075_v48 = vpop.f32.mrb[50].mxu0 }
 0x508   :  { %v7076_v51 = vpop.f32.mrb[51].mxu0 }
 0x509   :  { %v6156_v33 = vadd.f32 %v7074_v29, %v7023_v6 }
 0x547   :  { %v7094_v54 = vpop.f32.mrb[48].mxu1 }
 0x548   :  { %v7095_v31 = vpop.f32.mrb[49].mxu1 }
 0x549   :  { %v7096_v49 = vadd.f32 %v7095_v31, %v7094_v54  ;;  %v7097_v2 = vpop.f32.mrb[50].mxu1 }
 0x54a   :  { %v7098_v3 = vpop.f32.mrb[51].mxu1 }
 0x54b   :  { %v6196_v34 = vadd.f32 %v7096_v49, %v6156_v33 }
 0x54d   :  { %v6203_v9 = vsub.f32 0.0, %v6196_v34 }
 0x54f   :  { %v6204_v36 = vmul.f32 1.442695, %v6203_v9 }
 0x551   :  { %8321 = vpow2.f32 %v6204_v36 }
 0x55b   :  { %v8322_v22 = vpop.eup %8321 }
 0x55c   :  { %v6206_v39 = vadd.f32 1.0, %v8322_v22 }
 0x55e   :  { %8323 = vrcp.f32 %v6206_v39 }
 0x568   :  { %v8324_v40 = vpop.eup %8323 }
 0x569   :  { %v6208_v41 = vmin.f32 %v8324_v40, 1.0 }
 0x56b   :  { %v6210_v12 = vsel %vm6209_vm0, %v6208_v41, %v6196_v34 }
 0x56c   :  { %6211 = vst [vmem:[#allocation16] sm:$0xff] %v6210_v12 }
 0x56d   :  { %8512 = shalt.err (!%p8509_p12)
}
 0x56e   :  { %s8513_s28 = scalar_lea.hbm %s8946_s8, 128 }
 0x56f   :  { %p8514_p13 = scmp.ne.s32.totalorder %s8946_s8, %s8513_s28  ;;  %p8517_p0 = scmp.lt.u32.totalorder %s8513_s28, %s8946_s8 }
 0x571   :  { %p8519_p1 = pnand %p8517_p0, %p8514_p13 }
 0x573   :  { %8522 = shalt.err (!%p8519_p1)
}
 0x574   :  { %6221 = dma.vmem_to_hbm [thread:$0]  %s6219_s26, 128, %s8946_s8, [#allocation4]  }
 0x575   :  { %8533 = dma.done.wait [#allocation4], 128  }
 0x576   :  { %8534 = vsyncadd [#allocation4], 4294967168 }
 0x577   :  { %6225 = vsyncpa [#allocation3], 1 }
 0x578   :  { %6226 = vsyncpa [#allocation6], 1 }
 0x579   :  { %6227 = vsyncpa [#allocation9], 1 }
 0x57a   :  { %6228 = vsyncpa [#allocation12], 1 }
 0x57b   :  { %6229 = vsyncpa [#allocation15], 1 }
 0x57c   :  { %6230 = vsyncpa [#allocation4], 1 }

</bundles_post_ra>
